<compile_context>
chip_gen: v6e
topology: v6e:2x2x1
jax: 0.10.0
libtpu: 0.0.40
codegen_flags: <defaults>
</compile_context>

<pallas_src>
import math
from functools import partial

import jax
import jax.numpy as jnp
from jax import lax
from jax.experimental import pallas as pl
from jax.experimental.pallas import tpu as pltpu

NEG_INF = -1e30      # additive mask value (exp underflows to 0 in f32)
LN_EPS = 1e-5

# MXU operand dtype.  jnp.bfloat16 gives ~2x MXU peak and halves operand bytes on
# v5e/v6e/v7x (accumulation stays f32 via preferred_element_type), at the cost of
# ~1e-3 relative deviation from the f32 torch reference.  Kept at f32 so the
# forward pass preserves reference numerics; flip the knob to enable bf16.
MXU_DTYPE = jnp.float32

VMEM_LIMIT = 32 * 1024 * 1024   # fits every generation incl. v7x's 64 MiB VMEM

# contract the last dim of both operands: q @ k^T without an XLU transpose of k
NT_DIMS = (((1,), (1,)), ((), ()))


# ----------------------------- in-kernel helpers -----------------------------

def _mm(a, b):
    """MXU matmul with f32 accumulation (operands optionally down-cast)."""
    return jnp.dot(a.astype(MXU_DTYPE), b.astype(MXU_DTYPE),
                   preferred_element_type=jnp.float32)


def _mm_nt(a, b):
    """a @ b.T via dot_general last-dim contraction (no explicit transpose)."""
    return lax.dot_general(a.astype(MXU_DTYPE), b.astype(MXU_DTYPE), NT_DIMS,
                           preferred_element_type=jnp.float32)


def _layernorm(x, g, b):
    mean = jnp.mean(x, axis=-1, keepdims=True)
    xc = x - mean
    var = jnp.mean(xc * xc, axis=-1, keepdims=True)          # biased var, like torch
    return xc * lax.rsqrt(var + LN_EPS) * g + b


def _erf(x):
    # float32-accurate erf (A&S 7.1.26, max abs err ~1.5e-7), matching torch's
    # exact (erf-form) nn.GELU() to fp32 tolerance.
    # TODO(synk): switch to jax.lax.erf if/when the Mosaic lowering is guaranteed;
    # the polynomial is kept because it is known to lower cleanly.
    a1, a2, a3, a4, a5 = 0.254829592, -0.284496736, 1.421413741, -1.453152027, 1.061405429
    p = 0.3275911
    sgn = jnp.where(x >= 0.0, 1.0, -1.0)
    ax = jnp.abs(x)
    t = 1.0 / (1.0 + p * ax)
    poly = ((((a5 * t + a4) * t + a3) * t + a2) * t + a1) * t
    return sgn * (1.0 - poly * jnp.exp(-ax * ax))


def _gelu_exact(x):
    # matches torch.nn.GELU() (erf form)
    return 0.5 * x * (1.0 + _erf(x * (1.0 / math.sqrt(2.0))))


def _softmax_rows(s):
    # Exact softmax (true divide) for parity with the torch reference.
    m = jnp.max(s, axis=-1, keepdims=True)
    e = jnp.exp(s - m)
    return e / jnp.sum(e, axis=-1, keepdims=True)


# --------------------------------- kernel ------------------------------------

def decoder_fused_kernel(tgt_ref, src_ref, msk_ref,
                         ln1g_ref, ln1b_ref, wqkv_ref, bqkv_ref,
                         ln2g_ref, ln2b_ref, wq_ref, bq_ref, wkv_ref, bkv_ref,
                         ln3g_ref, ln3b_ref, w1_ref, b1_ref, w2_ref, b2_ref,
                         fing_ref, finb_ref, o_ref,
                         *, n_layers, n_heads, d_head, d_model):
    """Whole decoder forward for one batch element, entirely in VMEM."""
    x = tgt_ref[...]                                  # (t, D) decoder state
    src = src_ref[...]                                # (s, D) encoder memory
    t = x.shape[0]

    # additive biases built in-kernel / from the tiny (1, s) mask block
    # (mask semantics: 1.0/True = attend, matching the module's use of the
    #  padding mask directly as a bool SDPA attn_mask).
    pad_bias = jnp.where(msk_ref[...] > 0.5, 0.0, NEG_INF)            # (1, s)
    row = lax.broadcasted_iota(jnp.int32, (t, t), 0)
    col = lax.broadcasted_iota(jnp.int32, (t, t), 1)
    causal_bias = jnp.where(col <= row, 0.0, NEG_INF)                 # (t, t)

    scale = 1.0 / math.sqrt(d_head)

    def mha(q, k, v, bias):
        # TODO(synk): for long sequences convert this to a flash-style KV-tile
        # loop with online softmax; irrelevant at t=8 / s=16.
        heads = []
        for h in range(n_heads):                      # static unroll
            lo, hi = h * d_head, (h + 1) * d_head
            sc = _mm_nt(q[:, lo:hi], k[:, lo:hi]) + bias
            p = _softmax_rows(sc)
            heads.append(_mm(p, v[:, lo:hi]))
        # single concat + single residual add downstream (no per-head stores)
        return jnp.concatenate(heads, axis=-1)        # (t, D)

    for l in range(n_layers):                         # static unroll over stacks
        # ---- self-attention sub-layer (causal); residual adds the *normalized* input
        tx = _layernorm(x, ln1g_ref[l], ln1b_ref[l])
        qkv = _mm(tx, wqkv_ref[l]) + bqkv_ref[l]      # (t, 3D) single fat MXU op
        q = qkv[:, :d_model] * scale                  # fold 1/sqrt(d_head) once into q
        k = qkv[:, d_model:2 * d_model]
        v = qkv[:, 2 * d_model:]
        x = mha(q, k, v, causal_bias) + tx

        # ---- cross-attention sub-layer (key-padding mask on the raw source)
        tx = _layernorm(x, ln2g_ref[l], ln2b_ref[l])
        q = (_mm(tx, wq_ref[l]) + bq_ref[l]) * scale  # (t, D)
        kv = _mm(src, wkv_ref[l]) + bkv_ref[l]        # (s, 2D) fused K/V projection
        k = kv[:, :d_model]
        v = kv[:, d_model:]
        # TODO(synk): a fully-padded key row would softmax to uniform here instead
        # of torch-SDPA's NaN behaviour; not reachable with valid masks.
        x = mha(q, k, v, pad_bias) + tx

        # ---- MLP sub-layer (per the module, GELU comes AFTER the second linear)
        xn = _layernorm(x, ln3g_ref[l], ln3b_ref[l])
        h1 = _mm(xn, w1_ref[l]) + b1_ref[l]
        z = _mm(h1, w2_ref[l]) + b2_ref[l]
        x = _gelu_exact(z) + xn

    # final LayerNorm; the only HBM store of the whole forward
    o_ref[...] = _layernorm(x, fing_ref[...], finb_ref[...]).astype(o_ref.dtype)


# -------------------------------- wrapper -------------------------------------

def decoder_forward(params, target, source, source_key_padding_mask, n_heads):
    N, t, D = target.shape
    s = source.shape[1]
    L = params["self_wqkv"].shape[0]
    d_inner = params["mlp_w1"].shape[2]

    pad_mask = source_key_padding_mask.astype(jnp.float32).reshape(N, 1, s)

    kernel = partial(decoder_fused_kernel, n_layers=L, n_heads=n_heads,
                     d_head=D // n_heads, d_model=D)

    def resident(shape):
        # full-array block, constant index_map -> stays VMEM-resident across grid
        return pl.BlockSpec(shape, lambda b, _n=len(shape): (0,) * _n)

    return pl.pallas_call(
        kernel,
        out_shape=jax.ShapeDtypeStruct((N, t, D), target.dtype),
        grid=(N,),
        in_specs=[
            pl.BlockSpec((None, t, D), lambda b: (b, 0, 0)),   # per-batch target
            pl.BlockSpec((None, s, D), lambda b: (b, 0, 0)),   # per-batch source
            pl.BlockSpec((None, 1, s), lambda b: (b, 0, 0)),   # (1, s) padding mask
            resident((L, 1, D)), resident((L, 1, D)),          # ln1 gamma/beta
            resident((L, D, 3 * D)), resident((L, 1, 3 * D)),  # fused self QKV
            resident((L, 1, D)), resident((L, 1, D)),          # ln2 gamma/beta
            resident((L, D, D)), resident((L, 1, D)),          # cross Wq / bq
            resident((L, D, 2 * D)), resident((L, 1, 2 * D)),  # fused cross KV
            resident((L, 1, D)), resident((L, 1, D)),          # ln3 gamma/beta
            resident((L, D, d_inner)), resident((L, 1, d_inner)),
            resident((L, d_inner, D)), resident((L, 1, D)),
            resident((1, D)), resident((1, D)),                # final LN gamma/beta
        ],
        out_specs=pl.BlockSpec((None, t, D), lambda b: (b, 0, 0)),
        compiler_params=pltpu.CompilerParams(
            dimension_semantics=("parallel",),   # N=2 blocks -> both v7x TCs get work
            vmem_limit_bytes=VMEM_LIMIT),
    )(target, source, pad_mask,
      params["ln1_g"], params["ln1_b"], params["self_wqkv"], params["self_bqkv"],
      params["ln2_g"], params["ln2_b"], params["cross_wq"], params["cross_bq"],
      params["cross_wkv"], params["cross_bkv"],
      params["ln3_g"], params["ln3_b"],
      params["mlp_w1"], params["mlp_b1"], params["mlp_w2"], params["mlp_b2"],
      params["final_g"], params["final_b"])


# ----------------------------- parameter init ---------------------------------

def init_params(key, d_model, d_inner, n_stacks):
    def lin(k, fan_in, fan_out):
        k1, k2 = jax.random.split(k)
        bound = 1.0 / math.sqrt(fan_in)
        w = jax.random.uniform(k1, (fan_in, fan_out), jnp.float32, -bound, bound)
        b = jax.random.uniform(k2, (fan_out,), jnp.float32, -bound, bound)
        return w, b

    names = ("ln1_g", "ln1_b", "self_wqkv", "self_bqkv", "ln2_g", "ln2_b",
             "cross_wq", "cross_bq", "cross_wkv", "cross_bkv",
             "ln3_g", "ln3_b", "mlp_w1", "mlp_b1", "mlp_w2", "mlp_b2")
    acc = {n: [] for n in names}
    ones = jnp.ones((1, d_model), jnp.float32)
    zeros = jnp.zeros((1, d_model), jnp.float32)
    for _ in range(n_stacks):
        key, *ks = jax.random.split(key, 9)
        wq, bq = lin(ks[0], d_model, d_model)
        wk, bk = lin(ks[1], d_model, d_model)
        wv, bv = lin(ks[2], d_model, d_model)
        cwq, cbq = lin(ks[3], d_model, d_model)
        cwk, cbk = lin(ks[4], d_model, d_model)
        cwv, cbv = lin(ks[5], d_model, d_model)
        w1, b1 = lin(ks[6], d_model, d_inner)
        w2, b2 = lin(ks[7], d_inner, d_model)
        acc["ln1_g"].append(ones); acc["ln1_b"].append(zeros)
        acc["self_wqkv"].append(jnp.concatenate([wq, wk, wv], axis=1))        # (D, 3D)
        acc["self_bqkv"].append(jnp.concatenate([bq, bk, bv]).reshape(1, 3 * d_model))
        acc["ln2_g"].append(ones); acc["ln2_b"].append(zeros)
        acc["cross_wq"].append(cwq)
        acc["cross_bq"].append(cbq.reshape(1, d_model))
        acc["cross_wkv"].append(jnp.concatenate([cwk, cwv], axis=1))          # (D, 2D)
        acc["cross_bkv"].append(jnp.concatenate([cbk, cbv]).reshape(1, 2 * d_model))
        acc["ln3_g"].append(ones); acc["ln3_b"].append(zeros)
        acc["mlp_w1"].append(w1); acc["mlp_b1"].append(b1.reshape(1, d_inner))
        acc["mlp_w2"].append(w2); acc["mlp_b2"].append(b2.reshape(1, d_model))
    params = {n: jnp.stack(v, axis=0) for n, v in acc.items()}   # leading n_stacks axis
    params["final_g"] = jnp.ones((1, d_model), jnp.float32)
    params["final_b"] = jnp.zeros((1, d_model), jnp.float32)
    return params


# --------------------------- pure-JAX reference --------------------------------

def decoder_reference(params, target, source, mask_bool, n_heads):
    """Straightforward jnp re-implementation of the torch module (for checking)."""
    N, t, D = target.shape
    s = source.shape[1]
    d_head = D // n_heads
    L = params["self_wqkv"].shape[0]

    def ln(x, g, b):
        mu = jnp.mean(x, -1, keepdims=True)
        var = jnp.mean((x - mu) ** 2, -1, keepdims=True)
        return (x - mu) / jnp.sqrt(var + LN_EPS) * g + b

    def mha(q, k, v, bias):
        sl = k.shape[1]
        qh = q.reshape(N, t, n_heads, d_head).transpose(0, 2, 1, 3)
        kh = k.reshape(N, sl, n_heads, d_head).transpose(0, 2, 1, 3)
        vh = v.reshape(N, sl, n_heads, d_head).transpose(0, 2, 1, 3)
        sc = jnp.einsum("nhtd,nhsd->nhts", qh, kh) / math.sqrt(d_head) + bias
        p = jax.nn.softmax(sc, axis=-1)
        o = jnp.einsum("nhts,nhsd->nhtd", p, vh)
        return o.transpose(0, 2, 1, 3).reshape(N, t, D)

    causal = jnp.where(jnp.tril(jnp.ones((t, t), bool)), 0.0, NEG_INF)[None, None]
    pad = jnp.where(mask_bool[:, None, None, :], 0.0, NEG_INF)

    x = target
    for l in range(L):
        tx = ln(x, params["ln1_g"][l], params["ln1_b"][l])
        qkv = tx @ params["self_wqkv"][l] + params["self_bqkv"][l]
        x = mha(qkv[..., :D], qkv[..., D:2 * D], qkv[..., 2 * D:], causal) + tx

        tx = ln(x, params["ln2_g"][l], params["ln2_b"][l])
        q = tx @ params["cross_wq"][l] + params["cross_bq"][l]
        kv = source @ params["cross_wkv"][l] + params["cross_bkv"][l]
        x = mha(q, kv[..., :D], kv[..., D:], pad) + tx

        xn = ln(x, params["ln3_g"][l], params["ln3_b"][l])
        h = xn @ params["mlp_w1"][l] + params["mlp_b1"][l]
        z = h @ params["mlp_w2"][l] + params["mlp_b2"][l]
        x = jax.nn.gelu(z, approximate=False) + xn
    return ln(x, params["final_g"], params["final_b"])


# ----------------------------------- main --------------------------------------

if __name__ == "__main__":
    N, t, s = 2, 8, 16
    d_model, d_inner, n_heads, n_stacks = 32, 64, 4, 2

    key = jax.random.PRNGKey(0)
    kp, kt, ksrc = jax.random.split(key, 3)

    params = init_params(kp, d_model, d_inner, n_stacks)
    target = jax.random.normal(kt, (N, t, d_model), jnp.float32)
    source = jax.random.normal(ksrc, (N, s, d_model), jnp.float32)

    # key padding mask: True = valid key (attend), matching how the module feeds
    # the padding mask directly as a bool SDPA attn_mask.
    lengths = jnp.array([s, 10], dtype=jnp.int32)
    source_key_padding_mask = jnp.arange(s)[None, :] < lengths[:, None]

    fwd = jax.jit(partial(decoder_forward, n_heads=n_heads))
    out = jax.block_until_ready(fwd(params, target, source, source_key_padding_mask))
    assert out.shape == (N, t, d_model) and out.dtype == jnp.float32
    assert bool(jnp.all(jnp.isfinite(out)))

    ref = decoder_reference(params, target, source, source_key_padding_mask, n_heads)
    max_err = float(jnp.max(jnp.abs(out - ref)))
    assert max_err < 2e-2, f"mismatch vs pure-JAX reference: max abs err {max_err}"

    print("KERNEL_OK")
</pallas_src>

<mosaic_0001>
module attributes {stable_mosaic.version = 11 : i64} {
  func.func @decoder_fused_kernel(%arg0: i32, %arg1: memref<1x8x32xf32, #tpu.memory_space<vmem>>, %arg2: memref<1x16x32xf32, #tpu.memory_space<vmem>>, %arg3: memref<1x1x16xf32, #tpu.memory_space<vmem>>, %arg4: memref<2x1x32xf32, #tpu.memory_space<vmem>>, %arg5: memref<2x1x32xf32, #tpu.memory_space<vmem>>, %arg6: memref<2x32x96xf32, #tpu.memory_space<vmem>>, %arg7: memref<2x1x96xf32, #tpu.memory_space<vmem>>, %arg8: memref<2x1x32xf32, #tpu.memory_space<vmem>>, %arg9: memref<2x1x32xf32, #tpu.memory_space<vmem>>, %arg10: memref<2x32x32xf32, #tpu.memory_space<vmem>>, %arg11: memref<2x1x32xf32, #tpu.memory_space<vmem>>, %arg12: memref<2x32x64xf32, #tpu.memory_space<vmem>>, %arg13: memref<2x1x64xf32, #tpu.memory_space<vmem>>, %arg14: memref<2x1x32xf32, #tpu.memory_space<vmem>>, %arg15: memref<2x1x32xf32, #tpu.memory_space<vmem>>, %arg16: memref<2x32x64xf32, #tpu.memory_space<vmem>>, %arg17: memref<2x1x64xf32, #tpu.memory_space<vmem>>, %arg18: memref<2x64x32xf32, #tpu.memory_space<vmem>>, %arg19: memref<2x1x32xf32, #tpu.memory_space<vmem>>, %arg20: memref<1x32xf32, #tpu.memory_space<vmem>>, %arg21: memref<1x32xf32, #tpu.memory_space<vmem>>, %arg22: memref<1x8x32xf32, #tpu.memory_space<vmem>>) attributes {dimension_semantics = [#tpu.dimension_semantics<parallel>], iteration_bounds = array<i64: 2>, scalar_prefetch = 0 : i64, scratch_operands = 0 : i64, tpu.core_type = #tpu.core_type<tc>, window_params = [{transform_indices = @transform_0, window_bounds = array<i64: 1, 8, 32>}, {transform_indices = @transform_1, window_bounds = array<i64: 1, 16, 32>}, {transform_indices = @transform_2, window_bounds = array<i64: 1, 1, 16>}, {pipeline_mode = #tpu.pipeline_mode<synchronous>, transform_indices = @transform_3, window_bounds = array<i64: 2, 1, 32>}, {pipeline_mode = #tpu.pipeline_mode<synchronous>, transform_indices = @transform_4, window_bounds = array<i64: 2, 1, 32>}, {pipeline_mode = #tpu.pipeline_mode<synchronous>, transform_indices = @transform_5, window_bounds = array<i64: 2, 32, 96>}, {pipeline_mode = #tpu.pipeline_mode<synchronous>, transform_indices = @transform_6, window_bounds = array<i64: 2, 1, 96>}, {pipeline_mode = #tpu.pipeline_mode<synchronous>, transform_indices = @transform_7, window_bounds = array<i64: 2, 1, 32>}, {pipeline_mode = #tpu.pipeline_mode<synchronous>, transform_indices = @transform_8, window_bounds = array<i64: 2, 1, 32>}, {pipeline_mode = #tpu.pipeline_mode<synchronous>, transform_indices = @transform_9, window_bounds = array<i64: 2, 32, 32>}, {pipeline_mode = #tpu.pipeline_mode<synchronous>, transform_indices = @transform_10, window_bounds = array<i64: 2, 1, 32>}, {pipeline_mode = #tpu.pipeline_mode<synchronous>, transform_indices = @transform_11, window_bounds = array<i64: 2, 32, 64>}, {pipeline_mode = #tpu.pipeline_mode<synchronous>, transform_indices = @transform_12, window_bounds = array<i64: 2, 1, 64>}, {pipeline_mode = #tpu.pipeline_mode<synchronous>, transform_indices = @transform_13, window_bounds = array<i64: 2, 1, 32>}, {pipeline_mode = #tpu.pipeline_mode<synchronous>, transform_indices = @transform_14, window_bounds = array<i64: 2, 1, 32>}, {pipeline_mode = #tpu.pipeline_mode<synchronous>, transform_indices = @transform_15, window_bounds = array<i64: 2, 32, 64>}, {pipeline_mode = #tpu.pipeline_mode<synchronous>, transform_indices = @transform_16, window_bounds = array<i64: 2, 1, 64>}, {pipeline_mode = #tpu.pipeline_mode<synchronous>, transform_indices = @transform_17, window_bounds = array<i64: 2, 64, 32>}, {pipeline_mode = #tpu.pipeline_mode<synchronous>, transform_indices = @transform_18, window_bounds = array<i64: 2, 1, 32>}, {pipeline_mode = #tpu.pipeline_mode<synchronous>, transform_indices = @transform_19, window_bounds = array<i64: 1, 32>}, {pipeline_mode = #tpu.pipeline_mode<synchronous>, transform_indices = @transform_20, window_bounds = array<i64: 1, 32>}, {transform_indices = @transform_21, window_bounds = array<i64: 1, 8, 32>}]} {
    %c0 = arith.constant 0 : index
    %c0_0 = arith.constant 0 : index
    %c0_1 = arith.constant 0 : index
    %0 = vector.load %arg1[%c0, %c0_0, %c0_1] : memref<1x8x32xf32, #tpu.memory_space<vmem>>, vector<1x8x32xf32>
    %1 = vector.shape_cast %0 : vector<1x8x32xf32> to vector<8x32xf32>
    %c0_2 = arith.constant 0 : index
    %c0_3 = arith.constant 0 : index
    %c0_4 = arith.constant 0 : index
    %2 = vector.load %arg2[%c0_2, %c0_3, %c0_4] : memref<1x16x32xf32, #tpu.memory_space<vmem>>, vector<1x16x32xf32>
    %3 = vector.shape_cast %2 : vector<1x16x32xf32> to vector<16x32xf32>
    %c0_5 = arith.constant 0 : index
    %c0_6 = arith.constant 0 : index
    %c0_7 = arith.constant 0 : index
    %4 = vector.load %arg3[%c0_5, %c0_6, %c0_7] : memref<1x1x16xf32, #tpu.memory_space<vmem>>, vector<1x1x16xf32>
    %5 = vector.shape_cast %4 : vector<1x1x16xf32> to vector<1x16xf32>
    %cst = arith.constant 5.000000e-01 : f32
    %6 = vector.broadcast %cst : f32 to vector<1x16xf32>
    %7 = arith.cmpf ogt, %5, %6 : vector<1x16xf32>
    %cst_8 = arith.constant 0.000000e+00 : f32
    %cst_9 = arith.constant -1.000000e+30 : f32
    %8 = vector.broadcast %cst_8 : f32 to vector<1x16xf32>
    %9 = vector.broadcast %cst_9 : f32 to vector<1x16xf32>
    %10 = arith.select %7, %8, %9 : vector<1x16xi1>, vector<1x16xf32>
    %11 = tpu.iota {dimensions = array<i32: 0>} : vector<8x8xi32>
    %12 = tpu.iota {dimensions = array<i32: 1>} : vector<8x8xi32>
    %13 = arith.cmpi sle, %12, %11 : vector<8x8xi32>
    %cst_10 = arith.constant 0.000000e+00 : f32
    %cst_11 = arith.constant -1.000000e+30 : f32
    %14 = vector.broadcast %cst_10 : f32 to vector<8x8xf32>
    %15 = vector.broadcast %cst_11 : f32 to vector<8x8xf32>
    %16 = arith.select %13, %14, %15 : vector<8x8xi1>, vector<8x8xf32>
    %c0_12 = arith.constant 0 : index
    %c0_13 = arith.constant 0 : index
    %c0_14 = arith.constant 0 : index
    %17 = vector.load %arg4[%c0_12, %c0_13, %c0_14] : memref<2x1x32xf32, #tpu.memory_space<vmem>>, vector<1x1x32xf32>
    %18 = vector.shape_cast %17 : vector<1x1x32xf32> to vector<1x32xf32>
    %c0_15 = arith.constant 0 : index
    %c0_16 = arith.constant 0 : index
    %c0_17 = arith.constant 0 : index
    %19 = vector.load %arg5[%c0_15, %c0_16, %c0_17] : memref<2x1x32xf32, #tpu.memory_space<vmem>>, vector<1x1x32xf32>
    %20 = vector.shape_cast %19 : vector<1x1x32xf32> to vector<1x32xf32>
    %cst_18 = arith.constant dense<0.000000e+00> : vector<8xf32>
    %21 = vector.multi_reduction <add>, %1, %cst_18 [1] : vector<8x32xf32> to vector<8xf32>
    %22 = vector.shape_cast %21 : vector<8xf32> to vector<8x1xf32>
    %cst_19 = arith.constant 3.200000e+01 : f32
    %23 = vector.broadcast %cst_19 : f32 to vector<8x1xf32>
    %24 = arith.divf %22, %23 : vector<8x1xf32>
    %25 = vector.broadcast %24 : vector<8x1xf32> to vector<8x32xf32>
    %26 = arith.subf %1, %25 : vector<8x32xf32>
    %27 = arith.mulf %26, %26 : vector<8x32xf32>
    %cst_20 = arith.constant dense<0.000000e+00> : vector<8xf32>
    %28 = vector.multi_reduction <add>, %27, %cst_20 [1] : vector<8x32xf32> to vector<8xf32>
    %29 = vector.shape_cast %28 : vector<8xf32> to vector<8x1xf32>
    %cst_21 = arith.constant 3.200000e+01 : f32
    %30 = vector.broadcast %cst_21 : f32 to vector<8x1xf32>
    %31 = arith.divf %29, %30 : vector<8x1xf32>
    %cst_22 = arith.constant 9.99999974E-6 : f32
    %32 = vector.broadcast %cst_22 : f32 to vector<8x1xf32>
    %33 = arith.addf %31, %32 : vector<8x1xf32>
    %34 = math.rsqrt %33 : vector<8x1xf32>
    %35 = vector.broadcast %34 : vector<8x1xf32> to vector<8x32xf32>
    %36 = arith.mulf %26, %35 : vector<8x32xf32>
    %37 = vector.broadcast %18 : vector<1x32xf32> to vector<8x32xf32>
    %38 = arith.mulf %36, %37 : vector<8x32xf32>
    %39 = vector.broadcast %20 : vector<1x32xf32> to vector<8x32xf32>
    %40 = arith.addf %38, %39 : vector<8x32xf32>
    %c0_23 = arith.constant 0 : index
    %c0_24 = arith.constant 0 : index
    %c0_25 = arith.constant 0 : index
    %41 = vector.load %arg6[%c0_23, %c0_24, %c0_25] : memref<2x32x96xf32, #tpu.memory_space<vmem>>, vector<1x32x96xf32>
    %42 = vector.shape_cast %41 : vector<1x32x96xf32> to vector<32x96xf32>
    %cst_26 = arith.constant dense<0.000000e+00> : vector<8x96xf32>
    %43 = tpu.matmul %40, %42, %cst_26 {dimension_numbers = #tpu.dot_dimension_numbers<[1], [0], [0], [1], [0, 0, 1, 1], [], []>} : vector<8x32xf32>, vector<32x96xf32>, vector<8x96xf32> -> vector<8x96xf32>
    %c0_27 = arith.constant 0 : index
    %c0_28 = arith.constant 0 : index
    %c0_29 = arith.constant 0 : index
    %44 = vector.load %arg7[%c0_27, %c0_28, %c0_29] : memref<2x1x96xf32, #tpu.memory_space<vmem>>, vector<1x1x96xf32>
    %45 = vector.shape_cast %44 : vector<1x1x96xf32> to vector<1x96xf32>
    %46 = vector.broadcast %45 : vector<1x96xf32> to vector<8x96xf32>
    %47 = arith.addf %43, %46 : vector<8x96xf32>
    %48 = vector.extract_strided_slice %47 {offsets = [0, 0], sizes = [8, 32], strides = [1, 1]} : vector<8x96xf32> to vector<8x32xf32>
    %cst_30 = arith.constant 0.353553385 : f32
    %49 = vector.broadcast %cst_30 : f32 to vector<8x32xf32>
    %50 = arith.mulf %48, %49 : vector<8x32xf32>
    %51 = vector.extract_strided_slice %47 {offsets = [0, 32], sizes = [8, 32], strides = [1, 1]} : vector<8x96xf32> to vector<8x32xf32>
    %52 = vector.extract_strided_slice %47 {offsets = [0, 64], sizes = [8, 32], strides = [1, 1]} : vector<8x96xf32> to vector<8x32xf32>
    %53 = vector.extract_strided_slice %50 {offsets = [0, 0], sizes = [8, 8], strides = [1, 1]} : vector<8x32xf32> to vector<8x8xf32>
    %54 = vector.extract_strided_slice %51 {offsets = [0, 0], sizes = [8, 8], strides = [1, 1]} : vector<8x32xf32> to vector<8x8xf32>
    %cst_31 = arith.constant dense<0.000000e+00> : vector<8x8xf32>
    %55 = tpu.matmul %53, %54, %cst_31 {dimension_numbers = #tpu.dot_dimension_numbers<[1], [1], [0], [0], [0, 0, 1, 0], [], []>} : vector<8x8xf32>, vector<8x8xf32>, vector<8x8xf32> -> vector<8x8xf32>
    %56 = arith.addf %55, %16 : vector<8x8xf32>
    %cst_32 = arith.constant dense<0xFF800000> : vector<8xf32>
    %57 = vector.multi_reduction <maximumf>, %56, %cst_32 [1] : vector<8x8xf32> to vector<8xf32>
    %58 = vector.shape_cast %57 : vector<8xf32> to vector<8x1xf32>
    %59 = vector.broadcast %58 : vector<8x1xf32> to vector<8x8xf32>
    %60 = arith.subf %56, %59 : vector<8x8xf32>
    %61 = math.exp %60 : vector<8x8xf32>
    %cst_33 = arith.constant dense<0.000000e+00> : vector<8xf32>
    %62 = vector.multi_reduction <add>, %61, %cst_33 [1] : vector<8x8xf32> to vector<8xf32>
    %63 = vector.shape_cast %62 : vector<8xf32> to vector<8x1xf32>
    %64 = vector.broadcast %63 : vector<8x1xf32> to vector<8x8xf32>
    %65 = arith.divf %61, %64 : vector<8x8xf32>
    %66 = vector.extract_strided_slice %52 {offsets = [0, 0], sizes = [8, 8], strides = [1, 1]} : vector<8x32xf32> to vector<8x8xf32>
    %cst_34 = arith.constant dense<0.000000e+00> : vector<8x8xf32>
    %67 = tpu.matmul %65, %66, %cst_34 {dimension_numbers = #tpu.dot_dimension_numbers<[1], [0], [0], [1], [0, 0, 1, 1], [], []>} : vector<8x8xf32>, vector<8x8xf32>, vector<8x8xf32> -> vector<8x8xf32>
    %68 = vector.extract_strided_slice %50 {offsets = [0, 8], sizes = [8, 8], strides = [1, 1]} : vector<8x32xf32> to vector<8x8xf32>
    %69 = vector.extract_strided_slice %51 {offsets = [0, 8], sizes = [8, 8], strides = [1, 1]} : vector<8x32xf32> to vector<8x8xf32>
    %cst_35 = arith.constant dense<0.000000e+00> : vector<8x8xf32>
    %70 = tpu.matmul %68, %69, %cst_35 {dimension_numbers = #tpu.dot_dimension_numbers<[1], [1], [0], [0], [0, 0, 1, 0], [], []>} : vector<8x8xf32>, vector<8x8xf32>, vector<8x8xf32> -> vector<8x8xf32>
    %71 = arith.addf %70, %16 : vector<8x8xf32>
    %cst_36 = arith.constant dense<0xFF800000> : vector<8xf32>
    %72 = vector.multi_reduction <maximumf>, %71, %cst_36 [1] : vector<8x8xf32> to vector<8xf32>
    %73 = vector.shape_cast %72 : vector<8xf32> to vector<8x1xf32>
    %74 = vector.broadcast %73 : vector<8x1xf32> to vector<8x8xf32>
    %75 = arith.subf %71, %74 : vector<8x8xf32>
    %76 = math.exp %75 : vector<8x8xf32>
    %cst_37 = arith.constant dense<0.000000e+00> : vector<8xf32>
    %77 = vector.multi_reduction <add>, %76, %cst_37 [1] : vector<8x8xf32> to vector<8xf32>
    %78 = vector.shape_cast %77 : vector<8xf32> to vector<8x1xf32>
    %79 = vector.broadcast %78 : vector<8x1xf32> to vector<8x8xf32>
    %80 = arith.divf %76, %79 : vector<8x8xf32>
    %81 = vector.extract_strided_slice %52 {offsets = [0, 8], sizes = [8, 8], strides = [1, 1]} : vector<8x32xf32> to vector<8x8xf32>
    %cst_38 = arith.constant dense<0.000000e+00> : vector<8x8xf32>
    %82 = tpu.matmul %80, %81, %cst_38 {dimension_numbers = #tpu.dot_dimension_numbers<[1], [0], [0], [1], [0, 0, 1, 1], [], []>} : vector<8x8xf32>, vector<8x8xf32>, vector<8x8xf32> -> vector<8x8xf32>
    %83 = vector.extract_strided_slice %50 {offsets = [0, 16], sizes = [8, 8], strides = [1, 1]} : vector<8x32xf32> to vector<8x8xf32>
    %84 = vector.extract_strided_slice %51 {offsets = [0, 16], sizes = [8, 8], strides = [1, 1]} : vector<8x32xf32> to vector<8x8xf32>
    %cst_39 = arith.constant dense<0.000000e+00> : vector<8x8xf32>
    %85 = tpu.matmul %83, %84, %cst_39 {dimension_numbers = #tpu.dot_dimension_numbers<[1], [1], [0], [0], [0, 0, 1, 0], [], []>} : vector<8x8xf32>, vector<8x8xf32>, vector<8x8xf32> -> vector<8x8xf32>
    %86 = arith.addf %85, %16 : vector<8x8xf32>
    %cst_40 = arith.constant dense<0xFF800000> : vector<8xf32>
    %87 = vector.multi_reduction <maximumf>, %86, %cst_40 [1] : vector<8x8xf32> to vector<8xf32>
    %88 = vector.shape_cast %87 : vector<8xf32> to vector<8x1xf32>
    %89 = vector.broadcast %88 : vector<8x1xf32> to vector<8x8xf32>
    %90 = arith.subf %86, %89 : vector<8x8xf32>
    %91 = math.exp %90 : vector<8x8xf32>
    %cst_41 = arith.constant dense<0.000000e+00> : vector<8xf32>
    %92 = vector.multi_reduction <add>, %91, %cst_41 [1] : vector<8x8xf32> to vector<8xf32>
    %93 = vector.shape_cast %92 : vector<8xf32> to vector<8x1xf32>
    %94 = vector.broadcast %93 : vector<8x1xf32> to vector<8x8xf32>
    %95 = arith.divf %91, %94 : vector<8x8xf32>
    %96 = vector.extract_strided_slice %52 {offsets = [0, 16], sizes = [8, 8], strides = [1, 1]} : vector<8x32xf32> to vector<8x8xf32>
    %cst_42 = arith.constant dense<0.000000e+00> : vector<8x8xf32>
    %97 = tpu.matmul %95, %96, %cst_42 {dimension_numbers = #tpu.dot_dimension_numbers<[1], [0], [0], [1], [0, 0, 1, 1], [], []>} : vector<8x8xf32>, vector<8x8xf32>, vector<8x8xf32> -> vector<8x8xf32>
    %98 = vector.extract_strided_slice %50 {offsets = [0, 24], sizes = [8, 8], strides = [1, 1]} : vector<8x32xf32> to vector<8x8xf32>
    %99 = vector.extract_strided_slice %51 {offsets = [0, 24], sizes = [8, 8], strides = [1, 1]} : vector<8x32xf32> to vector<8x8xf32>
    %cst_43 = arith.constant dense<0.000000e+00> : vector<8x8xf32>
    %100 = tpu.matmul %98, %99, %cst_43 {dimension_numbers = #tpu.dot_dimension_numbers<[1], [1], [0], [0], [0, 0, 1, 0], [], []>} : vector<8x8xf32>, vector<8x8xf32>, vector<8x8xf32> -> vector<8x8xf32>
    %101 = arith.addf %100, %16 : vector<8x8xf32>
    %cst_44 = arith.constant dense<0xFF800000> : vector<8xf32>
    %102 = vector.multi_reduction <maximumf>, %101, %cst_44 [1] : vector<8x8xf32> to vector<8xf32>
    %103 = vector.shape_cast %102 : vector<8xf32> to vector<8x1xf32>
    %104 = vector.broadcast %103 : vector<8x1xf32> to vector<8x8xf32>
    %105 = arith.subf %101, %104 : vector<8x8xf32>
    %106 = math.exp %105 : vector<8x8xf32>
    %cst_45 = arith.constant dense<0.000000e+00> : vector<8xf32>
    %107 = vector.multi_reduction <add>, %106, %cst_45 [1] : vector<8x8xf32> to vector<8xf32>
    %108 = vector.shape_cast %107 : vector<8xf32> to vector<8x1xf32>
    %109 = vector.broadcast %108 : vector<8x1xf32> to vector<8x8xf32>
    %110 = arith.divf %106, %109 : vector<8x8xf32>
    %111 = vector.extract_strided_slice %52 {offsets = [0, 24], sizes = [8, 8], strides = [1, 1]} : vector<8x32xf32> to vector<8x8xf32>
    %cst_46 = arith.constant dense<0.000000e+00> : vector<8x8xf32>
    %112 = tpu.matmul %110, %111, %cst_46 {dimension_numbers = #tpu.dot_dimension_numbers<[1], [0], [0], [1], [0, 0, 1, 1], [], []>} : vector<8x8xf32>, vector<8x8xf32>, vector<8x8xf32> -> vector<8x8xf32>
    %113 = tpu.concatenate %67, %82, %97, %112 in 1 : vector<8x8xf32>, vector<8x8xf32>, vector<8x8xf32>, vector<8x8xf32> -> vector<8x32xf32>
    %114 = arith.addf %113, %40 : vector<8x32xf32>
    %c0_47 = arith.constant 0 : index
    %c0_48 = arith.constant 0 : index
    %c0_49 = arith.constant 0 : index
    %115 = vector.load %arg8[%c0_47, %c0_48, %c0_49] : memref<2x1x32xf32, #tpu.memory_space<vmem>>, vector<1x1x32xf32>
    %116 = vector.shape_cast %115 : vector<1x1x32xf32> to vector<1x32xf32>
    %c0_50 = arith.constant 0 : index
    %c0_51 = arith.constant 0 : index
    %c0_52 = arith.constant 0 : index
    %117 = vector.load %arg9[%c0_50, %c0_51, %c0_52] : memref<2x1x32xf32, #tpu.memory_space<vmem>>, vector<1x1x32xf32>
    %118 = vector.shape_cast %117 : vector<1x1x32xf32> to vector<1x32xf32>
    %cst_53 = arith.constant dense<0.000000e+00> : vector<8xf32>
    %119 = vector.multi_reduction <add>, %114, %cst_53 [1] : vector<8x32xf32> to vector<8xf32>
    %120 = vector.shape_cast %119 : vector<8xf32> to vector<8x1xf32>
    %cst_54 = arith.constant 3.200000e+01 : f32
    %121 = vector.broadcast %cst_54 : f32 to vector<8x1xf32>
    %122 = arith.divf %120, %121 : vector<8x1xf32>
    %123 = vector.broadcast %122 : vector<8x1xf32> to vector<8x32xf32>
    %124 = arith.subf %114, %123 : vector<8x32xf32>
    %125 = arith.mulf %124, %124 : vector<8x32xf32>
    %cst_55 = arith.constant dense<0.000000e+00> : vector<8xf32>
    %126 = vector.multi_reduction <add>, %125, %cst_55 [1] : vector<8x32xf32> to vector<8xf32>
    %127 = vector.shape_cast %126 : vector<8xf32> to vector<8x1xf32>
    %cst_56 = arith.constant 3.200000e+01 : f32
    %128 = vector.broadcast %cst_56 : f32 to vector<8x1xf32>
    %129 = arith.divf %127, %128 : vector<8x1xf32>
    %cst_57 = arith.constant 9.99999974E-6 : f32
    %130 = vector.broadcast %cst_57 : f32 to vector<8x1xf32>
    %131 = arith.addf %129, %130 : vector<8x1xf32>
    %132 = math.rsqrt %131 : vector<8x1xf32>
    %133 = vector.broadcast %132 : vector<8x1xf32> to vector<8x32xf32>
    %134 = arith.mulf %124, %133 : vector<8x32xf32>
    %135 = vector.broadcast %116 : vector<1x32xf32> to vector<8x32xf32>
    %136 = arith.mulf %134, %135 : vector<8x32xf32>
    %137 = vector.broadcast %118 : vector<1x32xf32> to vector<8x32xf32>
    %138 = arith.addf %136, %137 : vector<8x32xf32>
    %c0_58 = arith.constant 0 : index
    %c0_59 = arith.constant 0 : index
    %c0_60 = arith.constant 0 : index
    %139 = vector.load %arg10[%c0_58, %c0_59, %c0_60] : memref<2x32x32xf32, #tpu.memory_space<vmem>>, vector<1x32x32xf32>
    %140 = vector.shape_cast %139 : vector<1x32x32xf32> to vector<32x32xf32>
    %cst_61 = arith.constant dense<0.000000e+00> : vector<8x32xf32>
    %141 = tpu.matmul %138, %140, %cst_61 {dimension_numbers = #tpu.dot_dimension_numbers<[1], [0], [0], [1], [0, 0, 1, 1], [], []>} : vector<8x32xf32>, vector<32x32xf32>, vector<8x32xf32> -> vector<8x32xf32>
    %c0_62 = arith.constant 0 : index
    %c0_63 = arith.constant 0 : index
    %c0_64 = arith.constant 0 : index
    %142 = vector.load %arg11[%c0_62, %c0_63, %c0_64] : memref<2x1x32xf32, #tpu.memory_space<vmem>>, vector<1x1x32xf32>
    %143 = vector.shape_cast %142 : vector<1x1x32xf32> to vector<1x32xf32>
    %144 = vector.broadcast %143 : vector<1x32xf32> to vector<8x32xf32>
    %145 = arith.addf %141, %144 : vector<8x32xf32>
    %cst_65 = arith.constant 0.353553385 : f32
    %146 = vector.broadcast %cst_65 : f32 to vector<8x32xf32>
    %147 = arith.mulf %145, %146 : vector<8x32xf32>
    %c0_66 = arith.constant 0 : index
    %c0_67 = arith.constant 0 : index
    %c0_68 = arith.constant 0 : index
    %148 = vector.load %arg12[%c0_66, %c0_67, %c0_68] : memref<2x32x64xf32, #tpu.memory_space<vmem>>, vector<1x32x64xf32>
    %149 = vector.shape_cast %148 : vector<1x32x64xf32> to vector<32x64xf32>
    %cst_69 = arith.constant dense<0.000000e+00> : vector<16x64xf32>
    %150 = tpu.matmul %3, %149, %cst_69 {dimension_numbers = #tpu.dot_dimension_numbers<[1], [0], [0], [1], [0, 0, 1, 1], [], []>} : vector<16x32xf32>, vector<32x64xf32>, vector<16x64xf32> -> vector<16x64xf32>
    %c0_70 = arith.constant 0 : index
    %c0_71 = arith.constant 0 : index
    %c0_72 = arith.constant 0 : index
    %151 = vector.load %arg13[%c0_70, %c0_71, %c0_72] : memref<2x1x64xf32, #tpu.memory_space<vmem>>, vector<1x1x64xf32>
    %152 = vector.shape_cast %151 : vector<1x1x64xf32> to vector<1x64xf32>
    %153 = vector.broadcast %152 : vector<1x64xf32> to vector<16x64xf32>
    %154 = arith.addf %150, %153 : vector<16x64xf32>
    %155 = vector.extract_strided_slice %154 {offsets = [0, 0], sizes = [16, 32], strides = [1, 1]} : vector<16x64xf32> to vector<16x32xf32>
    %156 = vector.extract_strided_slice %154 {offsets = [0, 32], sizes = [16, 32], strides = [1, 1]} : vector<16x64xf32> to vector<16x32xf32>
    %157 = vector.extract_strided_slice %147 {offsets = [0, 0], sizes = [8, 8], strides = [1, 1]} : vector<8x32xf32> to vector<8x8xf32>
    %158 = vector.extract_strided_slice %155 {offsets = [0, 0], sizes = [16, 8], strides = [1, 1]} : vector<16x32xf32> to vector<16x8xf32>
    %cst_73 = arith.constant dense<0.000000e+00> : vector<8x16xf32>
    %159 = tpu.matmul %157, %158, %cst_73 {dimension_numbers = #tpu.dot_dimension_numbers<[1], [1], [0], [0], [0, 0, 1, 0], [], []>} : vector<8x8xf32>, vector<16x8xf32>, vector<8x16xf32> -> vector<8x16xf32>
    %160 = vector.broadcast %10 : vector<1x16xf32> to vector<8x16xf32>
    %161 = arith.addf %159, %160 : vector<8x16xf32>
    %cst_74 = arith.constant dense<0xFF800000> : vector<8xf32>
    %162 = vector.multi_reduction <maximumf>, %161, %cst_74 [1] : vector<8x16xf32> to vector<8xf32>
    %163 = vector.shape_cast %162 : vector<8xf32> to vector<8x1xf32>
    %164 = vector.broadcast %163 : vector<8x1xf32> to vector<8x16xf32>
    %165 = arith.subf %161, %164 : vector<8x16xf32>
    %166 = math.exp %165 : vector<8x16xf32>
    %cst_75 = arith.constant dense<0.000000e+00> : vector<8xf32>
    %167 = vector.multi_reduction <add>, %166, %cst_75 [1] : vector<8x16xf32> to vector<8xf32>
    %168 = vector.shape_cast %167 : vector<8xf32> to vector<8x1xf32>
    %169 = vector.broadcast %168 : vector<8x1xf32> to vector<8x16xf32>
    %170 = arith.divf %166, %169 : vector<8x16xf32>
    %171 = vector.extract_strided_slice %156 {offsets = [0, 0], sizes = [16, 8], strides = [1, 1]} : vector<16x32xf32> to vector<16x8xf32>
    %cst_76 = arith.constant dense<0.000000e+00> : vector<8x8xf32>
    %172 = tpu.matmul %170, %171, %cst_76 {dimension_numbers = #tpu.dot_dimension_numbers<[1], [0], [0], [1], [0, 0, 1, 1], [], []>} : vector<8x16xf32>, vector<16x8xf32>, vector<8x8xf32> -> vector<8x8xf32>
    %173 = vector.extract_strided_slice %147 {offsets = [0, 8], sizes = [8, 8], strides = [1, 1]} : vector<8x32xf32> to vector<8x8xf32>
    %174 = vector.extract_strided_slice %155 {offsets = [0, 8], sizes = [16, 8], strides = [1, 1]} : vector<16x32xf32> to vector<16x8xf32>
    %cst_77 = arith.constant dense<0.000000e+00> : vector<8x16xf32>
    %175 = tpu.matmul %173, %174, %cst_77 {dimension_numbers = #tpu.dot_dimension_numbers<[1], [1], [0], [0], [0, 0, 1, 0], [], []>} : vector<8x8xf32>, vector<16x8xf32>, vector<8x16xf32> -> vector<8x16xf32>
    %176 = vector.broadcast %10 : vector<1x16xf32> to vector<8x16xf32>
    %177 = arith.addf %175, %176 : vector<8x16xf32>
    %cst_78 = arith.constant dense<0xFF800000> : vector<8xf32>
    %178 = vector.multi_reduction <maximumf>, %177, %cst_78 [1] : vector<8x16xf32> to vector<8xf32>
    %179 = vector.shape_cast %178 : vector<8xf32> to vector<8x1xf32>
    %180 = vector.broadcast %179 : vector<8x1xf32> to vector<8x16xf32>
    %181 = arith.subf %177, %180 : vector<8x16xf32>
    %182 = math.exp %181 : vector<8x16xf32>
    %cst_79 = arith.constant dense<0.000000e+00> : vector<8xf32>
    %183 = vector.multi_reduction <add>, %182, %cst_79 [1] : vector<8x16xf32> to vector<8xf32>
    %184 = vector.shape_cast %183 : vector<8xf32> to vector<8x1xf32>
    %185 = vector.broadcast %184 : vector<8x1xf32> to vector<8x16xf32>
    %186 = arith.divf %182, %185 : vector<8x16xf32>
    %187 = vector.extract_strided_slice %156 {offsets = [0, 8], sizes = [16, 8], strides = [1, 1]} : vector<16x32xf32> to vector<16x8xf32>
    %cst_80 = arith.constant dense<0.000000e+00> : vector<8x8xf32>
    %188 = tpu.matmul %186, %187, %cst_80 {dimension_numbers = #tpu.dot_dimension_numbers<[1], [0], [0], [1], [0, 0, 1, 1], [], []>} : vector<8x16xf32>, vector<16x8xf32>, vector<8x8xf32> -> vector<8x8xf32>
    %189 = vector.extract_strided_slice %147 {offsets = [0, 16], sizes = [8, 8], strides = [1, 1]} : vector<8x32xf32> to vector<8x8xf32>
    %190 = vector.extract_strided_slice %155 {offsets = [0, 16], sizes = [16, 8], strides = [1, 1]} : vector<16x32xf32> to vector<16x8xf32>
    %cst_81 = arith.constant dense<0.000000e+00> : vector<8x16xf32>
    %191 = tpu.matmul %189, %190, %cst_81 {dimension_numbers = #tpu.dot_dimension_numbers<[1], [1], [0], [0], [0, 0, 1, 0], [], []>} : vector<8x8xf32>, vector<16x8xf32>, vector<8x16xf32> -> vector<8x16xf32>
    %192 = vector.broadcast %10 : vector<1x16xf32> to vector<8x16xf32>
    %193 = arith.addf %191, %192 : vector<8x16xf32>
    %cst_82 = arith.constant dense<0xFF800000> : vector<8xf32>
    %194 = vector.multi_reduction <maximumf>, %193, %cst_82 [1] : vector<8x16xf32> to vector<8xf32>
    %195 = vector.shape_cast %194 : vector<8xf32> to vector<8x1xf32>
    %196 = vector.broadcast %195 : vector<8x1xf32> to vector<8x16xf32>
    %197 = arith.subf %193, %196 : vector<8x16xf32>
    %198 = math.exp %197 : vector<8x16xf32>
    %cst_83 = arith.constant dense<0.000000e+00> : vector<8xf32>
    %199 = vector.multi_reduction <add>, %198, %cst_83 [1] : vector<8x16xf32> to vector<8xf32>
    %200 = vector.shape_cast %199 : vector<8xf32> to vector<8x1xf32>
    %201 = vector.broadcast %200 : vector<8x1xf32> to vector<8x16xf32>
    %202 = arith.divf %198, %201 : vector<8x16xf32>
    %203 = vector.extract_strided_slice %156 {offsets = [0, 16], sizes = [16, 8], strides = [1, 1]} : vector<16x32xf32> to vector<16x8xf32>
    %cst_84 = arith.constant dense<0.000000e+00> : vector<8x8xf32>
    %204 = tpu.matmul %202, %203, %cst_84 {dimension_numbers = #tpu.dot_dimension_numbers<[1], [0], [0], [1], [0, 0, 1, 1], [], []>} : vector<8x16xf32>, vector<16x8xf32>, vector<8x8xf32> -> vector<8x8xf32>
    %205 = vector.extract_strided_slice %147 {offsets = [0, 24], sizes = [8, 8], strides = [1, 1]} : vector<8x32xf32> to vector<8x8xf32>
    %206 = vector.extract_strided_slice %155 {offsets = [0, 24], sizes = [16, 8], strides = [1, 1]} : vector<16x32xf32> to vector<16x8xf32>
    %cst_85 = arith.constant dense<0.000000e+00> : vector<8x16xf32>
    %207 = tpu.matmul %205, %206, %cst_85 {dimension_numbers = #tpu.dot_dimension_numbers<[1], [1], [0], [0], [0, 0, 1, 0], [], []>} : vector<8x8xf32>, vector<16x8xf32>, vector<8x16xf32> -> vector<8x16xf32>
    %208 = vector.broadcast %10 : vector<1x16xf32> to vector<8x16xf32>
    %209 = arith.addf %207, %208 : vector<8x16xf32>
    %cst_86 = arith.constant dense<0xFF800000> : vector<8xf32>
    %210 = vector.multi_reduction <maximumf>, %209, %cst_86 [1] : vector<8x16xf32> to vector<8xf32>
    %211 = vector.shape_cast %210 : vector<8xf32> to vector<8x1xf32>
    %212 = vector.broadcast %211 : vector<8x1xf32> to vector<8x16xf32>
    %213 = arith.subf %209, %212 : vector<8x16xf32>
    %214 = math.exp %213 : vector<8x16xf32>
    %cst_87 = arith.constant dense<0.000000e+00> : vector<8xf32>
    %215 = vector.multi_reduction <add>, %214, %cst_87 [1] : vector<8x16xf32> to vector<8xf32>
    %216 = vector.shape_cast %215 : vector<8xf32> to vector<8x1xf32>
    %217 = vector.broadcast %216 : vector<8x1xf32> to vector<8x16xf32>
    %218 = arith.divf %214, %217 : vector<8x16xf32>
    %219 = vector.extract_strided_slice %156 {offsets = [0, 24], sizes = [16, 8], strides = [1, 1]} : vector<16x32xf32> to vector<16x8xf32>
    %cst_88 = arith.constant dense<0.000000e+00> : vector<8x8xf32>
    %220 = tpu.matmul %218, %219, %cst_88 {dimension_numbers = #tpu.dot_dimension_numbers<[1], [0], [0], [1], [0, 0, 1, 1], [], []>} : vector<8x16xf32>, vector<16x8xf32>, vector<8x8xf32> -> vector<8x8xf32>
    %221 = tpu.concatenate %172, %188, %204, %220 in 1 : vector<8x8xf32>, vector<8x8xf32>, vector<8x8xf32>, vector<8x8xf32> -> vector<8x32xf32>
    %222 = arith.addf %221, %138 : vector<8x32xf32>
    %c0_89 = arith.constant 0 : index
    %c0_90 = arith.constant 0 : index
    %c0_91 = arith.constant 0 : index
    %223 = vector.load %arg14[%c0_89, %c0_90, %c0_91] : memref<2x1x32xf32, #tpu.memory_space<vmem>>, vector<1x1x32xf32>
    %224 = vector.shape_cast %223 : vector<1x1x32xf32> to vector<1x32xf32>
    %c0_92 = arith.constant 0 : index
    %c0_93 = arith.constant 0 : index
    %c0_94 = arith.constant 0 : index
    %225 = vector.load %arg15[%c0_92, %c0_93, %c0_94] : memref<2x1x32xf32, #tpu.memory_space<vmem>>, vector<1x1x32xf32>
    %226 = vector.shape_cast %225 : vector<1x1x32xf32> to vector<1x32xf32>
    %cst_95 = arith.constant dense<0.000000e+00> : vector<8xf32>
    %227 = vector.multi_reduction <add>, %222, %cst_95 [1] : vector<8x32xf32> to vector<8xf32>
    %228 = vector.shape_cast %227 : vector<8xf32> to vector<8x1xf32>
    %cst_96 = arith.constant 3.200000e+01 : f32
    %229 = vector.broadcast %cst_96 : f32 to vector<8x1xf32>
    %230 = arith.divf %228, %229 : vector<8x1xf32>
    %231 = vector.broadcast %230 : vector<8x1xf32> to vector<8x32xf32>
    %232 = arith.subf %222, %231 : vector<8x32xf32>
    %233 = arith.mulf %232, %232 : vector<8x32xf32>
    %cst_97 = arith.constant dense<0.000000e+00> : vector<8xf32>
    %234 = vector.multi_reduction <add>, %233, %cst_97 [1] : vector<8x32xf32> to vector<8xf32>
    %235 = vector.shape_cast %234 : vector<8xf32> to vector<8x1xf32>
    %cst_98 = arith.constant 3.200000e+01 : f32
    %236 = vector.broadcast %cst_98 : f32 to vector<8x1xf32>
    %237 = arith.divf %235, %236 : vector<8x1xf32>
    %cst_99 = arith.constant 9.99999974E-6 : f32
    %238 = vector.broadcast %cst_99 : f32 to vector<8x1xf32>
    %239 = arith.addf %237, %238 : vector<8x1xf32>
    %240 = math.rsqrt %239 : vector<8x1xf32>
    %241 = vector.broadcast %240 : vector<8x1xf32> to vector<8x32xf32>
    %242 = arith.mulf %232, %241 : vector<8x32xf32>
    %243 = vector.broadcast %224 : vector<1x32xf32> to vector<8x32xf32>
    %244 = arith.mulf %242, %243 : vector<8x32xf32>
    %245 = vector.broadcast %226 : vector<1x32xf32> to vector<8x32xf32>
    %246 = arith.addf %244, %245 : vector<8x32xf32>
    %c0_100 = arith.constant 0 : index
    %c0_101 = arith.constant 0 : index
    %c0_102 = arith.constant 0 : index
    %247 = vector.load %arg16[%c0_100, %c0_101, %c0_102] : memref<2x32x64xf32, #tpu.memory_space<vmem>>, vector<1x32x64xf32>
    %248 = vector.shape_cast %247 : vector<1x32x64xf32> to vector<32x64xf32>
    %cst_103 = arith.constant dense<0.000000e+00> : vector<8x64xf32>
    %249 = tpu.matmul %246, %248, %cst_103 {dimension_numbers = #tpu.dot_dimension_numbers<[1], [0], [0], [1], [0, 0, 1, 1], [], []>} : vector<8x32xf32>, vector<32x64xf32>, vector<8x64xf32> -> vector<8x64xf32>
    %c0_104 = arith.constant 0 : index
    %c0_105 = arith.constant 0 : index
    %c0_106 = arith.constant 0 : index
    %250 = vector.load %arg17[%c0_104, %c0_105, %c0_106] : memref<2x1x64xf32, #tpu.memory_space<vmem>>, vector<1x1x64xf32>
    %251 = vector.shape_cast %250 : vector<1x1x64xf32> to vector<1x64xf32>
    %252 = vector.broadcast %251 : vector<1x64xf32> to vector<8x64xf32>
    %253 = arith.addf %249, %252 : vector<8x64xf32>
    %c0_107 = arith.constant 0 : index
    %c0_108 = arith.constant 0 : index
    %c0_109 = arith.constant 0 : index
    %254 = vector.load %arg18[%c0_107, %c0_108, %c0_109] : memref<2x64x32xf32, #tpu.memory_space<vmem>>, vector<1x64x32xf32>
    %255 = vector.shape_cast %254 : vector<1x64x32xf32> to vector<64x32xf32>
    %cst_110 = arith.constant dense<0.000000e+00> : vector<8x32xf32>
    %256 = tpu.matmul %253, %255, %cst_110 {dimension_numbers = #tpu.dot_dimension_numbers<[1], [0], [0], [1], [0, 0, 1, 1], [], []>} : vector<8x64xf32>, vector<64x32xf32>, vector<8x32xf32> -> vector<8x32xf32>
    %c0_111 = arith.constant 0 : index
    %c0_112 = arith.constant 0 : index
    %c0_113 = arith.constant 0 : index
    %257 = vector.load %arg19[%c0_111, %c0_112, %c0_113] : memref<2x1x32xf32, #tpu.memory_space<vmem>>, vector<1x1x32xf32>
    %258 = vector.shape_cast %257 : vector<1x1x32xf32> to vector<1x32xf32>
    %259 = vector.broadcast %258 : vector<1x32xf32> to vector<8x32xf32>
    %260 = arith.addf %256, %259 : vector<8x32xf32>
    %cst_114 = arith.constant 5.000000e-01 : f32
    %261 = vector.broadcast %cst_114 : f32 to vector<8x32xf32>
    %262 = arith.mulf %261, %260 : vector<8x32xf32>
    %cst_115 = arith.constant 0.707106769 : f32
    %263 = vector.broadcast %cst_115 : f32 to vector<8x32xf32>
    %264 = arith.mulf %260, %263 : vector<8x32xf32>
    %cst_116 = arith.constant 0.000000e+00 : f32
    %265 = vector.broadcast %cst_116 : f32 to vector<8x32xf32>
    %266 = arith.cmpf oge, %264, %265 : vector<8x32xf32>
    %cst_117 = arith.constant 1.000000e+00 : f32
    %cst_118 = arith.constant -1.000000e+00 : f32
    %267 = vector.broadcast %cst_117 : f32 to vector<8x32xf32>
    %268 = vector.broadcast %cst_118 : f32 to vector<8x32xf32>
    %269 = arith.select %266, %267, %268 : vector<8x32xi1>, vector<8x32xf32>
    %270 = math.absf %264 : vector<8x32xf32>
    %cst_119 = arith.constant 0.327591091 : f32
    %271 = vector.broadcast %cst_119 : f32 to vector<8x32xf32>
    %272 = arith.mulf %271, %270 : vector<8x32xf32>
    %cst_120 = arith.constant 1.000000e+00 : f32
    %273 = vector.broadcast %cst_120 : f32 to vector<8x32xf32>
    %274 = arith.addf %273, %272 : vector<8x32xf32>
    %cst_121 = arith.constant 1.000000e+00 : f32
    %275 = vector.broadcast %cst_121 : f32 to vector<8x32xf32>
    %276 = arith.divf %275, %274 : vector<8x32xf32>
    %cst_122 = arith.constant 1.06140542 : f32
    %277 = vector.broadcast %cst_122 : f32 to vector<8x32xf32>
    %278 = arith.mulf %277, %276 : vector<8x32xf32>
    %cst_123 = arith.constant -1.45315206 : f32
    %279 = vector.broadcast %cst_123 : f32 to vector<8x32xf32>
    %280 = arith.addf %278, %279 : vector<8x32xf32>
    %281 = arith.mulf %280, %276 : vector<8x32xf32>
    %cst_124 = arith.constant 1.42141378 : f32
    %282 = vector.broadcast %cst_124 : f32 to vector<8x32xf32>
    %283 = arith.addf %281, %282 : vector<8x32xf32>
    %284 = arith.mulf %283, %276 : vector<8x32xf32>
    %cst_125 = arith.constant -0.284496725 : f32
    %285 = vector.broadcast %cst_125 : f32 to vector<8x32xf32>
    %286 = arith.addf %284, %285 : vector<8x32xf32>
    %287 = arith.mulf %286, %276 : vector<8x32xf32>
    %cst_126 = arith.constant 0.254829586 : f32
    %288 = vector.broadcast %cst_126 : f32 to vector<8x32xf32>
    %289 = arith.addf %287, %288 : vector<8x32xf32>
    %290 = arith.mulf %289, %276 : vector<8x32xf32>
    %cst_127 = arith.constant 0.000000e+00 : f32
    %291 = vector.broadcast %cst_127 : f32 to vector<8x32xf32>
    %292 = arith.subf %291, %270 : vector<8x32xf32>
    %293 = arith.mulf %292, %270 : vector<8x32xf32>
    %294 = math.exp %293 : vector<8x32xf32>
    %295 = arith.mulf %290, %294 : vector<8x32xf32>
    %cst_128 = arith.constant 1.000000e+00 : f32
    %296 = vector.broadcast %cst_128 : f32 to vector<8x32xf32>
    %297 = arith.subf %296, %295 : vector<8x32xf32>
    %298 = arith.mulf %269, %297 : vector<8x32xf32>
    %cst_129 = arith.constant 1.000000e+00 : f32
    %299 = vector.broadcast %cst_129 : f32 to vector<8x32xf32>
    %300 = arith.addf %299, %298 : vector<8x32xf32>
    %301 = arith.mulf %262, %300 : vector<8x32xf32>
    %302 = arith.addf %301, %246 : vector<8x32xf32>
    %c1 = arith.constant 1 : index
    %c0_130 = arith.constant 0 : index
    %c0_131 = arith.constant 0 : index
    %303 = vector.load %arg4[%c1, %c0_130, %c0_131] : memref<2x1x32xf32, #tpu.memory_space<vmem>>, vector<1x1x32xf32>
    %304 = vector.shape_cast %303 : vector<1x1x32xf32> to vector<1x32xf32>
    %c1_132 = arith.constant 1 : index
    %c0_133 = arith.constant 0 : index
    %c0_134 = arith.constant 0 : index
    %305 = vector.load %arg5[%c1_132, %c0_133, %c0_134] : memref<2x1x32xf32, #tpu.memory_space<vmem>>, vector<1x1x32xf32>
    %306 = vector.shape_cast %305 : vector<1x1x32xf32> to vector<1x32xf32>
    %cst_135 = arith.constant dense<0.000000e+00> : vector<8xf32>
    %307 = vector.multi_reduction <add>, %302, %cst_135 [1] : vector<8x32xf32> to vector<8xf32>
    %308 = vector.shape_cast %307 : vector<8xf32> to vector<8x1xf32>
    %cst_136 = arith.constant 3.200000e+01 : f32
    %309 = vector.broadcast %cst_136 : f32 to vector<8x1xf32>
    %310 = arith.divf %308, %309 : vector<8x1xf32>
    %311 = vector.broadcast %310 : vector<8x1xf32> to vector<8x32xf32>
    %312 = arith.subf %302, %311 : vector<8x32xf32>
    %313 = arith.mulf %312, %312 : vector<8x32xf32>
    %cst_137 = arith.constant dense<0.000000e+00> : vector<8xf32>
    %314 = vector.multi_reduction <add>, %313, %cst_137 [1] : vector<8x32xf32> to vector<8xf32>
    %315 = vector.shape_cast %314 : vector<8xf32> to vector<8x1xf32>
    %cst_138 = arith.constant 3.200000e+01 : f32
    %316 = vector.broadcast %cst_138 : f32 to vector<8x1xf32>
    %317 = arith.divf %315, %316 : vector<8x1xf32>
    %cst_139 = arith.constant 9.99999974E-6 : f32
    %318 = vector.broadcast %cst_139 : f32 to vector<8x1xf32>
    %319 = arith.addf %317, %318 : vector<8x1xf32>
    %320 = math.rsqrt %319 : vector<8x1xf32>
    %321 = vector.broadcast %320 : vector<8x1xf32> to vector<8x32xf32>
    %322 = arith.mulf %312, %321 : vector<8x32xf32>
    %323 = vector.broadcast %304 : vector<1x32xf32> to vector<8x32xf32>
    %324 = arith.mulf %322, %323 : vector<8x32xf32>
    %325 = vector.broadcast %306 : vector<1x32xf32> to vector<8x32xf32>
    %326 = arith.addf %324, %325 : vector<8x32xf32>
    %c1_140 = arith.constant 1 : index
    %c0_141 = arith.constant 0 : index
    %c0_142 = arith.constant 0 : index
    %327 = vector.load %arg6[%c1_140, %c0_141, %c0_142] : memref<2x32x96xf32, #tpu.memory_space<vmem>>, vector<1x32x96xf32>
    %328 = vector.shape_cast %327 : vector<1x32x96xf32> to vector<32x96xf32>
    %cst_143 = arith.constant dense<0.000000e+00> : vector<8x96xf32>
    %329 = tpu.matmul %326, %328, %cst_143 {dimension_numbers = #tpu.dot_dimension_numbers<[1], [0], [0], [1], [0, 0, 1, 1], [], []>} : vector<8x32xf32>, vector<32x96xf32>, vector<8x96xf32> -> vector<8x96xf32>
    %c1_144 = arith.constant 1 : index
    %c0_145 = arith.constant 0 : index
    %c0_146 = arith.constant 0 : index
    %330 = vector.load %arg7[%c1_144, %c0_145, %c0_146] : memref<2x1x96xf32, #tpu.memory_space<vmem>>, vector<1x1x96xf32>
    %331 = vector.shape_cast %330 : vector<1x1x96xf32> to vector<1x96xf32>
    %332 = vector.broadcast %331 : vector<1x96xf32> to vector<8x96xf32>
    %333 = arith.addf %329, %332 : vector<8x96xf32>
    %334 = vector.extract_strided_slice %333 {offsets = [0, 0], sizes = [8, 32], strides = [1, 1]} : vector<8x96xf32> to vector<8x32xf32>
    %cst_147 = arith.constant 0.353553385 : f32
    %335 = vector.broadcast %cst_147 : f32 to vector<8x32xf32>
    %336 = arith.mulf %334, %335 : vector<8x32xf32>
    %337 = vector.extract_strided_slice %333 {offsets = [0, 32], sizes = [8, 32], strides = [1, 1]} : vector<8x96xf32> to vector<8x32xf32>
    %338 = vector.extract_strided_slice %333 {offsets = [0, 64], sizes = [8, 32], strides = [1, 1]} : vector<8x96xf32> to vector<8x32xf32>
    %339 = vector.extract_strided_slice %336 {offsets = [0, 0], sizes = [8, 8], strides = [1, 1]} : vector<8x32xf32> to vector<8x8xf32>
    %340 = vector.extract_strided_slice %337 {offsets = [0, 0], sizes = [8, 8], strides = [1, 1]} : vector<8x32xf32> to vector<8x8xf32>
    %cst_148 = arith.constant dense<0.000000e+00> : vector<8x8xf32>
    %341 = tpu.matmul %339, %340, %cst_148 {dimension_numbers = #tpu.dot_dimension_numbers<[1], [1], [0], [0], [0, 0, 1, 0], [], []>} : vector<8x8xf32>, vector<8x8xf32>, vector<8x8xf32> -> vector<8x8xf32>
    %342 = arith.addf %341, %16 : vector<8x8xf32>
    %cst_149 = arith.constant dense<0xFF800000> : vector<8xf32>
    %343 = vector.multi_reduction <maximumf>, %342, %cst_149 [1] : vector<8x8xf32> to vector<8xf32>
    %344 = vector.shape_cast %343 : vector<8xf32> to vector<8x1xf32>
    %345 = vector.broadcast %344 : vector<8x1xf32> to vector<8x8xf32>
    %346 = arith.subf %342, %345 : vector<8x8xf32>
    %347 = math.exp %346 : vector<8x8xf32>
    %cst_150 = arith.constant dense<0.000000e+00> : vector<8xf32>
    %348 = vector.multi_reduction <add>, %347, %cst_150 [1] : vector<8x8xf32> to vector<8xf32>
    %349 = vector.shape_cast %348 : vector<8xf32> to vector<8x1xf32>
    %350 = vector.broadcast %349 : vector<8x1xf32> to vector<8x8xf32>
    %351 = arith.divf %347, %350 : vector<8x8xf32>
    %352 = vector.extract_strided_slice %338 {offsets = [0, 0], sizes = [8, 8], strides = [1, 1]} : vector<8x32xf32> to vector<8x8xf32>
    %cst_151 = arith.constant dense<0.000000e+00> : vector<8x8xf32>
    %353 = tpu.matmul %351, %352, %cst_151 {dimension_numbers = #tpu.dot_dimension_numbers<[1], [0], [0], [1], [0, 0, 1, 1], [], []>} : vector<8x8xf32>, vector<8x8xf32>, vector<8x8xf32> -> vector<8x8xf32>
    %354 = vector.extract_strided_slice %336 {offsets = [0, 8], sizes = [8, 8], strides = [1, 1]} : vector<8x32xf32> to vector<8x8xf32>
    %355 = vector.extract_strided_slice %337 {offsets = [0, 8], sizes = [8, 8], strides = [1, 1]} : vector<8x32xf32> to vector<8x8xf32>
    %cst_152 = arith.constant dense<0.000000e+00> : vector<8x8xf32>
    %356 = tpu.matmul %354, %355, %cst_152 {dimension_numbers = #tpu.dot_dimension_numbers<[1], [1], [0], [0], [0, 0, 1, 0], [], []>} : vector<8x8xf32>, vector<8x8xf32>, vector<8x8xf32> -> vector<8x8xf32>
    %357 = arith.addf %356, %16 : vector<8x8xf32>
    %cst_153 = arith.constant dense<0xFF800000> : vector<8xf32>
    %358 = vector.multi_reduction <maximumf>, %357, %cst_153 [1] : vector<8x8xf32> to vector<8xf32>
    %359 = vector.shape_cast %358 : vector<8xf32> to vector<8x1xf32>
    %360 = vector.broadcast %359 : vector<8x1xf32> to vector<8x8xf32>
    %361 = arith.subf %357, %360 : vector<8x8xf32>
    %362 = math.exp %361 : vector<8x8xf32>
    %cst_154 = arith.constant dense<0.000000e+00> : vector<8xf32>
    %363 = vector.multi_reduction <add>, %362, %cst_154 [1] : vector<8x8xf32> to vector<8xf32>
    %364 = vector.shape_cast %363 : vector<8xf32> to vector<8x1xf32>
    %365 = vector.broadcast %364 : vector<8x1xf32> to vector<8x8xf32>
    %366 = arith.divf %362, %365 : vector<8x8xf32>
    %367 = vector.extract_strided_slice %338 {offsets = [0, 8], sizes = [8, 8], strides = [1, 1]} : vector<8x32xf32> to vector<8x8xf32>
    %cst_155 = arith.constant dense<0.000000e+00> : vector<8x8xf32>
    %368 = tpu.matmul %366, %367, %cst_155 {dimension_numbers = #tpu.dot_dimension_numbers<[1], [0], [0], [1], [0, 0, 1, 1], [], []>} : vector<8x8xf32>, vector<8x8xf32>, vector<8x8xf32> -> vector<8x8xf32>
    %369 = vector.extract_strided_slice %336 {offsets = [0, 16], sizes = [8, 8], strides = [1, 1]} : vector<8x32xf32> to vector<8x8xf32>
    %370 = vector.extract_strided_slice %337 {offsets = [0, 16], sizes = [8, 8], strides = [1, 1]} : vector<8x32xf32> to vector<8x8xf32>
    %cst_156 = arith.constant dense<0.000000e+00> : vector<8x8xf32>
    %371 = tpu.matmul %369, %370, %cst_156 {dimension_numbers = #tpu.dot_dimension_numbers<[1], [1], [0], [0], [0, 0, 1, 0], [], []>} : vector<8x8xf32>, vector<8x8xf32>, vector<8x8xf32> -> vector<8x8xf32>
    %372 = arith.addf %371, %16 : vector<8x8xf32>
    %cst_157 = arith.constant dense<0xFF800000> : vector<8xf32>
    %373 = vector.multi_reduction <maximumf>, %372, %cst_157 [1] : vector<8x8xf32> to vector<8xf32>
    %374 = vector.shape_cast %373 : vector<8xf32> to vector<8x1xf32>
    %375 = vector.broadcast %374 : vector<8x1xf32> to vector<8x8xf32>
    %376 = arith.subf %372, %375 : vector<8x8xf32>
    %377 = math.exp %376 : vector<8x8xf32>
    %cst_158 = arith.constant dense<0.000000e+00> : vector<8xf32>
    %378 = vector.multi_reduction <add>, %377, %cst_158 [1] : vector<8x8xf32> to vector<8xf32>
    %379 = vector.shape_cast %378 : vector<8xf32> to vector<8x1xf32>
    %380 = vector.broadcast %379 : vector<8x1xf32> to vector<8x8xf32>
    %381 = arith.divf %377, %380 : vector<8x8xf32>
    %382 = vector.extract_strided_slice %338 {offsets = [0, 16], sizes = [8, 8], strides = [1, 1]} : vector<8x32xf32> to vector<8x8xf32>
    %cst_159 = arith.constant dense<0.000000e+00> : vector<8x8xf32>
    %383 = tpu.matmul %381, %382, %cst_159 {dimension_numbers = #tpu.dot_dimension_numbers<[1], [0], [0], [1], [0, 0, 1, 1], [], []>} : vector<8x8xf32>, vector<8x8xf32>, vector<8x8xf32> -> vector<8x8xf32>
    %384 = vector.extract_strided_slice %336 {offsets = [0, 24], sizes = [8, 8], strides = [1, 1]} : vector<8x32xf32> to vector<8x8xf32>
    %385 = vector.extract_strided_slice %337 {offsets = [0, 24], sizes = [8, 8], strides = [1, 1]} : vector<8x32xf32> to vector<8x8xf32>
    %cst_160 = arith.constant dense<0.000000e+00> : vector<8x8xf32>
    %386 = tpu.matmul %384, %385, %cst_160 {dimension_numbers = #tpu.dot_dimension_numbers<[1], [1], [0], [0], [0, 0, 1, 0], [], []>} : vector<8x8xf32>, vector<8x8xf32>, vector<8x8xf32> -> vector<8x8xf32>
    %387 = arith.addf %386, %16 : vector<8x8xf32>
    %cst_161 = arith.constant dense<0xFF800000> : vector<8xf32>
    %388 = vector.multi_reduction <maximumf>, %387, %cst_161 [1] : vector<8x8xf32> to vector<8xf32>
    %389 = vector.shape_cast %388 : vector<8xf32> to vector<8x1xf32>
    %390 = vector.broadcast %389 : vector<8x1xf32> to vector<8x8xf32>
    %391 = arith.subf %387, %390 : vector<8x8xf32>
    %392 = math.exp %391 : vector<8x8xf32>
    %cst_162 = arith.constant dense<0.000000e+00> : vector<8xf32>
    %393 = vector.multi_reduction <add>, %392, %cst_162 [1] : vector<8x8xf32> to vector<8xf32>
    %394 = vector.shape_cast %393 : vector<8xf32> to vector<8x1xf32>
    %395 = vector.broadcast %394 : vector<8x1xf32> to vector<8x8xf32>
    %396 = arith.divf %392, %395 : vector<8x8xf32>
    %397 = vector.extract_strided_slice %338 {offsets = [0, 24], sizes = [8, 8], strides = [1, 1]} : vector<8x32xf32> to vector<8x8xf32>
    %cst_163 = arith.constant dense<0.000000e+00> : vector<8x8xf32>
    %398 = tpu.matmul %396, %397, %cst_163 {dimension_numbers = #tpu.dot_dimension_numbers<[1], [0], [0], [1], [0, 0, 1, 1], [], []>} : vector<8x8xf32>, vector<8x8xf32>, vector<8x8xf32> -> vector<8x8xf32>
    %399 = tpu.concatenate %353, %368, %383, %398 in 1 : vector<8x8xf32>, vector<8x8xf32>, vector<8x8xf32>, vector<8x8xf32> -> vector<8x32xf32>
    %400 = arith.addf %399, %326 : vector<8x32xf32>
    %c1_164 = arith.constant 1 : index
    %c0_165 = arith.constant 0 : index
    %c0_166 = arith.constant 0 : index
    %401 = vector.load %arg8[%c1_164, %c0_165, %c0_166] : memref<2x1x32xf32, #tpu.memory_space<vmem>>, vector<1x1x32xf32>
    %402 = vector.shape_cast %401 : vector<1x1x32xf32> to vector<1x32xf32>
    %c1_167 = arith.constant 1 : index
    %c0_168 = arith.constant 0 : index
    %c0_169 = arith.constant 0 : index
    %403 = vector.load %arg9[%c1_167, %c0_168, %c0_169] : memref<2x1x32xf32, #tpu.memory_space<vmem>>, vector<1x1x32xf32>
    %404 = vector.shape_cast %403 : vector<1x1x32xf32> to vector<1x32xf32>
    %cst_170 = arith.constant dense<0.000000e+00> : vector<8xf32>
    %405 = vector.multi_reduction <add>, %400, %cst_170 [1] : vector<8x32xf32> to vector<8xf32>
    %406 = vector.shape_cast %405 : vector<8xf32> to vector<8x1xf32>
    %cst_171 = arith.constant 3.200000e+01 : f32
    %407 = vector.broadcast %cst_171 : f32 to vector<8x1xf32>
    %408 = arith.divf %406, %407 : vector<8x1xf32>
    %409 = vector.broadcast %408 : vector<8x1xf32> to vector<8x32xf32>
    %410 = arith.subf %400, %409 : vector<8x32xf32>
    %411 = arith.mulf %410, %410 : vector<8x32xf32>
    %cst_172 = arith.constant dense<0.000000e+00> : vector<8xf32>
    %412 = vector.multi_reduction <add>, %411, %cst_172 [1] : vector<8x32xf32> to vector<8xf32>
    %413 = vector.shape_cast %412 : vector<8xf32> to vector<8x1xf32>
    %cst_173 = arith.constant 3.200000e+01 : f32
    %414 = vector.broadcast %cst_173 : f32 to vector<8x1xf32>
    %415 = arith.divf %413, %414 : vector<8x1xf32>
    %cst_174 = arith.constant 9.99999974E-6 : f32
    %416 = vector.broadcast %cst_174 : f32 to vector<8x1xf32>
    %417 = arith.addf %415, %416 : vector<8x1xf32>
    %418 = math.rsqrt %417 : vector<8x1xf32>
    %419 = vector.broadcast %418 : vector<8x1xf32> to vector<8x32xf32>
    %420 = arith.mulf %410, %419 : vector<8x32xf32>
    %421 = vector.broadcast %402 : vector<1x32xf32> to vector<8x32xf32>
    %422 = arith.mulf %420, %421 : vector<8x32xf32>
    %423 = vector.broadcast %404 : vector<1x32xf32> to vector<8x32xf32>
    %424 = arith.addf %422, %423 : vector<8x32xf32>
    %c1_175 = arith.constant 1 : index
    %c0_176 = arith.constant 0 : index
    %c0_177 = arith.constant 0 : index
    %425 = vector.load %arg10[%c1_175, %c0_176, %c0_177] : memref<2x32x32xf32, #tpu.memory_space<vmem>>, vector<1x32x32xf32>
    %426 = vector.shape_cast %425 : vector<1x32x32xf32> to vector<32x32xf32>
    %cst_178 = arith.constant dense<0.000000e+00> : vector<8x32xf32>
    %427 = tpu.matmul %424, %426, %cst_178 {dimension_numbers = #tpu.dot_dimension_numbers<[1], [0], [0], [1], [0, 0, 1, 1], [], []>} : vector<8x32xf32>, vector<32x32xf32>, vector<8x32xf32> -> vector<8x32xf32>
    %c1_179 = arith.constant 1 : index
    %c0_180 = arith.constant 0 : index
    %c0_181 = arith.constant 0 : index
    %428 = vector.load %arg11[%c1_179, %c0_180, %c0_181] : memref<2x1x32xf32, #tpu.memory_space<vmem>>, vector<1x1x32xf32>
    %429 = vector.shape_cast %428 : vector<1x1x32xf32> to vector<1x32xf32>
    %430 = vector.broadcast %429 : vector<1x32xf32> to vector<8x32xf32>
    %431 = arith.addf %427, %430 : vector<8x32xf32>
    %cst_182 = arith.constant 0.353553385 : f32
    %432 = vector.broadcast %cst_182 : f32 to vector<8x32xf32>
    %433 = arith.mulf %431, %432 : vector<8x32xf32>
    %c1_183 = arith.constant 1 : index
    %c0_184 = arith.constant 0 : index
    %c0_185 = arith.constant 0 : index
    %434 = vector.load %arg12[%c1_183, %c0_184, %c0_185] : memref<2x32x64xf32, #tpu.memory_space<vmem>>, vector<1x32x64xf32>
    %435 = vector.shape_cast %434 : vector<1x32x64xf32> to vector<32x64xf32>
    %cst_186 = arith.constant dense<0.000000e+00> : vector<16x64xf32>
    %436 = tpu.matmul %3, %435, %cst_186 {dimension_numbers = #tpu.dot_dimension_numbers<[1], [0], [0], [1], [0, 0, 1, 1], [], []>} : vector<16x32xf32>, vector<32x64xf32>, vector<16x64xf32> -> vector<16x64xf32>
    %c1_187 = arith.constant 1 : index
    %c0_188 = arith.constant 0 : index
    %c0_189 = arith.constant 0 : index
    %437 = vector.load %arg13[%c1_187, %c0_188, %c0_189] : memref<2x1x64xf32, #tpu.memory_space<vmem>>, vector<1x1x64xf32>
    %438 = vector.shape_cast %437 : vector<1x1x64xf32> to vector<1x64xf32>
    %439 = vector.broadcast %438 : vector<1x64xf32> to vector<16x64xf32>
    %440 = arith.addf %436, %439 : vector<16x64xf32>
    %441 = vector.extract_strided_slice %440 {offsets = [0, 0], sizes = [16, 32], strides = [1, 1]} : vector<16x64xf32> to vector<16x32xf32>
    %442 = vector.extract_strided_slice %440 {offsets = [0, 32], sizes = [16, 32], strides = [1, 1]} : vector<16x64xf32> to vector<16x32xf32>
    %443 = vector.extract_strided_slice %433 {offsets = [0, 0], sizes = [8, 8], strides = [1, 1]} : vector<8x32xf32> to vector<8x8xf32>
    %444 = vector.extract_strided_slice %441 {offsets = [0, 0], sizes = [16, 8], strides = [1, 1]} : vector<16x32xf32> to vector<16x8xf32>
    %cst_190 = arith.constant dense<0.000000e+00> : vector<8x16xf32>
    %445 = tpu.matmul %443, %444, %cst_190 {dimension_numbers = #tpu.dot_dimension_numbers<[1], [1], [0], [0], [0, 0, 1, 0], [], []>} : vector<8x8xf32>, vector<16x8xf32>, vector<8x16xf32> -> vector<8x16xf32>
    %446 = vector.broadcast %10 : vector<1x16xf32> to vector<8x16xf32>
    %447 = arith.addf %445, %446 : vector<8x16xf32>
    %cst_191 = arith.constant dense<0xFF800000> : vector<8xf32>
    %448 = vector.multi_reduction <maximumf>, %447, %cst_191 [1] : vector<8x16xf32> to vector<8xf32>
    %449 = vector.shape_cast %448 : vector<8xf32> to vector<8x1xf32>
    %450 = vector.broadcast %449 : vector<8x1xf32> to vector<8x16xf32>
    %451 = arith.subf %447, %450 : vector<8x16xf32>
    %452 = math.exp %451 : vector<8x16xf32>
    %cst_192 = arith.constant dense<0.000000e+00> : vector<8xf32>
    %453 = vector.multi_reduction <add>, %452, %cst_192 [1] : vector<8x16xf32> to vector<8xf32>
    %454 = vector.shape_cast %453 : vector<8xf32> to vector<8x1xf32>
    %455 = vector.broadcast %454 : vector<8x1xf32> to vector<8x16xf32>
    %456 = arith.divf %452, %455 : vector<8x16xf32>
    %457 = vector.extract_strided_slice %442 {offsets = [0, 0], sizes = [16, 8], strides = [1, 1]} : vector<16x32xf32> to vector<16x8xf32>
    %cst_193 = arith.constant dense<0.000000e+00> : vector<8x8xf32>
    %458 = tpu.matmul %456, %457, %cst_193 {dimension_numbers = #tpu.dot_dimension_numbers<[1], [0], [0], [1], [0, 0, 1, 1], [], []>} : vector<8x16xf32>, vector<16x8xf32>, vector<8x8xf32> -> vector<8x8xf32>
    %459 = vector.extract_strided_slice %433 {offsets = [0, 8], sizes = [8, 8], strides = [1, 1]} : vector<8x32xf32> to vector<8x8xf32>
    %460 = vector.extract_strided_slice %441 {offsets = [0, 8], sizes = [16, 8], strides = [1, 1]} : vector<16x32xf32> to vector<16x8xf32>
    %cst_194 = arith.constant dense<0.000000e+00> : vector<8x16xf32>
    %461 = tpu.matmul %459, %460, %cst_194 {dimension_numbers = #tpu.dot_dimension_numbers<[1], [1], [0], [0], [0, 0, 1, 0], [], []>} : vector<8x8xf32>, vector<16x8xf32>, vector<8x16xf32> -> vector<8x16xf32>
    %462 = vector.broadcast %10 : vector<1x16xf32> to vector<8x16xf32>
    %463 = arith.addf %461, %462 : vector<8x16xf32>
    %cst_195 = arith.constant dense<0xFF800000> : vector<8xf32>
    %464 = vector.multi_reduction <maximumf>, %463, %cst_195 [1] : vector<8x16xf32> to vector<8xf32>
    %465 = vector.shape_cast %464 : vector<8xf32> to vector<8x1xf32>
    %466 = vector.broadcast %465 : vector<8x1xf32> to vector<8x16xf32>
    %467 = arith.subf %463, %466 : vector<8x16xf32>
    %468 = math.exp %467 : vector<8x16xf32>
    %cst_196 = arith.constant dense<0.000000e+00> : vector<8xf32>
    %469 = vector.multi_reduction <add>, %468, %cst_196 [1] : vector<8x16xf32> to vector<8xf32>
    %470 = vector.shape_cast %469 : vector<8xf32> to vector<8x1xf32>
    %471 = vector.broadcast %470 : vector<8x1xf32> to vector<8x16xf32>
    %472 = arith.divf %468, %471 : vector<8x16xf32>
    %473 = vector.extract_strided_slice %442 {offsets = [0, 8], sizes = [16, 8], strides = [1, 1]} : vector<16x32xf32> to vector<16x8xf32>
    %cst_197 = arith.constant dense<0.000000e+00> : vector<8x8xf32>
    %474 = tpu.matmul %472, %473, %cst_197 {dimension_numbers = #tpu.dot_dimension_numbers<[1], [0], [0], [1], [0, 0, 1, 1], [], []>} : vector<8x16xf32>, vector<16x8xf32>, vector<8x8xf32> -> vector<8x8xf32>
    %475 = vector.extract_strided_slice %433 {offsets = [0, 16], sizes = [8, 8], strides = [1, 1]} : vector<8x32xf32> to vector<8x8xf32>
    %476 = vector.extract_strided_slice %441 {offsets = [0, 16], sizes = [16, 8], strides = [1, 1]} : vector<16x32xf32> to vector<16x8xf32>
    %cst_198 = arith.constant dense<0.000000e+00> : vector<8x16xf32>
    %477 = tpu.matmul %475, %476, %cst_198 {dimension_numbers = #tpu.dot_dimension_numbers<[1], [1], [0], [0], [0, 0, 1, 0], [], []>} : vector<8x8xf32>, vector<16x8xf32>, vector<8x16xf32> -> vector<8x16xf32>
    %478 = vector.broadcast %10 : vector<1x16xf32> to vector<8x16xf32>
    %479 = arith.addf %477, %478 : vector<8x16xf32>
    %cst_199 = arith.constant dense<0xFF800000> : vector<8xf32>
    %480 = vector.multi_reduction <maximumf>, %479, %cst_199 [1] : vector<8x16xf32> to vector<8xf32>
    %481 = vector.shape_cast %480 : vector<8xf32> to vector<8x1xf32>
    %482 = vector.broadcast %481 : vector<8x1xf32> to vector<8x16xf32>
    %483 = arith.subf %479, %482 : vector<8x16xf32>
    %484 = math.exp %483 : vector<8x16xf32>
    %cst_200 = arith.constant dense<0.000000e+00> : vector<8xf32>
    %485 = vector.multi_reduction <add>, %484, %cst_200 [1] : vector<8x16xf32> to vector<8xf32>
    %486 = vector.shape_cast %485 : vector<8xf32> to vector<8x1xf32>
    %487 = vector.broadcast %486 : vector<8x1xf32> to vector<8x16xf32>
    %488 = arith.divf %484, %487 : vector<8x16xf32>
    %489 = vector.extract_strided_slice %442 {offsets = [0, 16], sizes = [16, 8], strides = [1, 1]} : vector<16x32xf32> to vector<16x8xf32>
    %cst_201 = arith.constant dense<0.000000e+00> : vector<8x8xf32>
    %490 = tpu.matmul %488, %489, %cst_201 {dimension_numbers = #tpu.dot_dimension_numbers<[1], [0], [0], [1], [0, 0, 1, 1], [], []>} : vector<8x16xf32>, vector<16x8xf32>, vector<8x8xf32> -> vector<8x8xf32>
    %491 = vector.extract_strided_slice %433 {offsets = [0, 24], sizes = [8, 8], strides = [1, 1]} : vector<8x32xf32> to vector<8x8xf32>
    %492 = vector.extract_strided_slice %441 {offsets = [0, 24], sizes = [16, 8], strides = [1, 1]} : vector<16x32xf32> to vector<16x8xf32>
    %cst_202 = arith.constant dense<0.000000e+00> : vector<8x16xf32>
    %493 = tpu.matmul %491, %492, %cst_202 {dimension_numbers = #tpu.dot_dimension_numbers<[1], [1], [0], [0], [0, 0, 1, 0], [], []>} : vector<8x8xf32>, vector<16x8xf32>, vector<8x16xf32> -> vector<8x16xf32>
    %494 = vector.broadcast %10 : vector<1x16xf32> to vector<8x16xf32>
    %495 = arith.addf %493, %494 : vector<8x16xf32>
    %cst_203 = arith.constant dense<0xFF800000> : vector<8xf32>
    %496 = vector.multi_reduction <maximumf>, %495, %cst_203 [1] : vector<8x16xf32> to vector<8xf32>
    %497 = vector.shape_cast %496 : vector<8xf32> to vector<8x1xf32>
    %498 = vector.broadcast %497 : vector<8x1xf32> to vector<8x16xf32>
    %499 = arith.subf %495, %498 : vector<8x16xf32>
    %500 = math.exp %499 : vector<8x16xf32>
    %cst_204 = arith.constant dense<0.000000e+00> : vector<8xf32>
    %501 = vector.multi_reduction <add>, %500, %cst_204 [1] : vector<8x16xf32> to vector<8xf32>
    %502 = vector.shape_cast %501 : vector<8xf32> to vector<8x1xf32>
    %503 = vector.broadcast %502 : vector<8x1xf32> to vector<8x16xf32>
    %504 = arith.divf %500, %503 : vector<8x16xf32>
    %505 = vector.extract_strided_slice %442 {offsets = [0, 24], sizes = [16, 8], strides = [1, 1]} : vector<16x32xf32> to vector<16x8xf32>
    %cst_205 = arith.constant dense<0.000000e+00> : vector<8x8xf32>
    %506 = tpu.matmul %504, %505, %cst_205 {dimension_numbers = #tpu.dot_dimension_numbers<[1], [0], [0], [1], [0, 0, 1, 1], [], []>} : vector<8x16xf32>, vector<16x8xf32>, vector<8x8xf32> -> vector<8x8xf32>
    %507 = tpu.concatenate %458, %474, %490, %506 in 1 : vector<8x8xf32>, vector<8x8xf32>, vector<8x8xf32>, vector<8x8xf32> -> vector<8x32xf32>
    %508 = arith.addf %507, %424 : vector<8x32xf32>
    %c1_206 = arith.constant 1 : index
    %c0_207 = arith.constant 0 : index
    %c0_208 = arith.constant 0 : index
    %509 = vector.load %arg14[%c1_206, %c0_207, %c0_208] : memref<2x1x32xf32, #tpu.memory_space<vmem>>, vector<1x1x32xf32>
    %510 = vector.shape_cast %509 : vector<1x1x32xf32> to vector<1x32xf32>
    %c1_209 = arith.constant 1 : index
    %c0_210 = arith.constant 0 : index
    %c0_211 = arith.constant 0 : index
    %511 = vector.load %arg15[%c1_209, %c0_210, %c0_211] : memref<2x1x32xf32, #tpu.memory_space<vmem>>, vector<1x1x32xf32>
    %512 = vector.shape_cast %511 : vector<1x1x32xf32> to vector<1x32xf32>
    %cst_212 = arith.constant dense<0.000000e+00> : vector<8xf32>
    %513 = vector.multi_reduction <add>, %508, %cst_212 [1] : vector<8x32xf32> to vector<8xf32>
    %514 = vector.shape_cast %513 : vector<8xf32> to vector<8x1xf32>
    %cst_213 = arith.constant 3.200000e+01 : f32
    %515 = vector.broadcast %cst_213 : f32 to vector<8x1xf32>
    %516 = arith.divf %514, %515 : vector<8x1xf32>
    %517 = vector.broadcast %516 : vector<8x1xf32> to vector<8x32xf32>
    %518 = arith.subf %508, %517 : vector<8x32xf32>
    %519 = arith.mulf %518, %518 : vector<8x32xf32>
    %cst_214 = arith.constant dense<0.000000e+00> : vector<8xf32>
    %520 = vector.multi_reduction <add>, %519, %cst_214 [1] : vector<8x32xf32> to vector<8xf32>
    %521 = vector.shape_cast %520 : vector<8xf32> to vector<8x1xf32>
    %cst_215 = arith.constant 3.200000e+01 : f32
    %522 = vector.broadcast %cst_215 : f32 to vector<8x1xf32>
    %523 = arith.divf %521, %522 : vector<8x1xf32>
    %cst_216 = arith.constant 9.99999974E-6 : f32
    %524 = vector.broadcast %cst_216 : f32 to vector<8x1xf32>
    %525 = arith.addf %523, %524 : vector<8x1xf32>
    %526 = math.rsqrt %525 : vector<8x1xf32>
    %527 = vector.broadcast %526 : vector<8x1xf32> to vector<8x32xf32>
    %528 = arith.mulf %518, %527 : vector<8x32xf32>
    %529 = vector.broadcast %510 : vector<1x32xf32> to vector<8x32xf32>
    %530 = arith.mulf %528, %529 : vector<8x32xf32>
    %531 = vector.broadcast %512 : vector<1x32xf32> to vector<8x32xf32>
    %532 = arith.addf %530, %531 : vector<8x32xf32>
    %c1_217 = arith.constant 1 : index
    %c0_218 = arith.constant 0 : index
    %c0_219 = arith.constant 0 : index
    %533 = vector.load %arg16[%c1_217, %c0_218, %c0_219] : memref<2x32x64xf32, #tpu.memory_space<vmem>>, vector<1x32x64xf32>
    %534 = vector.shape_cast %533 : vector<1x32x64xf32> to vector<32x64xf32>
    %cst_220 = arith.constant dense<0.000000e+00> : vector<8x64xf32>
    %535 = tpu.matmul %532, %534, %cst_220 {dimension_numbers = #tpu.dot_dimension_numbers<[1], [0], [0], [1], [0, 0, 1, 1], [], []>} : vector<8x32xf32>, vector<32x64xf32>, vector<8x64xf32> -> vector<8x64xf32>
    %c1_221 = arith.constant 1 : index
    %c0_222 = arith.constant 0 : index
    %c0_223 = arith.constant 0 : index
    %536 = vector.load %arg17[%c1_221, %c0_222, %c0_223] : memref<2x1x64xf32, #tpu.memory_space<vmem>>, vector<1x1x64xf32>
    %537 = vector.shape_cast %536 : vector<1x1x64xf32> to vector<1x64xf32>
    %538 = vector.broadcast %537 : vector<1x64xf32> to vector<8x64xf32>
    %539 = arith.addf %535, %538 : vector<8x64xf32>
    %c1_224 = arith.constant 1 : index
    %c0_225 = arith.constant 0 : index
    %c0_226 = arith.constant 0 : index
    %540 = vector.load %arg18[%c1_224, %c0_225, %c0_226] : memref<2x64x32xf32, #tpu.memory_space<vmem>>, vector<1x64x32xf32>
    %541 = vector.shape_cast %540 : vector<1x64x32xf32> to vector<64x32xf32>
    %cst_227 = arith.constant dense<0.000000e+00> : vector<8x32xf32>
    %542 = tpu.matmul %539, %541, %cst_227 {dimension_numbers = #tpu.dot_dimension_numbers<[1], [0], [0], [1], [0, 0, 1, 1], [], []>} : vector<8x64xf32>, vector<64x32xf32>, vector<8x32xf32> -> vector<8x32xf32>
    %c1_228 = arith.constant 1 : index
    %c0_229 = arith.constant 0 : index
    %c0_230 = arith.constant 0 : index
    %543 = vector.load %arg19[%c1_228, %c0_229, %c0_230] : memref<2x1x32xf32, #tpu.memory_space<vmem>>, vector<1x1x32xf32>
    %544 = vector.shape_cast %543 : vector<1x1x32xf32> to vector<1x32xf32>
    %545 = vector.broadcast %544 : vector<1x32xf32> to vector<8x32xf32>
    %546 = arith.addf %542, %545 : vector<8x32xf32>
    %cst_231 = arith.constant 5.000000e-01 : f32
    %547 = vector.broadcast %cst_231 : f32 to vector<8x32xf32>
    %548 = arith.mulf %547, %546 : vector<8x32xf32>
    %cst_232 = arith.constant 0.707106769 : f32
    %549 = vector.broadcast %cst_232 : f32 to vector<8x32xf32>
    %550 = arith.mulf %546, %549 : vector<8x32xf32>
    %cst_233 = arith.constant 0.000000e+00 : f32
    %551 = vector.broadcast %cst_233 : f32 to vector<8x32xf32>
    %552 = arith.cmpf oge, %550, %551 : vector<8x32xf32>
    %cst_234 = arith.constant 1.000000e+00 : f32
    %cst_235 = arith.constant -1.000000e+00 : f32
    %553 = vector.broadcast %cst_234 : f32 to vector<8x32xf32>
    %554 = vector.broadcast %cst_235 : f32 to vector<8x32xf32>
    %555 = arith.select %552, %553, %554 : vector<8x32xi1>, vector<8x32xf32>
    %556 = math.absf %550 : vector<8x32xf32>
    %cst_236 = arith.constant 0.327591091 : f32
    %557 = vector.broadcast %cst_236 : f32 to vector<8x32xf32>
    %558 = arith.mulf %557, %556 : vector<8x32xf32>
    %cst_237 = arith.constant 1.000000e+00 : f32
    %559 = vector.broadcast %cst_237 : f32 to vector<8x32xf32>
    %560 = arith.addf %559, %558 : vector<8x32xf32>
    %cst_238 = arith.constant 1.000000e+00 : f32
    %561 = vector.broadcast %cst_238 : f32 to vector<8x32xf32>
    %562 = arith.divf %561, %560 : vector<8x32xf32>
    %cst_239 = arith.constant 1.06140542 : f32
    %563 = vector.broadcast %cst_239 : f32 to vector<8x32xf32>
    %564 = arith.mulf %563, %562 : vector<8x32xf32>
    %cst_240 = arith.constant -1.45315206 : f32
    %565 = vector.broadcast %cst_240 : f32 to vector<8x32xf32>
    %566 = arith.addf %564, %565 : vector<8x32xf32>
    %567 = arith.mulf %566, %562 : vector<8x32xf32>
    %cst_241 = arith.constant 1.42141378 : f32
    %568 = vector.broadcast %cst_241 : f32 to vector<8x32xf32>
    %569 = arith.addf %567, %568 : vector<8x32xf32>
    %570 = arith.mulf %569, %562 : vector<8x32xf32>
    %cst_242 = arith.constant -0.284496725 : f32
    %571 = vector.broadcast %cst_242 : f32 to vector<8x32xf32>
    %572 = arith.addf %570, %571 : vector<8x32xf32>
    %573 = arith.mulf %572, %562 : vector<8x32xf32>
    %cst_243 = arith.constant 0.254829586 : f32
    %574 = vector.broadcast %cst_243 : f32 to vector<8x32xf32>
    %575 = arith.addf %573, %574 : vector<8x32xf32>
    %576 = arith.mulf %575, %562 : vector<8x32xf32>
    %cst_244 = arith.constant 0.000000e+00 : f32
    %577 = vector.broadcast %cst_244 : f32 to vector<8x32xf32>
    %578 = arith.subf %577, %556 : vector<8x32xf32>
    %579 = arith.mulf %578, %556 : vector<8x32xf32>
    %580 = math.exp %579 : vector<8x32xf32>
    %581 = arith.mulf %576, %580 : vector<8x32xf32>
    %cst_245 = arith.constant 1.000000e+00 : f32
    %582 = vector.broadcast %cst_245 : f32 to vector<8x32xf32>
    %583 = arith.subf %582, %581 : vector<8x32xf32>
    %584 = arith.mulf %555, %583 : vector<8x32xf32>
    %cst_246 = arith.constant 1.000000e+00 : f32
    %585 = vector.broadcast %cst_246 : f32 to vector<8x32xf32>
    %586 = arith.addf %585, %584 : vector<8x32xf32>
    %587 = arith.mulf %548, %586 : vector<8x32xf32>
    %588 = arith.addf %587, %532 : vector<8x32xf32>
    %c0_247 = arith.constant 0 : index
    %c0_248 = arith.constant 0 : index
    %589 = vector.load %arg20[%c0_247, %c0_248] : memref<1x32xf32, #tpu.memory_space<vmem>>, vector<1x32xf32>
    %c0_249 = arith.constant 0 : index
    %c0_250 = arith.constant 0 : index
    %590 = vector.load %arg21[%c0_249, %c0_250] : memref<1x32xf32, #tpu.memory_space<vmem>>, vector<1x32xf32>
    %cst_251 = arith.constant dense<0.000000e+00> : vector<8xf32>
    %591 = vector.multi_reduction <add>, %588, %cst_251 [1] : vector<8x32xf32> to vector<8xf32>
    %592 = vector.shape_cast %591 : vector<8xf32> to vector<8x1xf32>
    %cst_252 = arith.constant 3.200000e+01 : f32
    %593 = vector.broadcast %cst_252 : f32 to vector<8x1xf32>
    %594 = arith.divf %592, %593 : vector<8x1xf32>
    %595 = vector.broadcast %594 : vector<8x1xf32> to vector<8x32xf32>
    %596 = arith.subf %588, %595 : vector<8x32xf32>
    %597 = arith.mulf %596, %596 : vector<8x32xf32>
    %cst_253 = arith.constant dense<0.000000e+00> : vector<8xf32>
    %598 = vector.multi_reduction <add>, %597, %cst_253 [1] : vector<8x32xf32> to vector<8xf32>
    %599 = vector.shape_cast %598 : vector<8xf32> to vector<8x1xf32>
    %cst_254 = arith.constant 3.200000e+01 : f32
    %600 = vector.broadcast %cst_254 : f32 to vector<8x1xf32>
    %601 = arith.divf %599, %600 : vector<8x1xf32>
    %cst_255 = arith.constant 9.99999974E-6 : f32
    %602 = vector.broadcast %cst_255 : f32 to vector<8x1xf32>
    %603 = arith.addf %601, %602 : vector<8x1xf32>
    %604 = math.rsqrt %603 : vector<8x1xf32>
    %605 = vector.broadcast %604 : vector<8x1xf32> to vector<8x32xf32>
    %606 = arith.mulf %596, %605 : vector<8x32xf32>
    %607 = vector.broadcast %589 : vector<1x32xf32> to vector<8x32xf32>
    %608 = arith.mulf %606, %607 : vector<8x32xf32>
    %609 = vector.broadcast %590 : vector<1x32xf32> to vector<8x32xf32>
    %610 = arith.addf %608, %609 : vector<8x32xf32>
    %c0_256 = arith.constant 0 : index
    %c0_257 = arith.constant 0 : index
    %c0_258 = arith.constant 0 : index
    %611 = vector.load %arg22[%c0_256, %c0_257, %c0_258] : memref<1x8x32xf32, #tpu.memory_space<vmem>>, vector<1x8x32xf32>
    %612 = vector.shape_cast %611 : vector<1x8x32xf32> to vector<8x32xf32>
    %613 = vector.shape_cast %610 : vector<8x32xf32> to vector<1x8x32xf32>
    tpu.vector_store %arg22[%c0_256, %c0_257, %c0_258], %613 {strides = array<i32>} : memref<1x8x32xf32, #tpu.memory_space<vmem>>, vector<1x8x32xf32>,
    return
  }
  func.func @transform_0(%arg0: i32) -> (i32, i32, i32) {
    %c0_i32 = arith.constant 0 : i32
    %c0_i32_0 = arith.constant 0 : i32
    %c0_i32_1 = arith.constant 0 : i32
    return %arg0, %c0_i32, %c0_i32_0 : i32, i32, i32
  }
  func.func @transform_1(%arg0: i32) -> (i32, i32, i32) {
    %c0_i32 = arith.constant 0 : i32
    %c0_i32_0 = arith.constant 0 : i32
    %c0_i32_1 = arith.constant 0 : i32
    return %arg0, %c0_i32, %c0_i32_0 : i32, i32, i32
  }
  func.func @transform_2(%arg0: i32) -> (i32, i32, i32) {
    %c0_i32 = arith.constant 0 : i32
    %c0_i32_0 = arith.constant 0 : i32
    %c0_i32_1 = arith.constant 0 : i32
    return %arg0, %c0_i32, %c0_i32_0 : i32, i32, i32
  }
  func.func @transform_3(%arg0: i32) -> (i32, i32, i32) {
    %c0_i32 = arith.constant 0 : i32
    %c0_i32_0 = arith.constant 0 : i32
    %c0_i32_1 = arith.constant 0 : i32
    %c0_i32_2 = arith.constant 0 : i32
    return %c0_i32, %c0_i32_0, %c0_i32_1 : i32, i32, i32
  }
  func.func @transform_4(%arg0: i32) -> (i32, i32, i32) {
    %c0_i32 = arith.constant 0 : i32
    %c0_i32_0 = arith.constant 0 : i32
    %c0_i32_1 = arith.constant 0 : i32
    %c0_i32_2 = arith.constant 0 : i32
    return %c0_i32, %c0_i32_0, %c0_i32_1 : i32, i32, i32
  }
  func.func @transform_5(%arg0: i32) -> (i32, i32, i32) {
    %c0_i32 = arith.constant 0 : i32
    %c0_i32_0 = arith.constant 0 : i32
    %c0_i32_1 = arith.constant 0 : i32
    %c0_i32_2 = arith.constant 0 : i32
    return %c0_i32, %c0_i32_0, %c0_i32_1 : i32, i32, i32
  }
  func.func @transform_6(%arg0: i32) -> (i32, i32, i32) {
    %c0_i32 = arith.constant 0 : i32
    %c0_i32_0 = arith.constant 0 : i32
    %c0_i32_1 = arith.constant 0 : i32
    %c0_i32_2 = arith.constant 0 : i32
    return %c0_i32, %c0_i32_0, %c0_i32_1 : i32, i32, i32
  }
  func.func @transform_7(%arg0: i32) -> (i32, i32, i32) {
    %c0_i32 = arith.constant 0 : i32
    %c0_i32_0 = arith.constant 0 : i32
    %c0_i32_1 = arith.constant 0 : i32
    %c0_i32_2 = arith.constant 0 : i32
    return %c0_i32, %c0_i32_0, %c0_i32_1 : i32, i32, i32
  }
  func.func @transform_8(%arg0: i32) -> (i32, i32, i32) {
    %c0_i32 = arith.constant 0 : i32
    %c0_i32_0 = arith.constant 0 : i32
    %c0_i32_1 = arith.constant 0 : i32
    %c0_i32_2 = arith.constant 0 : i32
    return %c0_i32, %c0_i32_0, %c0_i32_1 : i32, i32, i32
  }
  func.func @transform_9(%arg0: i32) -> (i32, i32, i32) {
    %c0_i32 = arith.constant 0 : i32
    %c0_i32_0 = arith.constant 0 : i32
    %c0_i32_1 = arith.constant 0 : i32
    %c0_i32_2 = arith.constant 0 : i32
    return %c0_i32, %c0_i32_0, %c0_i32_1 : i32, i32, i32
  }
  func.func @transform_10(%arg0: i32) -> (i32, i32, i32) {
    %c0_i32 = arith.constant 0 : i32
    %c0_i32_0 = arith.constant 0 : i32
    %c0_i32_1 = arith.constant 0 : i32
    %c0_i32_2 = arith.constant 0 : i32
    return %c0_i32, %c0_i32_0, %c0_i32_1 : i32, i32, i32
  }
  func.func @transform_11(%arg0: i32) -> (i32, i32, i32) {
    %c0_i32 = arith.constant 0 : i32
    %c0_i32_0 = arith.constant 0 : i32
    %c0_i32_1 = arith.constant 0 : i32
    %c0_i32_2 = arith.constant 0 : i32
    return %c0_i32, %c0_i32_0, %c0_i32_1 : i32, i32, i32
  }
  func.func @transform_12(%arg0: i32) -> (i32, i32, i32) {
    %c0_i32 = arith.constant 0 : i32
    %c0_i32_0 = arith.constant 0 : i32
    %c0_i32_1 = arith.constant 0 : i32
    %c0_i32_2 = arith.constant 0 : i32
    return %c0_i32, %c0_i32_0, %c0_i32_1 : i32, i32, i32
  }
  func.func @transform_13(%arg0: i32) -> (i32, i32, i32) {
    %c0_i32 = arith.constant 0 : i32
    %c0_i32_0 = arith.constant 0 : i32
    %c0_i32_1 = arith.constant 0 : i32
    %c0_i32_2 = arith.constant 0 : i32
    return %c0_i32, %c0_i32_0, %c0_i32_1 : i32, i32, i32
  }
  func.func @transform_14(%arg0: i32) -> (i32, i32, i32) {
    %c0_i32 = arith.constant 0 : i32
    %c0_i32_0 = arith.constant 0 : i32
    %c0_i32_1 = arith.constant 0 : i32
    %c0_i32_2 = arith.constant 0 : i32
    return %c0_i32, %c0_i32_0, %c0_i32_1 : i32, i32, i32
  }
  func.func @transform_15(%arg0: i32) -> (i32, i32, i32) {
    %c0_i32 = arith.constant 0 : i32
    %c0_i32_0 = arith.constant 0 : i32
    %c0_i32_1 = arith.constant 0 : i32
    %c0_i32_2 = arith.constant 0 : i32
    return %c0_i32, %c0_i32_0, %c0_i32_1 : i32, i32, i32
  }
  func.func @transform_16(%arg0: i32) -> (i32, i32, i32) {
    %c0_i32 = arith.constant 0 : i32
    %c0_i32_0 = arith.constant 0 : i32
    %c0_i32_1 = arith.constant 0 : i32
    %c0_i32_2 = arith.constant 0 : i32
    return %c0_i32, %c0_i32_0, %c0_i32_1 : i32, i32, i32
  }
  func.func @transform_17(%arg0: i32) -> (i32, i32, i32) {
    %c0_i32 = arith.constant 0 : i32
    %c0_i32_0 = arith.constant 0 : i32
    %c0_i32_1 = arith.constant 0 : i32
    %c0_i32_2 = arith.constant 0 : i32
    return %c0_i32, %c0_i32_0, %c0_i32_1 : i32, i32, i32
  }
  func.func @transform_18(%arg0: i32) -> (i32, i32, i32) {
    %c0_i32 = arith.constant 0 : i32
    %c0_i32_0 = arith.constant 0 : i32
    %c0_i32_1 = arith.constant 0 : i32
    %c0_i32_2 = arith.constant 0 : i32
    return %c0_i32, %c0_i32_0, %c0_i32_1 : i32, i32, i32
  }
  func.func @transform_19(%arg0: i32) -> (i32, i32) {
    %c0_i32 = arith.constant 0 : i32
    %c0_i32_0 = arith.constant 0 : i32
    %c0_i32_1 = arith.constant 0 : i32
    return %c0_i32, %c0_i32_0 : i32, i32
  }
  func.func @transform_20(%arg0: i32) -> (i32, i32) {
    %c0_i32 = arith.constant 0 : i32
    %c0_i32_0 = arith.constant 0 : i32
    %c0_i32_1 = arith.constant 0 : i32
    return %c0_i32, %c0_i32_0 : i32, i32
  }
  func.func @transform_21(%arg0: i32) -> (i32, i32, i32) {
    %c0_i32 = arith.constant 0 : i32
    %c0_i32_0 = arith.constant 0 : i32
    %c0_i32_1 = arith.constant 0 : i32
    return %arg0, %c0_i32, %c0_i32_0 : i32, i32, i32
  }
}

</mosaic_0001>

<bundles_post_ra>
// kernel: decoder_forward.1
= control target key start
LH: loop header
LB: loop body
LE: loop exit
PB: predicated region body
PF: predicated region fallthrough
CT: control target
= control target key end

     0   :  { %s7487_s0 = inlined_call_operand.hbm [shape: f32[2,8,32], index: 0, kind: input, shape index: {}]   ;;  %s7488_s1 = inlined_call_operand.vmem [shape: f32[2,16,32], index: 1, kind: input, shape index: {}]   ;;  %s7489_s2 = inlined_call_operand.vmem [shape: f32[2,1,16], index: 2, kind: input, shape index: {}]   ;;  %s7490_s3 = inlined_call_operand.vmem [shape: f32[2,1,32], index: 3, kind: input, shape index: {}]   ;;  %s7491_s4 = inlined_call_operand.hbm [shape: f32[2,1,32], index: 4, kind: input, shape index: {}]   ;;  %s7492_s5 = inlined_call_operand.vmem [shape: f32[2,32,96], index: 5, kind: input, shape index: {}]   ;;  %s7493_s6 = inlined_call_operand.hbm [shape: f32[2,1,96], index: 6, kind: input, shape index: {}]   ;;  %s7494_s7 = inlined_call_operand.hbm [shape: f32[2,1,32], index: 7, kind: input, shape index: {}]   ;;  %s7495_s8 = inlined_call_operand.hbm [shape: f32[2,1,32], index: 8, kind: input, shape index: {}]   ;;  %s7496_s9 = inlined_call_operand.vmem [shape: f32[2,32,32], index: 9, kind: input, shape index: {}]   ;;  %s7497_s10 = inlined_call_operand.hbm [shape: f32[2,1,32], index: 10, kind: input, shape index: {}]   ;;  %s7498_s11 = inlined_call_operand.vmem [shape: f32[2,32,64], index: 11, kind: input, shape index: {}]   ;;  %s7499_s12 = inlined_call_operand.hbm [shape: f32[2,1,64], index: 12, kind: input, shape index: {}]   ;;  %s7500_s13 = inlined_call_operand.hbm [shape: f32[2,1,32], index: 13, kind: input, shape index: {}]   ;;  %s7501_s14 = inlined_call_operand.hbm [shape: f32[2,1,32], index: 14, kind: input, shape index: {}]   ;;  %s7502_s15 = inlined_call_operand.hbm [shape: f32[2,32,64], index: 15, kind: input, shape index: {}]   ;;  %s7503_s16 = inlined_call_operand.hbm [shape: f32[2,1,64], index: 16, kind: input, shape index: {}]   ;;  %s7504_s17 = inlined_call_operand.vmem [shape: f32[2,64,32], index: 17, kind: input, shape index: {}]   ;;  %s7505_s18 = inlined_call_operand.hbm [shape: f32[2,1,32], index: 18, kind: input, shape index: {}]   ;;  %s7506_s19 = inlined_call_operand.hbm [shape: f32[1,32], index: 19, kind: input, shape index: {}]   ;;  %s7507_s20 = inlined_call_operand.hbm [shape: f32[1,32], index: 20, kind: input, shape index: {}]   ;;  %s7508_s21 = inlined_call_operand.hbm [shape: f32[2,8,32], index: 21, kind: output, shape index: {}]  }
   0x1   :  { %7551 = sst [smem:[#allocation35_spill]] %s7487_s0 }
   0x2   :  { %7552 = sst [smem:[#allocation36_spill]] %s7488_s1 }
   0x3   :  { %7553 = sst [smem:[#allocation37_spill]] %s7489_s2 }
   0x4   :  { %7554 = sst [smem:[#allocation38_spill]] %s7490_s3 }
   0x5   :  { %7555 = sst [smem:[#allocation39_spill]] %s7491_s4 }
   0x6   :  { %7556 = sst [smem:[#allocation40_spill]] %s7492_s5 }
   0x7   :  { %7557 = sst [smem:[#allocation41_spill]] %s7493_s6 }
   0x8   :  { %7558 = sst [smem:[#allocation42_spill]] %s7494_s7 }
   0x9   :  { %7559 = sst [smem:[#allocation43_spill]] %s7495_s8 }
   0xa   :  { %7560 = sst [smem:[#allocation44_spill]] %s7496_s9 }
   0xb   :  { %7561 = sst [smem:[#allocation45_spill]] %s7497_s10 }
   0xc   :  { %7562 = sst [smem:[#allocation46_spill]] %s7499_s12 }
   0xd   :  { %7563 = sst [smem:[#allocation47_spill]] %s7500_s13 }
   0xe   :  { %7564 = sst [smem:[#allocation48_spill]] %s7501_s14 }
   0xf   :  { %7565 = sst [smem:[#allocation49_spill]] %s7502_s15 }
  0x10   :  { %7566 = sst [smem:[#allocation50_spill]] %s7503_s16 }
  0x11   :  { %7567 = sst [smem:[#allocation51_spill]] %s7504_s17 }
  0x12   :  { %7568 = sst [smem:[#allocation52_spill]] %s7505_s18 }
  0x13   :  { %7569 = sst [smem:[#allocation53_spill]] %s7506_s19 }
  0x14   :  { %7570 = sst [smem:[#allocation54_spill]] %s7507_s20 }
  0x15   :  { %7571 = sst [smem:[#allocation55_spill]] %s7508_s21 }
  0x16   :  { %26 = vsyncpa [#allocation3], 0 }
  0x17   :  { %28 = vsyncpa [#allocation3 + $0x1], 0 }
  0x18   :  { %29 = vsyncpa [#allocation6], 0 }
  0x19   :  { %30 = vsyncpa [#allocation9], 0 }
  0x1a   :  { %31 = vsyncpa [#allocation12], 0 }
  0x1b   :  { %32 = vsyncpa [#allocation15], 0 }
  0x1c   :  { %33 = vsyncpa [#allocation18], 0 }
  0x1d   :  { %34 = vsyncpa [#allocation21], 0 }
  0x1e   :  { %35 = vsyncpa [#allocation24], 0 }
  0x1f   :  { %36 = vsyncpa [#allocation4], 0 }
  0x20   :  { %38 = vsyncpa [#allocation4 + $0x1], 0  ;;  %s6540_s2 = smov 0   ;;  %s6542_s25 = smov 0  }
  0x21   :  { %s6544_s26 = smov 0   ;;  %s6546_s27 = smov 0  }
  0x22 LB: > { %s6393_s3 = smov [#allocation5]   ;;  %s6561_s29 = sadd.s32 4294967295, %s6391_s27   ;;  %s6391_s27 = sphi %s6546_s27, %s7640_s27   ;;  %s6387_s26 = sphi %s6544_s26, %s7639_s26   ;;  %s6383_s25 = sphi %s6542_s25, %s7638_s25   ;;  %s6379_s2 = sphi %s6540_s2, %s7637_s2  }
  0x23   : > { %s546_s28 = sshll.u32 %s6393_s3, 4  ;;  %p5037_p0 = scmp.ge.s32.totalorder %s6391_s27, 1  ;;  %s547_s28 = int_to_ptr.vmem [resolvable:$true] %s546_s28 }
  0x24   : > { %p7519_p1 = scmp.eq.s32.totalorder %s6561_s29, 0  ;;  %p531_p2 = scmp.lt.s32.totalorder %s6391_s27, 3 }
  0x25   : > { %s6394_s4 = smov [#allocation8]   ;;  %s6395_s22 = smov [#allocation11]  }
  0x26   : > { %p6566_p3 = pnand %p5037_p0, %p531_p2  ;;  %s575_s30 = sshll.u32 %s6394_s4, 4  ;;  %s6579_s30 = int_to_ptr.vmem [resolvable:$true] %s575_s30 }
  0x27   : > { %s604_s23 = sshll.u32 %s6395_s22, 4  ;;  %s5944_s24 = scalar_lea.vmem %s547_s28, 32  ;;  %s6581_s23 = int_to_ptr.vmem [resolvable:$true] %s604_s23 }
  0x28   : > { %s7572_s0 = scalar_select %p6566_p3, 1, 0 }
  0x29   : > { %p5704_p5 = pneg %p6566_p3  ;;  %p5945_p8 = scmp.ne.s32.totalorder %s547_s28, %s5944_s24 }
  0x2a   : > { %p5952_p11 = scmp.lt.s32.totalorder %s547_s28, %s547_s28  ;;  %p5953_p12 = scmp.lt.s32.totalorder %s5944_s24, %s5944_s24 }
  0x2b   : > { %p6575_p6 = pnand %p5704_p5, %p7519_p1 }
  0x2c   : > { %p5954_p13 = por %p5953_p12, %p5952_p11 }
  0x2d   : > { %p6585_p7 = pneg %p6575_p6 }
  0x2f   : > { %p5947_p9 = pnand %p5945_p8, %p6585_p7 }
  0x31   : > { %p5948_p10 = pneg %p5947_p9 }
  0x33   : > { %p5955_p0 = pnand %p5954_p13, %p5948_p10 }
  0x35   : > { %5958 = shalt.err (!%p5955_p0)
}
  0x36   : > { %s7515_s3 = smov 16   ;;  %s7517_s4 = smov 1  }
  0x37   : > { %s7575_s17 = sld [smem:[#allocation39_spill]]  ;;  %s5970_s9 = scalar_lea.vmem %s6579_s30, 32 }
  0x38   : > { %p5971_p2 = scmp.ne.s32.totalorder %s6579_s30, %s5970_s9  ;;  %p5978_p9 = scmp.lt.s32.totalorder %s6579_s30, %s6579_s30 }
  0x39   : > { %p5979_p10 = scmp.lt.s32.totalorder %s5970_s9, %s5970_s9 }
  0x3a   : > { %p5973_p5 = pnand %p5971_p2, %p6585_p7 }
  0x3b   : > { %p5980_p11 = por %p5979_p10, %p5978_p9 }
  0x3c   : > { %p5974_p8 = pneg %p5973_p5 }
  0x3d   : > { %5707 = dma.hbm_to_vmem [thread:$0]  (!%p6575_p6), %s7575_s17, 32, %s547_s28, [#allocation6], %s7515_s3, %s7515_s3, %s7517_s4  }
  0x3e   : > { %p5981_p12 = pnand %p5980_p11, %p5974_p8 }
  0x40   : > { %5984 = shalt.err (!%p5981_p12)
}
  0x41   : > { %s7576_s7 = sld [smem:[#allocation42_spill]]  ;;  %s5996_s17 = scalar_lea.vmem %s6581_s23, 32 }
  0x42   : > { %p5997_p13 = scmp.ne.s32.totalorder %s6581_s23, %s5996_s17  ;;  %p6004_p5 = scmp.lt.s32.totalorder %s6581_s23, %s6581_s23 }
  0x43   : > { %p6005_p8 = scmp.lt.s32.totalorder %s5996_s17, %s5996_s17 }
  0x44   : > { %p5999_p0 = pnand %p5997_p13, %p6585_p7 }
  0x45   : > { %p6006_p9 = por %p6005_p8, %p6004_p5 }
  0x46   : > { %p6000_p2 = pneg %p5999_p0 }
  0x47   : > { %5713 = dma.hbm_to_vmem [thread:$0]  (!%p6575_p6), %s7576_s7, 32, %s6579_s30, [#allocation9], %s7515_s3, %s7515_s3, %s7517_s4  }
  0x48   : > { %p6007_p10 = pnand %p6006_p9, %p6000_p2 }
  0x4a   : > { %6010 = shalt.err (!%p6007_p10)
}
  0x4b   : > { %s7577_s10 = sld [smem:[#allocation45_spill]]  ;;  %s6398_s30 = smov [#allocation14]  }
  0x4c   : > { %s633_s22 = sshll.u32 %s6398_s30, 4  ;;  %s6399_s24 = smov [#allocation17]   ;;  %s634_s22 = int_to_ptr.vmem [resolvable:$true] %s633_s22 }
  0x4d   : > { %s659_s21 = sshll.u32 %s6399_s24, 4  ;;  %s6022_s17 = scalar_lea.vmem %s634_s22, 32  ;;  %s660_s21 = int_to_ptr.vmem [resolvable:$true] %s659_s21 }
  0x4e   : > { %p6023_p11 = scmp.ne.s32.totalorder %s634_s22, %s6022_s17  ;;  %p6030_p0 = scmp.lt.s32.totalorder %s634_s22, %s634_s22 }
  0x4f   : > { %p6031_p2 = scmp.lt.s32.totalorder %s6022_s17, %s6022_s17 }
  0x50   : > { %p6025_p12 = pnand %p6023_p11, %p6585_p7 }
  0x51   : > { %5719 = dma.hbm_to_vmem [thread:$0]  (!%p6575_p6), %s7577_s10, 32, %s6581_s23, [#allocation12], %s7515_s3, %s7515_s3, %s7517_s4  }
  0x52   : > { %p6026_p13 = pneg %p6025_p12  ;;  %p6032_p5 = por %p6031_p2, %p6030_p0 }
  0x54   : > { %p6033_p8 = pnand %p6032_p5, %p6026_p13 }
  0x56   : > { %6036 = shalt.err (!%p6033_p8)
}
  0x57   : > { %s7578_s13 = sld [smem:[#allocation47_spill]]  ;;  %s6048_s28 = scalar_lea.vmem %s660_s21, 1024 }
  0x58   : > { %p6049_p9 = scmp.ne.s32.totalorder %s660_s21, %s6048_s28  ;;  %p6056_p12 = scmp.lt.s32.totalorder %s660_s21, %s660_s21 }
  0x59   : > { %p6057_p0 = scmp.lt.s32.totalorder %s6048_s28, %s6048_s28 }
  0x5a   : > { %p6051_p10 = pnand %p6049_p9, %p6585_p7 }
  0x5b   : > { %p6058_p13 = por %p6057_p0, %p6056_p12 }
  0x5c   : > { %p6052_p11 = pneg %p6051_p10 }
  0x5d   : > { %5725 = dma.hbm_to_vmem [thread:$0]  (!%p6575_p6), %s7578_s13, 32, %s634_s22, [#allocation15], %s7515_s3, %s7515_s3, %s7517_s4  }
  0x5e   : > { %p6059_p2 = pnand %p6058_p13, %p6052_p11 }
  0x60   : > { %6062 = shalt.err (!%p6059_p2)
}
  0x61   : > { %s6400_s30 = smov 128   ;;  %s6401_s24 = smov 8  }
  0x62   : > { %s7579_s15 = sld [smem:[#allocation49_spill]]  ;;  %s6402_s22 = smov [#allocation20]  }
  0x63   : > { %s688_s9 = sshll.u32 %s6402_s22, 4  ;;  %s6403_s3 = smov [#allocation7]   ;;  %s689_s9 = int_to_ptr.vmem [resolvable:$true] %s688_s9 }
  0x64   : > { %s562_s4 = sshll.u32 %s6403_s3, 4  ;;  %s6074_s7 = scalar_lea.vmem %s689_s9, 32  ;;  %s563_s4 = int_to_ptr.vmem [resolvable:$true] %s562_s4 }
  0x65   : > { %p6075_p5 = scmp.ne.s32.totalorder %s689_s9, %s6074_s7  ;;  %p6082_p10 = scmp.lt.s32.totalorder %s689_s9, %s689_s9 }
  0x66   : > { %p6083_p11 = scmp.lt.s32.totalorder %s6074_s7, %s6074_s7 }
  0x67   : > { %p6077_p8 = pnand %p6075_p5, %p6585_p7 }
  0x68   : > { %5731 = dma.hbm_to_vmem [thread:$0]  (!%p6575_p6), %s7579_s15, 1024, %s660_s21, [#allocation18], %s6400_s30, %s6400_s30, %s6401_s24  }
  0x69   : > { %p6078_p9 = pneg %p6077_p8  ;;  %p6084_p12 = por %p6083_p11, %p6082_p10 }
  0x6b   : > { %p6085_p0 = pnand %p6084_p12, %p6078_p9 }
  0x6d   : > { %6088 = shalt.err (!%p6085_p0)
}
  0x6e   : > { %s7580_s28 = smov 1   ;;  %s7581_s17 = smov 16  }
  0x6f   : > { %s7582_s18 = sld [smem:[#allocation52_spill]]  ;;  %s6100_s3 = scalar_lea.vmem %s563_s4, 32 }
  0x70   : > { %p6101_p13 = scmp.ne.s32.totalorder %s563_s4, %s6100_s3  ;;  %p6108_p8 = scmp.lt.s32.totalorder %s563_s4, %s563_s4 }
  0x71   : > { %p6109_p10 = scmp.lt.s32.totalorder %s6100_s3, %s6100_s3 }
  0x72   : > { %p6103_p2 = pnand %p6101_p13, %p6585_p7 }
  0x73   : > { %p6110_p9 = por %p6109_p10, %p6108_p8 }
  0x74   : > { %p6104_p5 = pneg %p6103_p2 }
  0x75   : > { %5737 = dma.hbm_to_vmem [thread:$0]  (!%p6575_p6), %s7582_s18, 32, %s689_s9, [#allocation21], %s7581_s17, %s7581_s17, %s7580_s28  }
  0x76   : > { %p6111_p11 = pnand %p6110_p9, %p6104_p5 }
  0x78   : > { %6114 = shalt.err (!%p6111_p11)
}
  0x79   : > { %s7583_s6 = sld [smem:[#allocation41_spill]]  ;;  %s6404_s23 = smov [#allocation10]  }
  0x7a   : > { %s588_s22 = sshll.u32 %s6404_s23, 4  ;;  %s6405_s9 = smov [#allocation13]   ;;  %s589_s22 = int_to_ptr.vmem [resolvable:$true] %s588_s22 }
  0x7b   : > { %s620_s21 = sshll.u32 %s6405_s9, 4  ;;  %s6126_s30 = scalar_lea.vmem %s589_s22, 32  ;;  %s621_s21 = int_to_ptr.vmem [resolvable:$true] %s620_s21 }
  0x7c   : > { %p6127_p12 = scmp.ne.s32.totalorder %s589_s22, %s6126_s30  ;;  %p6134_p2 = scmp.lt.s32.totalorder %s589_s22, %s589_s22 }
  0x7d   : > { %p6135_p5 = scmp.lt.s32.totalorder %s6126_s30, %s6126_s30 }
  0x7e   : > { %p6129_p0 = pnand %p6127_p12, %p6585_p7 }
  0x7f   : > { %5710 = dma.hbm_to_vmem [thread:$0]  (!%p6575_p6), %s7583_s6, 32, %s563_s4, [#allocation6], %s7581_s17, %s7581_s17, %s7580_s28  }
  0x80   : > { %p6130_p13 = pneg %p6129_p0  ;;  %p6136_p8 = por %p6135_p5, %p6134_p2 }
  0x82   : > { %p6137_p10 = pnand %p6136_p8, %p6130_p13 }
  0x84   : > { %6140 = shalt.err (!%p6137_p10)
}
  0x85   : > { %s7584_s8 = sld [smem:[#allocation43_spill]]  ;;  %s6152_s7 = scalar_lea.vmem %s621_s21, 32 }
  0x86   : > { %p6153_p9 = scmp.ne.s32.totalorder %s621_s21, %s6152_s7  ;;  %p6160_p0 = scmp.lt.s32.totalorder %s621_s21, %s621_s21 }
  0x87   : > { %p6161_p2 = scmp.lt.s32.totalorder %s6152_s7, %s6152_s7 }
  0x88   : > { %p6155_p11 = pnand %p6153_p9, %p6585_p7 }
  0x89   : > { %p6162_p13 = por %p6161_p2, %p6160_p0 }
  0x8a   : > { %p6156_p12 = pneg %p6155_p11 }
  0x8b   : > { %5716 = dma.hbm_to_vmem [thread:$0]  (!%p6575_p6), %s7584_s8, 32, %s589_s22, [#allocation9], %s7581_s17, %s7581_s17, %s7580_s28  }
  0x8c   : > { %p6163_p5 = pnand %p6162_p13, %p6156_p12 }
  0x8e   : > { %6166 = shalt.err (!%p6163_p5)
}
  0x8f   : > { %s7585_s12 = sld [smem:[#allocation46_spill]]  ;;  %s6406_s22 = smov [#allocation16]  }
  0x90   : > { %s646_s9 = sshll.u32 %s6406_s22, 4  ;;  %s6407_s30 = smov [#allocation19]   ;;  %s647_s9 = int_to_ptr.vmem [resolvable:$true] %s646_s9 }
  0x91   : > { %s672_s4 = sshll.u32 %s6407_s30, 4  ;;  %s6178_s3 = scalar_lea.vmem %s647_s9, 32  ;;  %s673_s4 = int_to_ptr.vmem [resolvable:$true] %s672_s4 }
  0x92   : > { %p6179_p8 = scmp.ne.s32.totalorder %s647_s9, %s6178_s3  ;;  %p6186_p11 = scmp.lt.s32.totalorder %s647_s9, %s647_s9 }
  0x93   : > { %p6187_p12 = scmp.lt.s32.totalorder %s6178_s3, %s6178_s3 }
  0x94   : > { %p6181_p10 = pnand %p6179_p8, %p6585_p7 }
  0x95   : > { %5722 = dma.hbm_to_vmem [thread:$0]  (!%p6575_p6), %s7585_s12, 32, %s621_s21, [#allocation12], %s7581_s17, %s7581_s17, %s7580_s28  }
  0x96   : > { %p6182_p9 = pneg %p6181_p10  ;;  %p6188_p0 = por %p6187_p12, %p6186_p11 }
  0x98   : > { %p6189_p2 = pnand %p6188_p0, %p6182_p9 }
  0x9a   : > { %6192 = shalt.err (!%p6189_p2)
}
  0x9b   : > { %s7586_s14 = sld [smem:[#allocation48_spill]]  ;;  %s6204_s24 = scalar_lea.vmem %s673_s4, 32 }
  0x9c   : > { %p6205_p13 = scmp.ne.s32.totalorder %s673_s4, %s6204_s24  ;;  %p6212_p10 = scmp.lt.s32.totalorder %s673_s4, %s673_s4 }
  0x9d   : > { %p6213_p11 = scmp.lt.s32.totalorder %s6204_s24, %s6204_s24 }
  0x9e   : > { %p6207_p5 = pnand %p6205_p13, %p6585_p7 }
  0x9f   : > { %p6214_p9 = por %p6213_p11, %p6212_p10 }
  0xa0   : > { %p6208_p8 = pneg %p6207_p5 }
  0xa1   : > { %5728 = dma.hbm_to_vmem [thread:$0]  (!%p6575_p6), %s7586_s14, 32, %s647_s9, [#allocation15], %s7581_s17, %s7581_s17, %s7580_s28  }
  0xa2   : > { %p6215_p12 = pnand %p6214_p9, %p6208_p8 }
  0xa4   : > { %6218 = shalt.err (!%p6215_p12)
}
  0xa5   : > { %s7587_s16 = sld [smem:[#allocation50_spill]]  ;;  %s6408_s9 = smov [#allocation22]  }
  0xa6   : > { %s702_s30 = sshll.u32 %s6408_s9, 4  ;;  %s6409_s3 = smov [#allocation23]   ;;  %s703_s30 = int_to_ptr.vmem [resolvable:$true] %s702_s30 }
  0xa7   : > { %s713_s21 = sshll.u32 %s6409_s3, 4  ;;  %s6230_s7 = scalar_lea.vmem %s703_s30, 16  ;;  %s714_s21 = int_to_ptr.vmem [resolvable:$true] %s713_s21 }
  0xa8   : > { %p6231_p0 = scmp.ne.s32.totalorder %s703_s30, %s6230_s7  ;;  %s6237_s24 = scalar_lea.vmem %s703_s30, 32 }
  0xa9   : > { %p6238_p5 = scmp.lt.s32.totalorder %s703_s30, %s703_s30  ;;  %p6239_p8 = scmp.lt.s32.totalorder %s6237_s24, %s6230_s7 }
  0xaa   : > { %p6233_p2 = pnand %p6231_p0, %p6585_p7 }
  0xab   : > { %5734 = dma.hbm_to_vmem [thread:$0]  (!%p6575_p6), %s7587_s16, 32, %s673_s4, [#allocation18], %s7581_s17, %s7581_s17, %s7580_s28  }
  0xac   : > { %p6234_p13 = pneg %p6233_p2  ;;  %p6240_p10 = por %p6239_p8, %p6238_p5 }
  0xae   : > { %p6241_p11 = pnand %p6240_p10, %p6234_p13 }
  0xb0   : > { %6244 = shalt.err (!%p6241_p11)
}
  0xb1   : > { %s7588_s19 = sld [smem:[#allocation53_spill]]  ;;  %s6256_s17 = scalar_lea.vmem %s714_s21, 16 }
  0xb2   : > { %p6257_p9 = scmp.ne.s32.totalorder %s714_s21, %s6256_s17  ;;  %s6263_s4 = scalar_lea.vmem %s714_s21, 32 }
  0xb3   : > { %p6264_p2 = scmp.lt.s32.totalorder %s714_s21, %s714_s21  ;;  %p6265_p4 = scmp.lt.s32.totalorder %s6263_s4, %s6256_s17 }
  0xb4   : > { %p6259_p12 = pnand %p6257_p9, %p6585_p7 }
  0xb5   : > { %p6266_p1 = por %p6265_p4, %p6264_p2 }
  0xb6   : > { %p6260_p0 = pneg %p6259_p12 }
  0xb7   : > { %5740 = dma.hbm_to_vmem [thread:$0]  (!%p6575_p6), %s7588_s19, 16, %s703_s30, [#allocation21]  }
  0xb8   : > { %p6267_p5 = pnand %p6266_p1, %p6260_p0 }
  0xba   : > { %6270 = shalt.err (!%p6267_p5)
}
  0xbb   : > { %s7589_s20 = sld [smem:[#allocation54_spill]]  ;;  %s5036_s1 = sadd.s32 4294967294, %s6391_s27  }
  0xbc   : > { %s6722_s5 = sadd.s32 1, %s6391_s27   ;;  %s51_s30 = sadd.s32 1, %s6387_s26 }
  0xbd   : > { %s48_s3 = ssub.s32 %s6391_s27, %s6722_s5  ;;  %p58_p1 = scmp.ne.s32.totalorder %s6387_s26, %s6383_s25 }
  0xbe   : > { %p49_p4 = scmp.eq.s32.totalorder %s48_s3, 0  ;;  %p59_p7 = scmp.eq.s32.totalorder %s6391_s27, 0 }
  0xbf   : > { %p64_p13 = scmp.ne.s32.totalorder %s6383_s25, %s6379_s2  ;;  %p518_p8 = scmp.eq.s32.totalorder %s6561_s29, 1 }
  0xc0   : > { %s6734_s7 = scalar_select %p49_p4, %s6387_s26, %s51_s30  }
  0xc1   : > { %5743 = dma.hbm_to_vmem [thread:$0]  (!%p6575_p6), %s7589_s20, 16, %s714_s21, [#allocation24]  }
  0xc2   : > { %p60_p10 = por %p59_p7, %p58_p1  ;;  %p7590_p11 = scmp.eq.s32.totalorder %s6561_s29, 0 }
  0xc3   : > { %p6742_p6 = por %p518_p8, %p58_p1  ;;  %p524_p12 = scmp.eq.s32.totalorder %s5036_s1, 1 }
  0xc4   : > { %p6738_p9 = por %p7590_p11, %p64_p13  ;;  %p5765_p0 = scmp.lt.s32.totalorder %s6391_s27, 2 }
  0xc5   : > { %s7592_s21 = scalar_select %p6742_p6, 1, 0 }
  0xc6   : > { %s7591_s24 = scalar_select %p6738_p9, 1, 0 }
  0xc7   : > { %s724_s23 = sand.u32 1, %s6387_s26   ;;  %p6748_p2 = por %p524_p12, %p64_p13 }
  0xc8   : > { %s5052_s17 = sshll.u32 %s724_s23, 3  ;;  %s5053_s4 = sshll.u32 %s6391_s27, 7 }
  0xc9   : > { %s7593_s28 = scalar_select %p6748_p2, 1, 0 }
  0xca   : > { %s7594_s30 = sld [smem:[#allocation35_spill]]  ;;  %s728_s6 = scalar_lea.vmem [#allocation2], %s5052_s17 }
  0xcb   : > { %s735_s8 = sshll.u32 %s728_s6, 4  ;;  %p6758_p5 = pnand %p5765_p0, %p60_p10  ;;  %s736_s8 = int_to_ptr.vmem [resolvable:$true] %s735_s8 }
  0xcc   : > { %s725_s10 = scalar_lea.sflag [#allocation3], %s724_s23 }
  0xcd   : > { %p6273_p4 = pneg %p6758_p5 }
  0xd0   : > { %s6756_s3 = scalar_lea.hbm %s7594_s30, %s5053_s4  ;;  %s6276_s9 = scalar_lea.hbm %s7594_s30, 256 }
  0xd1   : > { %s6271_s12 = scalar_lea.hbm %s6756_s3, 128  ;;  %p6277_p8 = scmp.lt.s32.totalorder %s6756_s3, %s7594_s30 }
  0xd2   : > { %p6272_p1 = scmp.ne.s32.totalorder %s6756_s3, %s6271_s12  ;;  %p6278_p10 = scmp.lt.s32.totalorder %s6276_s9, %s6271_s12 }
  0xd4   : > { %p6274_p7 = pnand %p6273_p4, %p6272_p1  ;;  %p6279_p11 = por %p6278_p10, %p6277_p8 }
  0xd6   : > { %p6275_p13 = pneg %p6274_p7 }
  0xd8   : > { %p6280_p12 = pnand %p6279_p11, %p6275_p13 }
  0xda   : > { %6283 = shalt.err (!%p6280_p12)
}
  0xdb   : > { %s6284_s6 = scalar_lea.vmem %s736_s8, 128  ;;  %s6410_s23 = smov [#allocation2]  }
  0xdc   : > { %p6285_p0 = scmp.ne.s32.totalorder %s736_s8, %s6284_s6  ;;  %s6289_s14 = sshll.u32 %s6410_s23, 4  ;;  %s6290_s14 = int_to_ptr.vmem [resolvable:$false] %s6289_s14 }
  0xdd   : > { %s6291_s15 = scalar_lea.vmem %s6290_s14, 256  ;;  %p6292_p1 = scmp.lt.s32.totalorder %s736_s8, %s6290_s14 }
  0xde   : > { %p6287_p2 = pnand %p6285_p0, %p6273_p4  ;;  %p6293_p7 = scmp.lt.s32.totalorder %s6291_s15, %s6284_s6 }
  0xe0   : > { %p6288_p6 = pneg %p6287_p2  ;;  %p6294_p9 = por %p6293_p7, %p6292_p1 }
  0xe2   : > { %p6295_p3 = pnand %p6294_p9, %p6288_p6 }
  0xe4   : > { %6298 = shalt.err (!%p6295_p3)
}
  0xe5   : > { %5747 = dma.hbm_to_vmem [thread:$0]  (!%p6758_p5), %s6756_s3, 128, %s736_s8, %s725_s10  }
  0xe6   : > { %p7596_p13 = scmp.ne.s32.totalorder %s7572_s0, 0 }
  0xe7   : > { %s6779_s12 = sand.u32 (!%p7596_p13), 1, %s6383_s25   ;;  %p7597_p9 = scmp.ne.s32.totalorder (!%p7596_p13), %s7591_s24, 0 }
  0xe8   : > { %758 = sbr.rel (%p7596_p13) target bundleno = 10725 (0x29e5), region = 104  ;;  %s7523_s13 = sshll.u32 (!%p7596_p13), %s6779_s12, 3 }
  0xe9   : > { %s761_s14 = scalar_lea.sflag (!%p7596_p13), [#allocation3], %s6779_s12  ;;  %s764_s15 = scalar_lea.vmem (!%p7596_p13), [#allocation2], %s7523_s13 }
  0xed   : > { %6342 = dma.done.wait (%p7597_p9), %s761_s14, 128  }
  0xee   : > { %6344 = vsyncadd (%p7597_p9), %s761_s14, 4294967168  ;;  %p7598_p3 = scmp.eq.s32.totalorder %s6561_s29, 0 }
  0xf0   : > { %6346 = dma.done.wait (%p7598_p3), [#allocation6], 64   ;;  %p7599_p6 = pmov %p7598_p3 }
  0xf1   : > { %p7600_p2 = pmov %p7598_p3 }
  0xf2   : > { %6348 = vsyncadd (%p7599_p6), [#allocation6], 4294967232 }
  0xf3   : > { %6350 = dma.done.wait (%p7600_p2), [#allocation9], 64   ;;  %p7601_p5 = pmov %p7600_p2 }
  0xf4   : > { %p7602_p4 = pmov %p7600_p2 }
  0xf5   : > { %6352 = vsyncadd (%p7601_p5), [#allocation9], 4294967232 }
  0xf6   : > { %6354 = dma.done.wait (%p7602_p4), [#allocation12], 64   ;;  %p7603_p8 = pmov %p7600_p2 }
  0xf7   : > { %p7604_p10 = pmov %p7600_p2 }
  0xf8   : > { %6356 = vsyncadd (%p7603_p8), [#allocation12], 4294967232 }
  0xf9   : > { %6358 = dma.done.wait (%p7604_p10), [#allocation15], 64   ;;  %p7605_p11 = pmov %p7600_p2 }
  0xfa   : > { %p7606_p12 = pmov %p7600_p2 }
  0xfb   : > { %6360 = vsyncadd (%p7605_p11), [#allocation15], 4294967232 }
  0xfc   : > { %6362 = dma.done.wait (%p7606_p12), [#allocation18], 1056   ;;  %p7607_p0 = pmov %p7600_p2 }
  0xfe   : > { %6364 = vsyncadd (%p7607_p0), [#allocation18], 4294966240  ;;  %p7608_p1 = pmov %p7607_p0 }
  0xff   : > { %p7609_p7 = pmov %p7607_p0 }
 0x100   : > { %6366 = dma.done.wait (%p7608_p1), [#allocation21], 48  }
 0x101   : > { %6368 = vsyncadd (%p7609_p7), [#allocation21], 4294967248  ;;  %p7610_p13 = pmov %p7607_p0 }
 0x102   : > { %p7611_p9 = pmov %p7607_p0 }
 0x103   : > { %6370 = dma.done.wait (%p7610_p13), [#allocation24], 16  }
 0x104   : > { %6372 = vsyncadd (%p7611_p9), [#allocation24], 4294967280  ;;  %vm905_vm0 = vcmask 261120   ;;  %v891_v0 = vld [vmem:[%s764_s15] sm:$0xff]  ;;  %s7612_s0 = sld [smem:[#allocation40_spill]]  ;;  %v6411_v8 = vmov 0.0   ;;  %v897_v33 = vlaneseq }
 0x105   : > { %v906_v1 = vsel %vm905_vm0, %v891_v0, 0.0  ;;  %5330 = vmatprep.subr.mxu0 %v6411_v8  ;;  %vm6412_vm1 = vmmov 0   ;;  %5346 = vmatprep.subr.mxu1 %v6411_v8  ;;  %s7613_s23 = sld [smem:[#allocation38_spill]]  ;;  %v5073_v18 = vld [vmem:[#allocation5] ss:$0 sm:$0xff]  ;;  %s7544_s14 = smov 96  }
 0x106   : > { %907 = vadd.xlane.f32.xlu0 %v906_v1  ;;  %5338 = vmatprep.mubr.msk.f32.mxu0 %vm6412_vm1, %v6411_v8  ;;  %v5074_v21 = vld [vmem:[#allocation7] ss:$0 sm:$0xff]  ;;  %s7542_s15 = smov 120   ;;  %s7546_s8 = smov 88   ;;  %vm1022_vm2 = vcmask 64512   ;;  %v6884_v34 = vshrl.u32 %v897_v33, 7 }
 0x107   : > { %5348 = vmatprep.mubr.msk.f32.mxu1 %vm6412_vm1, %v6411_v8  ;;  %s7538_s10 = smov 80   ;;  %s7534_s24 = smov 72   ;;  %v900_v35 = vand.u32 127, %v897_v33  ;;  %v6420_v36 = vmov -1e+30   ;;  %vm1693_vm4 = vcmask 130048  }
 0x108   : > { %s7540_s3 = smov 112   ;;  %s7536_s1 = smov 104   ;;  %vm1695_vm5 = vcmask 195584   ;;  %vm2739_vm7 = vcmask 523264  }
 0x109   : > { %vm901_vm3 = vcmp.le.s32.totalorder %v900_v35, %v6884_v34  ;;  %s7527_s4 = smov 64   ;;  %s7526_s22 = smov 48  }
 0x10a   : > { %v937_v7 = vld [vmem:[%s7612_s0 + $0x18] sm:$0xff]  ;;  %v936_v9 = vld [vmem:[%s7612_s0 + $0x10] sm:$0xff]  ;;  %v935_v10 = vld [vmem:[%s7612_s0 + $0x8] sm:$0xff]  ;;  %v6888_v37 = vsel %vm901_vm3, 0.0, %v6420_v36  ;;  %s7525_s9 = smov 40   ;;  %s7524_s17 = smov 56  }
 0x10b   : > { %5331 = vmatpush3.msra.mxu0 %v937_v7  ;;  %v934_v11 = vld [vmem:[%s7612_s0] sm:$0xff]  ;;  %s7532_s6 = smov 8   ;;  %s7530_s13 = smov 16  }
 0x10c   : > { %5332 = vmatprep.subr.mxu0 %v6411_v8  ;;  %v5072_v16 = vld [vmem:[%s7613_s23] ss:$0 sm:$0xff]  ;;  %p883_p3 = scmp.lt.s32.totalorder %s6561_s29, 1  ;;  %s7626_s16 = smov 96  }
 0x10d   : > { %5333 = vmatpush3.msra.mxu0 %v936_v9  ;;  %s7627_s18 = smov 120   ;;  %s7628_s19 = smov 64  }
 0x10e   : > { %5334 = vmatprep.subr.mxu0 %v6411_v8  ;;  %s7629_s20 = smov 48   ;;  %p7634_p2 = scmp.ne.s32.totalorder %s7592_s21, 0 }
 0x10f   : > { %5335 = vmatpush3.msra.mxu0 %v935_v10 }
 0x110   : > { %5336 = vmatprep.subr.mxu0 %v6411_v8 }
 0x111   : > { %5337 = vmatpush3.msra.mxu0 %v934_v11 }
 0x112   : > { %5341 = vmatprep.subr.mxu0 %v6411_v8 }
 0x18f   : > { %v908_v2 = vpop.xlane.xlu0 %907 }
 0x190   : > { %v910_v3 = vmul.f32 0.03125, %v908_v2 }
 0x192   : > { %v911_v4 = vsub.f32 %v891_v0, %v910_v3 }
 0x194   : > { %v912_v5 = vmul.f32 %v911_v4, %v911_v4 }
 0x196   : > { %v913_v6 = vsel %vm905_vm0, %v912_v5, 0.0 }
 0x197   : > { %914 = vadd.xlane.f32.xlu0 %v913_v6 }
 0x220   : > { %v915_v12 = vpop.xlane.xlu0 %914 }
 0x221   : > { %v916_v13 = vmul.f32 0.03125, %v915_v12 }
 0x223   : > { %v917_v14 = vadd.f32 1e-05, %v916_v13 }
 0x225   : > { %5847 = vrsqrt.f32 %v917_v14 }
 0x232   : > { %v5848_v15 = vpop.eup %5847 }
 0x233   : > { %v919_v17 = vmul.f32 %v5848_v15, %v911_v4 }
 0x235   : > { %v926_v19 = vmul.f32 %v5072_v16, %v919_v17 }
 0x237   : > { %v6844_v20 = vadd.f32 %v5073_v18, %v926_v19 }
 0x239   : > { %5339 = vmatmul.mubr.msk.f32.vlgmr.msra.gmra.mxu0 %vm905_vm0, %v6844_v20 }
 0x23a   : > { %5343 = vmatprep.mubr.msk.f32.mxu0 %vm6412_vm1, %v6411_v8 }
 0x2f9   : > { %v1014_v22 = vpop.f32.mrf.mxu0 }
 0x2fa   : > { %v6850_v23 = vadd.f32 %v5074_v21, %v1014_v22 }
 0x2fb   : > { %v5340_v24 = vpop.f32.mrf.mxu0 }
 0x2fc   : > { %1020 = vrot.lane.b32.xlu1 %v6850_v23, %s7544_s14  ;;  %v1018_v25 = vmul.f32 0.35355338, %v6850_v23 }
 0x2fe   : > { %1185 = vrot.lane.b32.xlu0 %v1018_v25, %s7542_s15 }
 0x300   : > { %1187 = vrot.lane.b32.xlu1 %v6850_v23, %s7546_s8 }
 0x304   : > { %1352 = vrot.lane.b32.xlu1 %v6850_v23, %s7538_s10  ;;  %s7623_s10 = smov 24  }
 0x308   : > { %1517 = vrot.lane.b32.xlu1 %v6850_v23, %s7534_s24  ;;  %s7622_s24 = smov 16  }
 0x30c   : > { %1350 = vrot.lane.b32.xlu1 %v1018_v25, %s7540_s3  ;;  %s7615_s3 = sld [smem:[#allocation44_spill]] }
 0x310   : > { %1515 = vrot.lane.b32.xlu1 %v1018_v25, %s7536_s1 }
 0x36e   : > { %v1021_v26 = vpop.permute.xlu1 %1020 }
 0x36f   : > { %5342 = vmatpush3.xpose.msk.msra.mxu0 %vm1022_vm2, %v1021_v26 }
 0x370   : > { %5351 = vmatprep.subr.mxu0 %v6411_v8  ;;  %v1186_v28 = vpop.permute.xlu0 %1185 }
 0x372   : > { %v1188_v27 = vpop.permute.xlu1 %1187  ;;  %5344 = vmatmul.mubr.msk.f32.vlgmr.msra.gmra.mxu0 %vm1022_vm2, %v1018_v25 }
 0x373   : > { %5352 = vmatpush3.xpose.msk.msra.mxu0 %vm1022_vm2, %v1188_v27  ;;  %5353 = vmatprep.mubr.msk.f32.mxu0 %vm6412_vm1, %v6411_v8 }
 0x374   : > { %5361 = vmatprep.subr.mxu0 %v6411_v8 }
 0x376   : > { %v1353_v29 = vpop.permute.xlu1 %1352  ;;  %5354 = vmatmul.mubr.msk.f32.vlgmr.msra.gmra.mxu0 %vm1022_vm2, %v1186_v28 }
 0x377   : > { %5362 = vmatpush3.xpose.msk.msra.mxu0 %vm1022_vm2, %v1353_v29  ;;  %5363 = vmatprep.mubr.msk.f32.mxu0 %vm6412_vm1, %v6411_v8 }
 0x378   : > { %5371 = vmatprep.subr.mxu0 %v6411_v8 }
 0x37a   : > { %v1518_v30 = vpop.permute.xlu1 %1517 }
 0x37e   : > { %v1351_v31 = vpop.permute.xlu1 %1350 }
 0x37f   : > { %5364 = vmatmul.mubr.msk.f32.vlgmr.msra.gmra.mxu0 %vm1022_vm2, %v1351_v31 }
 0x380   : > { %5372 = vmatpush3.xpose.msk.msra.mxu0 %vm1022_vm2, %v1518_v30  ;;  %5373 = vmatprep.mubr.msk.f32.mxu0 %vm6412_vm1, %v6411_v8 }
 0x381   : > { %5381 = vmatprep.subr.mxu0 %v6411_v8 }
 0x382   : > { %v1516_v32 = vpop.permute.xlu1 %1515 }
 0x383   : > { %5374 = vmatmul.mubr.msk.f32.vlgmr.msra.gmra.mxu0 %vm1022_vm2, %v1516_v32 }
 0x384   : > { %5389 = vmatprep.mubr.msk.f32.mxu0 %vm6412_vm1, %v6411_v8 }
 0x432   : > { %v1094_v38 = vpop.f32.mrf.mxu0 }
 0x433   : > { %v1095_v39 = vadd.f32 %v1094_v38, %v6888_v37 }
 0x434   : > { %v5345_v40 = vpop.f32.mrf.mxu0 }
 0x435   : > { %v1098_v41 = vsel %vm1022_vm2, %v1095_v39, -inf }
 0x436   : > { %1099 = vmax.xlane.f32.xlu1 %v1098_v41  ;;  %v1259_v42 = vpop.f32.mrf.mxu0 }
 0x437   : > { %v1260_v43 = vadd.f32 %v1259_v42, %v6888_v37 }
 0x438   : > { %v5355_v44 = vpop.f32.mrf.mxu0 }
 0x439   : > { %v1263_v45 = vsel %vm1022_vm2, %v1260_v43, -inf }
 0x43a   : > { %1264 = vmax.xlane.f32.xlu0 %v1263_v45 }
 0x43f   : > { %v1424_v46 = vpop.f32.mrf.mxu0 }
 0x440   : > { %v1425_v47 = vadd.f32 %v1424_v46, %v6888_v37 }
 0x441   : > { %v5365_v48 = vpop.f32.mrf.mxu0 }
 0x442   : > { %v1428_v49 = vsel %vm1022_vm2, %v1425_v47, -inf }
 0x443   : > { %1429 = vmax.xlane.f32.xlu1 %v1428_v49  ;;  %v1589_v50 = vpop.f32.mrf.mxu0 }
 0x444   : > { %v1590_v51 = vadd.f32 %v1589_v50, %v6888_v37 }
 0x445   : > { %v5375_v52 = vpop.f32.mrf.mxu0 }
 0x446   : > { %v1593_v53 = vsel %vm1022_vm2, %v1590_v51, -inf  ;;  %v1815_v52 = vld [vmem:[%s7498_s11 + $0x18] sm:$0xff] }
 0x447   : > { %1594 = vmax.xlane.f32.xlu0 %v1593_v53  ;;  %v1813_v53 = vld [vmem:[%s7498_s11 + $0x8] sm:$0xff] }
 0x454   : > { %1109 = vrot.lane.b32.xlu1 %v6850_v23, %s7527_s4  ;;  %s7614_s4 = sld [smem:[#allocation36_spill]] }
 0x4bf   : > { %v1100_v54 = vpop.xlane.xlu1 %1099 }
 0x4c0   : > { %v1101_v55 = vsub.f32 %v1095_v39, %v1100_v54  ;;  %v1812_v54 = vld [vmem:[%s7498_s11] sm:$0xff] }
 0x4c2   : > { %v1102_v56 = vmul.f32 1.442695, %v1101_v55 }
 0x4c3   : > { %v1265_v57 = vpop.xlane.xlu0 %1264 }
 0x4c4   : > { %5849 = vpow2.f32 %v1102_v56  ;;  %v1266_v58 = vsub.f32 %v1260_v43, %v1265_v57  ;;  %v1730_v57 = vld [vmem:[%s7615_s3 + $0x18] sm:$0xff] }
 0x4c5   : > { %5382 = vmatpush3.msra.mxu0 %v1730_v57 }
 0x4c6   : > { %v1267_v59 = vmul.f32 1.442695, %v1266_v58  ;;  %v1729_v58 = vld [vmem:[%s7615_s3 + $0x10] sm:$0xff]  ;;  %5383 = vmatprep.subr.mxu0 %v6411_v8 }
 0x4c7   : > { %5384 = vmatpush3.msra.mxu0 %v1729_v58 }
 0x4c8   : > { %5851 = vpow2.f32 %v1267_v59  ;;  %v1728_v59 = vld [vmem:[%s7615_s3 + $0x8] sm:$0xff]  ;;  %5385 = vmatprep.subr.mxu0 %v6411_v8 }
 0x4c9   : > { %5386 = vmatpush3.msra.mxu0 %v1728_v59 }
 0x4ca   : > { %5387 = vmatprep.subr.mxu0 %v6411_v8 }
 0x4cc   : > { %v1430_v60 = vpop.xlane.xlu1 %1429 }
 0x4cd   : > { %v1431_v61 = vsub.f32 %v1425_v47, %v1430_v60  ;;  %v1727_v60 = vld [vmem:[%s7615_s3] sm:$0xff] }
 0x4ce   : > { %5388 = vmatpush3.msra.mxu0 %v1727_v60 }
 0x4cf   : > { %v1432_v62 = vmul.f32 1.442695, %v1431_v61  ;;  %5403 = vmatprep.subr.mxu0 %v6411_v8 }
 0x4d0   : > { %v1110_v63 = vpop.permute.xlu1 %1109  ;;  %v1595_v0 = vpop.xlane.xlu0 %1594 }
 0x4d1   : > { %v5850_v1 = vpop.eup %5849  ;;  %5853 = vpow2.f32 %v1432_v62  ;;  %v1596_v2 = vsub.f32 %v1590_v51, %v1595_v0  ;;  %5347 = vmatpush3.msra.mxu1 %v1110_v63 }
 0x4d2   : > { %v1104_v3 = vsel %vm1022_vm2, %v5850_v1, 0.0  ;;  %5356 = vmatprep.subr.mxu1 %v6411_v8 }
 0x4d3   : > { %v1597_v4 = vmul.f32 1.442695, %v1596_v2  ;;  %1105 = vadd.xlane.f32.xlu1 %v1104_v3  ;;  %v5089_v3 = vld [vmem:[#allocation10] ss:$0 sm:$0xff] }
 0x4d5   : > { %v5852_v5 = vpop.eup %5851  ;;  %5855 = vpow2.f32 %v1597_v4 }
 0x4d6   : > { %v1269_v6 = vsel %vm1022_vm2, %v5852_v5, 0.0 }
 0x4d7   : > { %1270 = vadd.xlane.f32.xlu0 %v1269_v6  ;;  %v5092_v6 = vld [vmem:[#allocation13] ss:$0 sm:$0xff] }
 0x4de   : > { %v5854_v7 = vpop.eup %5853 }
 0x4df   : > { %v1434_v9 = vsel %vm1022_vm2, %v5854_v7, 0.0 }
 0x4e0   : > { %1435 = vadd.xlane.f32.xlu1 %v1434_v9 }
 0x4e2   : > { %v5856_v10 = vpop.eup %5855 }
 0x4e3   : > { %v1599_v11 = vsel %vm1022_vm2, %v5856_v10, 0.0 }
 0x4e4   : > { %1600 = vadd.xlane.f32.xlu0 %v1599_v11 }
 0x4f1   : > { %1439 = vrot.lane.b32.xlu1 %v6850_v23, %s7526_s22  ;;  %s7618_s22 = smov 80  }
 0x4f5   : > { %1604 = vrot.lane.b32.xlu1 %v6850_v23, %s7525_s9  ;;  %s7619_s9 = smov 104  }
 0x4fa   : > { %1274 = vrot.lane.b32.xlu0 %v6850_v23, %s7524_s17  ;;  %s7528_s17 = smov 24  }
 0x55c   : > { %v1106_v12 = vpop.xlane.xlu1 %1105 }
 0x55d   : > { %5857 = vrcp.f32 %v1106_v12  ;;  %v5090_v12 = vld [vmem:[#allocation11] ss:$0 sm:$0xff] }
 0x560   : > { %v1271_v13 = vpop.xlane.xlu0 %1270 }
 0x561   : > { %5859 = vrcp.f32 %v1271_v13 }
 0x569   : > { %v1436_v14 = vpop.xlane.xlu1 %1435 }
 0x56a   : > { %v5858_v15 = vpop.eup %5857  ;;  %5861 = vrcp.f32 %v1436_v14 }
 0x56b   : > { %v1108_v16 = vmul.f32 %v5858_v15, %v5850_v1  ;;  %v5088_v1 = vld [vmem:[#allocation8] ss:$0 sm:$0xff] }
 0x56d   : > { %5349 = vmatmul.mubr.msk.f32.vlgmr.msra.gmra.mxu1 %vm1022_vm2, %v1108_v16  ;;  %v1601_v17 = vpop.xlane.xlu0 %1600  ;;  %v1440_v22 = vpop.permute.xlu1 %1439 }
 0x56e   : > { %v5860_v18 = vpop.eup %5859  ;;  %5863 = vrcp.f32 %v1601_v17  ;;  %5358 = vmatprep.mubr.msk.f32.mxu1 %vm6412_vm1, %v6411_v8 }
 0x56f   : > { %v1273_v21 = vmul.f32 %v5860_v18, %v5852_v5  ;;  %v1907_v18 = vsub.s32 0, %v6884_v34 }
 0x571   : > { %v1275_v19 = vpop.permute.xlu0 %1274  ;;  %v1605_v25 = vpop.permute.xlu1 %1604 }
 0x572   : > { %5357 = vmatpush3.msra.mxu1 %v1275_v19 }
 0x573   : > { %5359 = vmatmul.mubr.msk.f32.vlgmr.msra.gmra.mxu1 %vm1022_vm2, %v1273_v21  ;;  %5366 = vmatprep.subr.mxu1 %v6411_v8 }
 0x574   : > { %5367 = vmatpush3.msra.mxu1 %v1440_v22  ;;  %5368 = vmatprep.mubr.msk.f32.mxu1 %vm6412_vm1, %v6411_v8 }
 0x575   : > { %5376 = vmatprep.subr.mxu1 %v6411_v8 }
 0x577   : > { %v5862_v23 = vpop.eup %5861 }
 0x578   : > { %v1438_v24 = vmul.f32 %v5862_v23, %v5854_v7 }
 0x57a   : > { %5369 = vmatmul.mubr.msk.f32.vlgmr.msra.gmra.mxu1 %vm1022_vm2, %v1438_v24 }
 0x57b   : > { %v5864_v26 = vpop.eup %5863  ;;  %5377 = vmatpush3.msra.mxu1 %v1605_v25  ;;  %5378 = vmatprep.mubr.msk.f32.mxu1 %vm6412_vm1, %v6411_v8 }
 0x57c   : > { %v1603_v27 = vmul.f32 %v5864_v26, %v5856_v10  ;;  %5392 = vmatprep.subr.mxu1 %v1815_v52 }
 0x57e   : > { %5379 = vmatmul.mubr.msk.f32.vlgmr.msra.gmra.mxu1 %vm1022_vm2, %v1603_v27 }
 0x57f   : > { %5393 = vmatpush3.msra.mxu1 %v1815_v52 }
 0x62d   : > { %v1181_v28 = vpop.f32.mrf.mxu1 }
 0x62f   : > { %v5350_v29 = vpop.f32.mrf.mxu1 }
 0x633   : > { %v1346_v30 = vpop.f32.mrf.mxu1 }
 0x634   : > { %1681 = vrot.lane.b32.xlu0 %v1346_v30, %s7532_s6 }
 0x635   : > { %v5360_v31 = vpop.f32.mrf.mxu1 }
 0x63a   : > { %v1511_v32 = vpop.f32.mrf.mxu1 }
 0x63b   : > { %1685 = vrot.lane.b32.xlu1 %v1511_v32, %s7530_s13  ;;  %s6940_s13 = scalar_select %p883_p3, %s6561_s29, 1 }
 0x63c   : > { %v5370_v33 = vpop.f32.mrf.mxu1 }
 0x63d   : > { %s5189_s1 = sshll.u32 %s6940_s13, 4 }
 0x63e   : > { %v1676_v35 = vpop.f32.mrf.mxu1 }
 0x63f   : > { %1689 = vrot.lane.b32.xlu0 %v1676_v35, %s7528_s17  ;;  %s887_s17 = scalar_lea.vmem %s7614_s4, %s5189_s1  ;;  %s7616_s1 = sld [smem:[#allocation37_spill]] }
 0x640   : > { %v5380_v38 = vpop.f32.mrf.mxu1  ;;  %v6952_v55 = vld [vmem:[%s887_s17] sm:$0xff]  ;;  %v6954_v56 = vld [vmem:[%s887_s17 + $0x8] sm:$0xff]  ;;  %s7620_s4 = smov 72   ;;  %s7621_s17 = smov 8  }
 0x641   : > { %5400 = vmatprep.mubr.msk.f32.mxu1 %vm905_vm0, %v6952_v55 }
 0x645   : > { %s890_s6 = scalar_lea.vmem %s7616_s1, %s6940_s13  ;;  %s7617_s13 = smov 112  }
 0x646   : > { %v894_v17 = vld [vmem:[%s890_s6] sm:$0x1]  ;;  %s7625_s1 = smov 88   ;;  %s7630_s6 = smov 40  }
 0x647   : > { %vm895_vm6 = vcmp.gt.f32.partialorder %v894_v17, 0.5 }
 0x648   : > { %v896_v19 = vsel %vm895_vm6, 0.0, %v6420_v36 }
 0x649   : > { %v7011_v21 = vrot.slane %v896_v19, %v1907_v18 }
 0x6a6   : > { %v1682_v39 = vpop.permute.xlu0 %1681 }
 0x6a7   : > { %v1692_v41 = vsel %vm1022_vm2, %v1181_v28, %v1682_v39 }
 0x6ad   : > { %v1686_v40 = vpop.permute.xlu1 %1685 }
 0x6ae   : > { %v1694_v42 = vsel %vm1693_vm4, %v1692_v41, %v1686_v40 }
 0x6b1   : > { %v1690_v43 = vpop.permute.xlu0 %1689 }
 0x6b2   : > { %v1696_v44 = vsel %vm1695_vm5, %v1694_v42, %v1690_v43 }
 0x6b3   : > { %v1697_v45 = vadd.f32 %v1696_v44, %v6844_v20  ;;  %v1814_v20 = vld [vmem:[%s7498_s11 + $0x10] sm:$0xff] }
 0x6b4   : > { %5394 = vmatprep.subr.mxu1 %v1814_v20 }
 0x6b5   : > { %v1700_v46 = vsel %vm905_vm0, %v1697_v45, 0.0  ;;  %5395 = vmatpush3.msra.mxu1 %v1814_v20 }
 0x6b6   : > { %1701 = vadd.xlane.f32.xlu1 %v1700_v46  ;;  %5396 = vmatprep.subr.mxu1 %v1813_v53 }
 0x6b7   : > { %5397 = vmatpush3.msra.mxu1 %v1813_v53 }
 0x6b8   : > { %5398 = vmatprep.subr.mxu1 %v1812_v54 }
 0x6b9   : > { %5399 = vmatpush3.msra.mxu1 %v1812_v54 }
 0x6ba   : > { %5401 = vmatmul.mubr.msk.f32.vlgmr.msra.gmra.mxu1 %vm905_vm0, %v6954_v56  ;;  %5410 = vmatprep.subr.mxu1 %v6411_v8 }
 0x6bb   : > { %5414 = vmatprep.mubr.msk.f32.mxu1 %vm6412_vm1, %v6411_v8 }
 0x73f   : > { %v1702_v47 = vpop.xlane.xlu1 %1701 }
 0x740   : > { %v1703_v48 = vmul.f32 0.03125, %v1702_v47 }
 0x742   : > { %v1704_v49 = vsub.f32 %v1697_v45, %v1703_v48 }
 0x744   : > { %v1705_v50 = vmul.f32 %v1704_v49, %v1704_v49 }
 0x746   : > { %v1706_v51 = vsel %vm905_vm0, %v1705_v50, 0.0 }
 0x747   : > { %1707 = vadd.xlane.f32.xlu0 %v1706_v51 }
 0x77a   : > { %v5402_v7 = vpop.f32.mrf.mxu1 }
 0x77b   : > { %v6985_v9 = vadd.f32 %v5402_v7, %v5092_v6 }
 0x77c   : > { %v1895_v10 = vpop.f32.mrf.mxu1 }
 0x77d   : > { %v6987_v11 = vadd.f32 %v5092_v6, %v1895_v10 }
 0x77f   : > { %2000 = vrot.lane.b32.xlu1 %v6987_v11, %s7544_s14 }
 0x783   : > { %2083 = vrot.lane.b32.xlu1 %v6985_v9, %s7542_s15 }
 0x7d0   : > { %v1708_v61 = vpop.xlane.xlu0 %1707 }
 0x7d1   : > { %v1709_v62 = vmul.f32 0.03125, %v1708_v61 }
 0x7d3   : > { %v1710_v63 = vadd.f32 1e-05, %v1709_v62 }
 0x7d5   : > { %5865 = vrsqrt.f32 %v1710_v63 }
 0x7e2   : > { %v5866_v0 = vpop.eup %5865 }
 0x7e3   : > { %v1712_v2 = vmul.f32 %v5866_v0, %v1704_v49 }
 0x7e5   : > { %v1719_v4 = vmul.f32 %v5088_v1, %v1712_v2 }
 0x7e7   : > { %v6979_v5 = vadd.f32 %v5089_v3, %v1719_v4 }
 0x7e9   : > { %5390 = vmatmul.mubr.msk.f32.vlgmr.msra.gmra.mxu0 %vm905_vm0, %v6979_v5 }
 0x7ea   : > { %5407 = vmatprep.mubr.msk.f32.mxu0 %vm6412_vm1, %v6411_v8  ;;  %5404 = vmatpush3.xpose.msk.msra.mxu0 %vm1022_vm2, %v6985_v9 }
 0x7eb   : > { %5405 = vmatprep.subr.mxu0 %v6411_v8 }
 0x7ee   : > { %5406 = vmatpush3.xpose.msk.msra.mxu0 %vm1022_vm2, %v6987_v11 }
 0x7ef   : > { %5424 = vmatprep.subr.mxu0 %v6411_v8 }
 0x7f1   : > { %v2001_v36 = vpop.permute.xlu1 %2000 }
 0x7f5   : > { %v2084_v31 = vpop.permute.xlu1 %2083 }
 0x8a9   : > { %v1807_v13 = vpop.f32.mrf.mxu0 }
 0x8aa   : > { %v1808_v14 = vadd.f32 %v5090_v12, %v1807_v13 }
 0x8ab   : > { %v5391_v15 = vpop.f32.mrf.mxu0 }
 0x8ac   : > { %v6999_v16 = vmul.f32 0.35355338, %v1808_v14 }
 0x8ae   : > { %5408 = vmatmul.mubr.msk.f32.vlgmr.msra.gmra.mxu0 %vm1022_vm2, %v6999_v16 }
 0x8af   : > { %5428 = vmatprep.mubr.msk.f32.mxu0 %vm6412_vm1, %v6411_v8 }
 0x96e   : > { %v1985_v22 = vpop.f32.mrf.mxu0 }
 0x96f   : > { %v1986_v23 = vadd.f32 %v1985_v22, %v7011_v21 }
 0x970   : > { %v5409_v24 = vpop.f32.mrf.mxu0 }
 0x971   : > { %v1989_v25 = vsel %vm1693_vm4, %v1986_v23, -inf }
 0x972   : > { %1990 = vmax.xlane.f32.xlu0 %v1989_v25 }
 0x988   : > { %2002 = vrot.lane.b32.xlu0 %v6985_v9, %s7544_s14  ;;  %s7631_s14 = smov 56  }
 0x98c   : > { %2081 = vrot.lane.b32.xlu0 %v6987_v11, %s7542_s15 }
 0x9fb   : > { %v1991_v26 = vpop.xlane.xlu0 %1990 }
 0x9fc   : > { %v1992_v27 = vsub.f32 %v1986_v23, %v1991_v26 }
 0x9fe   : > { %v1993_v34 = vmul.f32 1.442695, %v1992_v27 }
 0x9ff   : > { %v2003_v28 = vpop.permute.xlu0 %2002 }
 0xa00   : > { %5867 = vpow2.f32 %v1993_v34  ;;  %5411 = vmatpush3.msra.mxu1 %v2003_v28 }
 0xa01   : > { %5412 = vmatprep.subr.mxu1 %v6411_v8 }
 0xa02   : > { %5413 = vmatpush3.msra.mxu1 %v2001_v36 }
 0xa03   : > { %5417 = vmatprep.subr.mxu1 %v6411_v8  ;;  %v2082_v38 = vpop.permute.xlu0 %2081 }
 0xa0d   : > { %v5868_v29 = vpop.eup %5867 }
 0xa0e   : > { %v1995_v30 = vsel %vm1693_vm4, %v5868_v29, 0.0 }
 0xa0f   : > { %1996 = vadd.xlane.f32.xlu1 %v1995_v30 }
 0xa20   : > { %2079 = vrot.lane.b32.xlu1 %v6999_v16, %s7542_s15  ;;  %s7624_s15 = sld [smem:[#allocation51_spill]] }
 0xa24   : > { %2172 = vrot.lane.b32.xlu1 %v6987_v11, %s7546_s8 }
 0xa98   : > { %v1997_v32 = vpop.xlane.xlu1 %1996 }
 0xa99   : > { %5869 = vrcp.f32 %v1997_v32 }
 0xa9c   : > { %v2080_v39 = vpop.permute.xlu1 %2079 }
 0xaa0   : > { %v2173_v50 = vpop.permute.xlu1 %2172 }
 0xaa6   : > { %v5870_v33 = vpop.eup %5869 }
 0xaa7   : > { %v1999_v35 = vmul.f32 %v5870_v33, %v5868_v29 }
 0xaa9   : > { %5415 = vmatmul.mubr.msk.f32.vlgmr.msra.gmra.mxu1 %vm1693_vm4, %v1999_v35 }
 0xaaa   : > { %5418 = vmatpush3.xpose.msk.msra.mxu1 %vm1022_vm2, %v2084_v31  ;;  %5421 = vmatprep.mubr.msk.f32.mxu1 %vm6412_vm1, %v6411_v8 }
 0xaab   : > { %5419 = vmatprep.subr.mxu1 %v6411_v8 }
 0xaae   : > { %5420 = vmatpush3.xpose.msk.msra.mxu1 %vm1022_vm2, %v2082_v38 }
 0xaaf   : > { %5438 = vmatprep.subr.mxu1 %v6411_v8 }
 0xab1   : > { %5422 = vmatmul.mubr.msk.f32.vlgmr.msra.gmra.mxu1 %vm1022_vm2, %v2080_v39 }
 0xab2   : > { %5442 = vmatprep.mubr.msk.f32.mxu1 %vm6412_vm1, %v6411_v8 }
 0xb69   : > { %v7036_v40 = vpop.f32.mrf.mxu1 }
 0xb6b   : > { %v5416_v41 = vpop.f32.mrf.mxu1 }
 0xb71   : > { %v2157_v42 = vpop.f32.mrf.mxu1 }
 0xb72   : > { %v2158_v43 = vadd.f32 %v2157_v42, %v7011_v21 }
 0xb73   : > { %v5423_v44 = vpop.f32.mrf.mxu1 }
 0xb74   : > { %v2161_v45 = vsel %vm1693_vm4, %v2158_v43, -inf }
 0xb75   : > { %2162 = vmax.xlane.f32.xlu0 %v2161_v45 }
 0xb8b   : > { %2174 = vrot.lane.b32.xlu0 %v6985_v9, %s7546_s8 }
 0xb8f   : > { %2255 = vrot.lane.b32.xlu0 %v6985_v9, %s7617_s13 }
 0xb93   : > { %2251 = vrot.lane.b32.xlu0 %v6999_v16, %s7617_s13 }
 0xbfe   : > { %v2163_v46 = vpop.xlane.xlu0 %2162 }
 0xbff   : > { %v2164_v47 = vsub.f32 %v2158_v43, %v2163_v46 }
 0xc01   : > { %v2165_v48 = vmul.f32 1.442695, %v2164_v47 }
 0xc02   : > { %v2175_v49 = vpop.permute.xlu0 %2174 }
 0xc03   : > { %5871 = vpow2.f32 %v2165_v48  ;;  %5425 = vmatpush3.msra.mxu0 %v2175_v49 }
 0xc04   : > { %5426 = vmatprep.subr.mxu0 %v6411_v8 }
 0xc05   : > { %5427 = vmatpush3.msra.mxu0 %v2173_v50 }
 0xc06   : > { %5431 = vmatprep.subr.mxu0 %v6411_v8  ;;  %v2256_v57 = vpop.permute.xlu0 %2255 }
 0xc0a   : > { %v2252_v59 = vpop.permute.xlu0 %2251 }
 0xc10   : > { %v5872_v51 = vpop.eup %5871 }
 0xc11   : > { %v2167_v52 = vsel %vm1693_vm4, %v5872_v51, 0.0 }
 0xc12   : > { %2168 = vadd.xlane.f32.xlu1 %v2167_v52  ;;  %v2643_v52 = vld [vmem:[#allocation17 + $0x18] sm:$0xff] }
 0xc23   : > { %2253 = vrot.lane.b32.xlu1 %v6987_v11, %s7617_s13 }
 0xc9b   : > { %v2169_v20 = vpop.xlane.xlu1 %2168 }
 0xc9c   : > { %5873 = vrcp.f32 %v2169_v20  ;;  %v2641_v20 = vld [vmem:[#allocation17 + $0x8] sm:$0xff] }
 0xc9f   : > { %v2254_v58 = vpop.permute.xlu1 %2253 }
 0xca9   : > { %v5874_v53 = vpop.eup %5873 }
 0xcaa   : > { %v2171_v54 = vmul.f32 %v5874_v53, %v5872_v51  ;;  %v2731_v53 = vld [vmem:[%s7624_s15 + $0x38] sm:$0xff] }
 0xcac   : > { %5429 = vmatmul.mubr.msk.f32.vlgmr.msra.gmra.mxu0 %vm1693_vm4, %v2171_v54  ;;  %v2730_v54 = vld [vmem:[%s7624_s15 + $0x30] sm:$0xff] }
 0xcad   : > { %5432 = vmatpush3.xpose.msk.msra.mxu0 %vm1022_vm2, %v2256_v57  ;;  %5435 = vmatprep.mubr.msk.f32.mxu0 %vm6412_vm1, %v6411_v8  ;;  %v2729_v57 = vld [vmem:[%s7624_s15 + $0x28] sm:$0xff] }
 0xcae   : > { %5433 = vmatprep.subr.mxu0 %v6411_v8 }
 0xcb1   : > { %5434 = vmatpush3.xpose.msk.msra.mxu0 %vm1022_vm2, %v2254_v58  ;;  %v2728_v58 = vld [vmem:[%s7624_s15 + $0x20] sm:$0xff] }
 0xcb2   : > { %5452 = vmatprep.subr.mxu0 %v6411_v8 }
 0xcb4   : > { %5436 = vmatmul.mubr.msk.f32.vlgmr.msra.gmra.mxu0 %vm1022_vm2, %v2252_v59  ;;  %v2727_v59 = vld [vmem:[%s7624_s15 + $0x18] sm:$0xff] }
 0xcb5   : > { %5456 = vmatprep.mubr.msk.f32.mxu0 %vm6412_vm1, %v6411_v8 }
 0xd6c   : > { %v2247_v60 = vpop.f32.mrf.mxu0 }
 0xd6e   : > { %v5430_v61 = vpop.f32.mrf.mxu0 }
 0xd74   : > { %v2329_v62 = vpop.f32.mrf.mxu0 }
 0xd75   : > { %v2330_v63 = vadd.f32 %v2329_v62, %v7011_v21 }
 0xd76   : > { %v5437_v0 = vpop.f32.mrf.mxu0 }
 0xd77   : > { %v2333_v1 = vsel %vm1693_vm4, %v2330_v63, -inf }
 0xd78   : > { %2334 = vmax.xlane.f32.xlu1 %v2333_v1  ;;  %v5111_v1 = vld [vmem:[#allocation14] ss:$0 sm:$0xff] }
 0xd89   : > { %2344 = vrot.lane.b32.xlu1 %v6987_v11, %s7618_s22 }
 0xd8d   : > { %2427 = vrot.lane.b32.xlu1 %v6985_v9, %s7619_s9 }
 0xd91   : > { %2423 = vrot.lane.b32.xlu1 %v6999_v16, %s7619_s9 }
 0xe01   : > { %v2335_v2 = vpop.xlane.xlu1 %2334 }
 0xe02   : > { %v2336_v3 = vsub.f32 %v2330_v63, %v2335_v2 }
 0xe04   : > { %v2337_v4 = vmul.f32 1.442695, %v2336_v3  ;;  %v5112_v3 = vld [vmem:[#allocation16] ss:$0 sm:$0xff] }
 0xe05   : > { %v2345_v13 = vpop.permute.xlu1 %2344 }
 0xe06   : > { %5875 = vpow2.f32 %v2337_v4 }
 0xe09   : > { %v2428_v16 = vpop.permute.xlu1 %2427 }
 0xe0d   : > { %v2424_v18 = vpop.permute.xlu1 %2423 }
 0xe13   : > { %v5876_v6 = vpop.eup %5875 }
 0xe14   : > { %v2339_v7 = vsel %vm1693_vm4, %v5876_v6, 0.0 }
 0xe15   : > { %2340 = vadd.xlane.f32.xlu0 %v2339_v7  ;;  %v2725_v7 = vld [vmem:[%s7624_s15 + $0x8] sm:$0xff] }
 0xe2b   : > { %2346 = vrot.lane.b32.xlu0 %v6985_v9, %s7618_s22 }
 0xe2f   : > { %2425 = vrot.lane.b32.xlu0 %v6987_v11, %s7619_s9 }
 0xe9e   : > { %v2341_v10 = vpop.xlane.xlu0 %2340 }
 0xe9f   : > { %5877 = vrcp.f32 %v2341_v10  ;;  %v2724_v10 = vld [vmem:[%s7624_s15] sm:$0xff] }
 0xea2   : > { %v2347_v12 = vpop.permute.xlu0 %2346 }
 0xea3   : > { %5439 = vmatpush3.msra.mxu1 %v2347_v12  ;;  %v5113_v12 = vld [vmem:[#allocation19] ss:$0 sm:$0xff] }
 0xea4   : > { %5440 = vmatprep.subr.mxu1 %v6411_v8 }
 0xea5   : > { %5441 = vmatpush3.msra.mxu1 %v2345_v13 }
 0xea6   : > { %5445 = vmatprep.subr.mxu1 %v6411_v8  ;;  %v2426_v17 = vpop.permute.xlu0 %2425 }
 0xeac   : > { %v5878_v14 = vpop.eup %5877 }
 0xead   : > { %v2343_v15 = vmul.f32 %v5878_v14, %v5876_v6 }
 0xeaf   : > { %5443 = vmatmul.mubr.msk.f32.vlgmr.msra.gmra.mxu1 %vm1693_vm4, %v2343_v15 }
 0xeb0   : > { %5446 = vmatpush3.xpose.msk.msra.mxu1 %vm1022_vm2, %v2428_v16  ;;  %5449 = vmatprep.mubr.msk.f32.mxu1 %vm6412_vm1, %v6411_v8  ;;  %v5115_v16 = vld [vmem:[#allocation20] ss:$0 sm:$0xff] }
 0xeb1   : > { %5447 = vmatprep.subr.mxu1 %v6411_v8 }
 0xeb4   : > { %5448 = vmatpush3.xpose.msk.msra.mxu1 %vm1022_vm2, %v2426_v17 }
 0xeb5   : > { %5470 = vmatprep.subr.mxu1 %v6411_v8 }
 0xeb7   : > { %5450 = vmatmul.mubr.msk.f32.vlgmr.msra.gmra.mxu1 %vm1022_vm2, %v2424_v18 }
 0xeb8   : > { %5486 = vmatprep.mubr.msk.f32.mxu1 %vm6412_vm1, %v6411_v8  ;;  %5471 = vmatpush3.msra.mxu1 %v2731_v53  ;;  %v5122_v53 = vld [vmem:[%s7612_s0 + $0x30] sm:$0xff] }
 0xeb9   : > { %5472 = vmatprep.subr.mxu1 %v6411_v8 }
 0xeba   : > { %5473 = vmatpush3.msra.mxu1 %v2730_v54  ;;  %v5121_v54 = vld [vmem:[%s7612_s0 + $0x28] sm:$0xff] }
 0xebb   : > { %5474 = vmatprep.subr.mxu1 %v6411_v8 }
 0xebc   : > { %5475 = vmatpush3.msra.mxu1 %v2729_v57  ;;  %v5120_v57 = vld [vmem:[%s7612_s0 + $0x20] sm:$0xff] }
 0xebd   : > { %5476 = vmatprep.subr.mxu1 %v6411_v8 }
 0xebe   : > { %5477 = vmatpush3.msra.mxu1 %v2728_v58 }
 0xebf   : > { %5478 = vmatprep.subr.mxu1 %v6411_v8 }
 0xec0   : > { %5479 = vmatpush3.msra.mxu1 %v2727_v59 }
 0xec1   : > { %5480 = vmatprep.subr.mxu1 %v6411_v8 }
 0xf6f   : > { %v2419_v19 = vpop.f32.mrf.mxu1 }
 0xf71   : > { %v5444_v22 = vpop.f32.mrf.mxu1 }
 0xf77   : > { %v2501_v23 = vpop.f32.mrf.mxu1 }
 0xf78   : > { %v2502_v24 = vadd.f32 %v2501_v23, %v7011_v21 }
 0xf79   : > { %v5451_v25 = vpop.f32.mrf.mxu1 }
 0xf7a   : > { %v2505_v26 = vsel %vm1693_vm4, %v2502_v24, -inf }
 0xf7b   : > { %2506 = vmax.xlane.f32.xlu0 %v2505_v26 }
 0xf91   : > { %2518 = vrot.lane.b32.xlu0 %v6985_v9, %s7620_s4 }
 0xf95   : > { %2596 = vrot.lane.b32.xlu0 %v2247_v60, %s7621_s17  ;;  %v2726_v60 = vld [vmem:[%s7624_s15 + $0x10] sm:$0xff] }
 0xf96   : > { %5481 = vmatpush3.msra.mxu1 %v2726_v60 }
 0xf97   : > { %5482 = vmatprep.subr.mxu1 %v6411_v8 }
 0xf98   : > { %5483 = vmatpush3.msra.mxu1 %v2725_v7 }
 0xf99   : > { %5484 = vmatprep.subr.mxu1 %v6411_v8 }
 0xf9a   : > { %5485 = vmatpush3.msra.mxu1 %v2724_v10 }
 0xf9b   : > { %5505 = vmatprep.subr.mxu1 %v6411_v8 }
0x1004   : > { %v2507_v27 = vpop.xlane.xlu0 %2506 }
0x1005   : > { %v2508_v34 = vsub.f32 %v2502_v24, %v2507_v27 }
0x1007   : > { %v2509_v28 = vmul.f32 1.442695, %v2508_v34 }
0x1008   : > { %v2519_v36 = vpop.permute.xlu0 %2518 }
0x1009   : > { %5879 = vpow2.f32 %v2509_v28  ;;  %5453 = vmatpush3.msra.mxu0 %v2519_v36 }
0x100a   : > { %5454 = vmatprep.subr.mxu0 %v6411_v8 }
0x1016   : > { %v5880_v29 = vpop.eup %5879 }
0x1017   : > { %v2511_v30 = vsel %vm1693_vm4, %v5880_v29, 0.0 }
0x1018   : > { %2512 = vadd.xlane.f32.xlu1 %v2511_v30 }
0x1029   : > { %2516 = vrot.lane.b32.xlu1 %v6987_v11, %s7620_s4  ;;  %v2597_v11 = vpop.permute.xlu0 %2596 }
0x102a   : > { %v2607_v41 = vsel %vm1022_vm2, %v7036_v40, %v2597_v11  ;;  %v2642_v40 = vld [vmem:[#allocation17 + $0x10] sm:$0xff] }
0x102d   : > { %2600 = vrot.lane.b32.xlu1 %v2419_v19, %s7622_s24 }
0x10a1   : > { %v2513_v9 = vpop.xlane.xlu1 %2512 }
0x10a2   : > { %5881 = vrcp.f32 %v2513_v9 }
0x10a5   : > { %v2517_v31 = vpop.permute.xlu1 %2516 }
0x10a6   : > { %5455 = vmatpush3.msra.mxu0 %v2517_v31 }
0x10a7   : > { %5459 = vmatprep.subr.mxu0 %v6411_v8 }
0x10a9   : > { %v2601_v39 = vpop.permute.xlu1 %2600 }
0x10aa   : > { %v2608_v42 = vsel %vm1693_vm4, %v2607_v41, %v2601_v39 }
0x10af   : > { %v5882_v32 = vpop.eup %5881 }
0x10b0   : > { %v2515_v33 = vmul.f32 %v5882_v32, %v5880_v29 }
0x10b2   : > { %5457 = vmatmul.mubr.msk.f32.vlgmr.msra.gmra.mxu0 %vm1693_vm4, %v2515_v33 }
0x10b3   : > { %5467 = vmatprep.mubr.msk.f32.mxu0 %vm6412_vm1, %v6411_v8  ;;  %5460 = vmatpush3.msra.mxu0 %v2643_v52 }
0x10b4   : > { %5461 = vmatprep.subr.mxu0 %v6411_v8 }
0x10b5   : > { %5462 = vmatpush3.msra.mxu0 %v2642_v40 }
0x10b6   : > { %5463 = vmatprep.subr.mxu0 %v6411_v8 }
0x10b7   : > { %5464 = vmatpush3.msra.mxu0 %v2641_v20 }
0x10b8   : > { %5465 = vmatprep.subr.mxu0 %v6411_v8 }
0x1172   : > { %v2591_v35 = vpop.f32.mrf.mxu0 }
0x1173   : > { %2604 = vrot.lane.b32.xlu0 %v2591_v35, %s7623_s10 }
0x1174   : > { %v5458_v38 = vpop.f32.mrf.mxu0 }
0x11e5   : > { %v2605_v43 = vpop.permute.xlu0 %2604 }
0x11e6   : > { %v2609_v44 = vsel %vm1695_vm5, %v2608_v42, %v2605_v43  ;;  %v6428_v42 = vmov -1.0  }
0x11e7   : > { %v2610_v45 = vadd.f32 %v2609_v44, %v6979_v5  ;;  %v2640_v5 = vld [vmem:[#allocation17] sm:$0xff] }
0x11e8   : > { %5466 = vmatpush3.msra.mxu0 %v2640_v5  ;;  %v5123_v5 = vld [vmem:[%s7612_s0 + $0x38] sm:$0xff] }
0x11e9   : > { %v2613_v46 = vsel %vm905_vm0, %v2610_v45, 0.0  ;;  %5489 = vmatprep.subr.mxu0 %v6411_v8 }
0x11ea   : > { %2614 = vadd.xlane.f32.xlu1 %v2613_v46 }
0x1273   : > { %v2615_v47 = vpop.xlane.xlu1 %2614 }
0x1274   : > { %v2616_v48 = vmul.f32 0.03125, %v2615_v47 }
0x1276   : > { %v2617_v49 = vsub.f32 %v2610_v45, %v2616_v48 }
0x1278   : > { %v2618_v50 = vmul.f32 %v2617_v49, %v2617_v49 }
0x127a   : > { %v2619_v51 = vsel %vm905_vm0, %v2618_v50, 0.0 }
0x127b   : > { %2620 = vadd.xlane.f32.xlu0 %v2619_v51 }
0x1304   : > { %v2621_v61 = vpop.xlane.xlu0 %2620 }
0x1305   : > { %v2622_v62 = vmul.f32 0.03125, %v2621_v61 }
0x1307   : > { %v2623_v63 = vadd.f32 1e-05, %v2622_v62  ;;  %v5118_v62 = vld [vmem:[%s7613_s23 + $0x1] ss:$0 sm:$0xff] }
0x1309   : > { %5883 = vrsqrt.f32 %v2623_v63 }
0x1316   : > { %v5884_v0 = vpop.eup %5883 }
0x1317   : > { %v2625_v2 = vmul.f32 %v5884_v0, %v2617_v49  ;;  %v5119_v0 = vld [vmem:[#allocation5 + $0x1] ss:$0 sm:$0xff] }
0x1319   : > { %v2632_v4 = vmul.f32 %v5111_v1, %v2625_v2 }
0x131b   : > { %v2639_v6 = vadd.f32 %v5112_v3, %v2632_v4  ;;  %v5124_v3 = vld [vmem:[#allocation7 + $0x1] ss:$0 sm:$0xff] }
0x131d   : > { %5468 = vmatmul.mubr.msk.f32.vlgmr.msra.gmra.mxu0 %vm905_vm0, %v2639_v6 }
0x131e   : > { %5497 = vmatprep.mubr.msk.f32.mxu0 %vm6412_vm1, %v6411_v8  ;;  %5490 = vmatpush3.msra.mxu0 %v5123_v5 }
0x131f   : > { %5491 = vmatprep.subr.mxu0 %v6411_v8 }
0x1320   : > { %5492 = vmatpush3.msra.mxu0 %v5122_v53 }
0x1321   : > { %5493 = vmatprep.subr.mxu0 %v6411_v8 }
0x1322   : > { %5494 = vmatpush3.msra.mxu0 %v5121_v54 }
0x1323   : > { %5495 = vmatprep.subr.mxu0 %v6411_v8 }
0x1324   : > { %5496 = vmatpush3.msra.mxu0 %v5120_v57 }
0x1325   : > { %5500 = vmatprep.subr.mxu0 %v6411_v8 }
0x13dd   : > { %v2720_v13 = vpop.f32.mrf.mxu0 }
0x13de   : > { %v2721_v14 = vadd.f32 %v5113_v12, %v2720_v13 }
0x13df   : > { %v5469_v15 = vpop.f32.mrf.mxu0 }
0x13e0   : > { %5487 = vmatmul.mubr.msk.f32.vlgmr.msra.gmra.mxu1 %vm2739_vm7, %v2721_v14 }
0x13e1   : > { %5507 = vmatprep.mubr.msk.f32.mxu1 %vm6412_vm1, %v6411_v8 }
0x14a0   : > { %v2809_v17 = vpop.f32.mrf.mxu1 }
0x14a1   : > { %v2810_v18 = vadd.f32 %v5115_v16, %v2809_v17 }
0x14a2   : > { %v5488_v19 = vpop.f32.mrf.mxu1 }
0x14a3   : > { %v2814_v22 = vmul.f32 0.70710677, %v2810_v18  ;;  %v2813_v45 = vmul.f32 0.5, %v2810_v18 }
0x14a5   : > { %v2817_v23 = vand.u32 2147483647, %v2814_v22  ;;  %vm2815_vm8 = vcmp.ge.f32.partialorder %v2814_v22, 0.0 }
0x14a6   : > { %v2816_v43 = vsel %vm2815_vm8, 1.0, %v6428_v42 }
0x14a7   : > { %v2818_v24 = vmul.f32 0.3275911, %v2817_v23  ;;  %v2831_v26 = vsub.f32 0.0, %v2817_v23 }
0x14a9   : > { %v2819_v25 = vadd.f32 1.0, %v2818_v24  ;;  %v2832_v27 = vmul.f32 %v2831_v26, %v2817_v23 }
0x14ab   : > { %5885 = vrcp.f32 %v2819_v25  ;;  %v2833_v36 = vmul.f32 1.442695, %v2832_v27 }
0x14ad   : > { %5887 = vpow2.f32 %v2833_v36 }
0x14b8   : > { %v5886_v34 = vpop.eup %5885 }
0x14b9   : > { %v2822_v28 = vmul.f32 1.0614054, %v5886_v34 }
0x14ba   : > { %v5888_v11 = vpop.eup %5887 }
0x14bb   : > { %v2823_v29 = vadd.f32 -1.4531521, %v2822_v28 }
0x14bd   : > { %v2824_v30 = vmul.f32 %v5886_v34, %v2823_v29 }
0x14bf   : > { %v2825_v9 = vadd.f32 1.4214138, %v2824_v30 }
0x14c1   : > { %v2826_v31 = vmul.f32 %v5886_v34, %v2825_v9 }
0x14c3   : > { %v2827_v32 = vadd.f32 -0.28449672, %v2826_v31 }
0x14c5   : > { %v2828_v33 = vmul.f32 %v5886_v34, %v2827_v32 }
0x14c7   : > { %v2829_v35 = vadd.f32 0.2548296, %v2828_v33 }
0x14c9   : > { %v2830_v38 = vmul.f32 %v5886_v34, %v2829_v35 }
0x14cb   : > { %v2835_v39 = vmul.f32 %v5888_v11, %v2830_v38 }
0x14cd   : > { %v2836_v41 = vsub.f32 1.0, %v2835_v39 }
0x14cf   : > { %v2837_v44 = vmul.f32 %v2836_v41, %v2816_v43 }
0x14d1   : > { %v2838_v46 = vadd.f32 1.0, %v2837_v44 }
0x14d3   : > { %v2839_v47 = vmul.f32 %v2838_v46, %v2813_v45 }
0x14d5   : > { %v2840_v48 = vadd.f32 %v2839_v47, %v2639_v6 }
0x14d7   : > { %v2845_v49 = vsel %vm905_vm0, %v2840_v48, 0.0 }
0x14d8   : > { %2846 = vadd.xlane.f32.xlu0 %v2845_v49 }
0x1561   : > { %v2847_v50 = vpop.xlane.xlu0 %2846 }
0x1562   : > { %v2848_v51 = vmul.f32 0.03125, %v2847_v50 }
0x1564   : > { %v2849_v52 = vsub.f32 %v2840_v48, %v2848_v51 }
0x1566   : > { %v2850_v40 = vmul.f32 %v2849_v52, %v2849_v52 }
0x1568   : > { %v2851_v20 = vsel %vm905_vm0, %v2850_v40, 0.0 }
0x1569   : > { %2852 = vadd.xlane.f32.xlu1 %v2851_v20 }
0x15f2   : > { %v2853_v58 = vpop.xlane.xlu1 %2852 }
0x15f3   : > { %v2854_v59 = vmul.f32 0.03125, %v2853_v58 }
0x15f5   : > { %v2855_v60 = vadd.f32 1e-05, %v2854_v59 }
0x15f7   : > { %5889 = vrsqrt.f32 %v2855_v60 }
0x1604   : > { %v5890_v61 = vpop.eup %5889 }
0x1605   : > { %v2857_v63 = vmul.f32 %v5890_v61, %v2849_v52 }
0x1607   : > { %v2864_v1 = vmul.f32 %v5118_v62, %v2857_v63 }
0x1609   : > { %v7172_v2 = vadd.f32 %v5119_v0, %v2864_v1 }
0x160b   : > { %5498 = vmatmul.mubr.msk.f32.vlgmr.msra.gmra.mxu0 %vm905_vm0, %v7172_v2 }
0x160c   : > { %5502 = vmatprep.mubr.msk.f32.mxu0 %vm6412_vm1, %v6411_v8 }
0x16cb   : > { %v2954_v4 = vpop.f32.mrf.mxu0 }
0x16cc   : > { %v7178_v6 = vadd.f32 %v5124_v3, %v2954_v4 }
0x16cd   : > { %v5499_v7 = vpop.f32.mrf.mxu0 }
0x16ce   : > { %3126 = vrot.lane.b32.xlu1 %v7178_v6, %s7625_s1  ;;  %2960 = vrot.lane.b32.xlu0 %v7178_v6, %s7626_s16  ;;  %v2958_v10 = vmul.f32 0.35355338, %v7178_v6 }
0x16d2   : > { %3291 = vrot.lane.b32.xlu0 %v7178_v6, %s7618_s22  ;;  %3124 = vrot.lane.b32.xlu1 %v2958_v10, %s7627_s18 }
0x16d6   : > { %3456 = vrot.lane.b32.xlu0 %v7178_v6, %s7620_s4  ;;  %3289 = vrot.lane.b32.xlu1 %v2958_v10, %s7617_s13 }
0x16da   : > { %3454 = vrot.lane.b32.xlu1 %v2958_v10, %s7619_s9 }
0x1740   : > { %v3127_v12 = vpop.permute.xlu1 %3126  ;;  %v2961_v13 = vpop.permute.xlu0 %2960 }
0x1741   : > { %5501 = vmatpush3.xpose.msk.msra.mxu0 %vm1022_vm2, %v2961_v13 }
0x1742   : > { %5510 = vmatprep.subr.mxu0 %v6411_v8 }
0x1744   : > { %v3125_v14 = vpop.permute.xlu1 %3124  ;;  %5503 = vmatmul.mubr.msk.f32.vlgmr.msra.gmra.mxu0 %vm1022_vm2, %v2958_v10  ;;  %v3292_v15 = vpop.permute.xlu0 %3291 }
0x1745   : > { %5511 = vmatpush3.xpose.msk.msra.mxu0 %vm1022_vm2, %v3127_v12  ;;  %5512 = vmatprep.mubr.msk.f32.mxu0 %vm6412_vm1, %v6411_v8 }
0x1746   : > { %5520 = vmatprep.subr.mxu0 %v6411_v8 }
0x1748   : > { %5513 = vmatmul.mubr.msk.f32.vlgmr.msra.gmra.mxu0 %vm1022_vm2, %v3125_v14  ;;  %v3290_v16 = vpop.permute.xlu1 %3289  ;;  %v3457_v17 = vpop.permute.xlu0 %3456 }
0x1749   : > { %5521 = vmatpush3.xpose.msk.msra.mxu0 %vm1022_vm2, %v3292_v15  ;;  %5522 = vmatprep.mubr.msk.f32.mxu0 %vm6412_vm1, %v6411_v8 }
0x174a   : > { %5530 = vmatprep.subr.mxu0 %v6411_v8 }
0x174c   : > { %5523 = vmatmul.mubr.msk.f32.vlgmr.msra.gmra.mxu0 %vm1022_vm2, %v3290_v16  ;;  %v3455_v18 = vpop.permute.xlu1 %3454 }
0x174d   : > { %5531 = vmatpush3.xpose.msk.msra.mxu0 %vm1022_vm2, %v3457_v17  ;;  %5532 = vmatprep.mubr.msk.f32.mxu0 %vm6412_vm1, %v6411_v8 }
0x174e   : > { %5540 = vmatprep.subr.mxu0 %v6411_v8 }
0x1750   : > { %5533 = vmatmul.mubr.msk.f32.vlgmr.msra.gmra.mxu0 %vm1022_vm2, %v3455_v18 }
0x1751   : > { %5548 = vmatprep.mubr.msk.f32.mxu0 %vm6412_vm1, %v6411_v8 }
0x1804   : > { %v3033_v19 = vpop.f32.mrf.mxu0 }
0x1805   : > { %v3034_v22 = vadd.f32 %v3033_v19, %v6888_v37 }
0x1806   : > { %v5504_v23 = vpop.f32.mrf.mxu0 }
0x1807   : > { %v3037_v24 = vsel %vm1022_vm2, %v3034_v22, -inf }
0x1808   : > { %3038 = vmax.xlane.f32.xlu0 %v3037_v24  ;;  %v3198_v25 = vpop.f32.mrf.mxu0 }
0x1809   : > { %v3199_v26 = vadd.f32 %v3198_v25, %v6888_v37 }
0x180a   : > { %v5514_v27 = vpop.f32.mrf.mxu0 }
0x180b   : > { %v3202_v34 = vsel %vm1022_vm2, %v3199_v26, -inf }
0x180c   : > { %3203 = vmax.xlane.f32.xlu1 %v3202_v34  ;;  %v3363_v28 = vpop.f32.mrf.mxu0 }
0x180d   : > { %v3364_v36 = vadd.f32 %v3363_v28, %v6888_v37 }
0x180e   : > { %v5524_v29 = vpop.f32.mrf.mxu0 }
0x180f   : > { %v3367_v30 = vsel %vm1022_vm2, %v3364_v36, -inf }
0x1810   : > { %3368 = vmax.xlane.f32.xlu0 %v3367_v30  ;;  %v3528_v9 = vpop.f32.mrf.mxu0 }
0x1811   : > { %v3529_v31 = vadd.f32 %v3528_v9, %v6888_v37 }
0x1812   : > { %v5534_v32 = vpop.f32.mrf.mxu0 }
0x1813   : > { %v3532_v33 = vsel %vm1022_vm2, %v3529_v31, -inf  ;;  %v5149_v32 = vld [vmem:[%s7498_s11 + $0x38] sm:$0xff] }
0x1814   : > { %3533 = vmax.xlane.f32.xlu0 %v3532_v33  ;;  %v5147_v33 = vld [vmem:[%s7498_s11 + $0x28] sm:$0xff] }
0x181d   : > { %3048 = vrot.lane.b32.xlu1 %v7178_v6, %s7628_s19 }
0x1891   : > { %v3039_v35 = vpop.xlane.xlu0 %3038 }
0x1892   : > { %v3040_v38 = vsub.f32 %v3034_v22, %v3039_v35  ;;  %v5146_v35 = vld [vmem:[%s7498_s11 + $0x20] sm:$0xff] }
0x1894   : > { %v3041_v11 = vmul.f32 1.442695, %v3040_v38  ;;  %v5143_v38 = vld [vmem:[%s7615_s3 + $0x38] sm:$0xff] }
0x1895   : > { %v3204_v39 = vpop.xlane.xlu1 %3203  ;;  %5541 = vmatpush3.msra.mxu0 %v5143_v38 }
0x1896   : > { %5891 = vpow2.f32 %v3041_v11  ;;  %v3205_v41 = vsub.f32 %v3199_v26, %v3204_v39  ;;  %v5142_v11 = vld [vmem:[%s7615_s3 + $0x30] sm:$0xff]  ;;  %5542 = vmatprep.subr.mxu0 %v6411_v8  ;;  %v5140_v39 = vld [vmem:[%s7615_s3 + $0x20] sm:$0xff] }
0x1897   : > { %5543 = vmatpush3.msra.mxu0 %v5142_v11 }
0x1898   : > { %v3206_v43 = vmul.f32 1.442695, %v3205_v41  ;;  %5544 = vmatprep.subr.mxu0 %v6411_v8 }
0x1899   : > { %v3049_v44 = vpop.permute.xlu1 %3048  ;;  %v3369_v45 = vpop.xlane.xlu0 %3368 }
0x189a   : > { %5893 = vpow2.f32 %v3206_v43  ;;  %v3370_v46 = vsub.f32 %v3364_v36, %v3369_v45  ;;  %5506 = vmatpush3.msra.mxu1 %v3049_v44 }
0x189b   : > { %5515 = vmatprep.subr.mxu1 %v6411_v8 }
0x189c   : > { %v3371_v37 = vmul.f32 1.442695, %v3370_v46  ;;  %v5138_v46 = vld [vmem:[#allocation8 + $0x1] ss:$0 sm:$0xff] }
0x189d   : > { %v3534_v47 = vpop.xlane.xlu0 %3533 }
0x189e   : > { %5895 = vpow2.f32 %v3371_v37  ;;  %v3535_v48 = vsub.f32 %v3529_v31, %v3534_v47  ;;  %v5139_v47 = vld [vmem:[#allocation10 + $0x1] ss:$0 sm:$0xff] }
0x18a0   : > { %v3536_v49 = vmul.f32 1.442695, %v3535_v48 }
0x18a2   : > { %5897 = vpow2.f32 %v3536_v49 }
0x18a3   : > { %v5892_v50 = vpop.eup %5891 }
0x18a4   : > { %v3043_v51 = vsel %vm1022_vm2, %v5892_v50, 0.0 }
0x18a5   : > { %3044 = vadd.xlane.f32.xlu1 %v3043_v51 }
0x18a7   : > { %v5894_v52 = vpop.eup %5893 }
0x18a8   : > { %v3208_v40 = vsel %vm1022_vm2, %v5894_v52, 0.0 }
0x18a9   : > { %3209 = vadd.xlane.f32.xlu0 %v3208_v40 }
0x18ab   : > { %v5896_v20 = vpop.eup %5895 }
0x18ac   : > { %v3373_v5 = vsel %vm1022_vm2, %v5896_v20, 0.0 }
0x18ad   : > { %3374 = vadd.xlane.f32.xlu1 %v3373_v5  ;;  %v5144_v5 = vld [vmem:[#allocation11 + $0x1] ss:$0 sm:$0xff] }
0x18af   : > { %v5898_v53 = vpop.eup %5897 }
0x18b0   : > { %v3538_v54 = vsel %vm1022_vm2, %v5898_v53, 0.0 }
0x18b1   : > { %3539 = vadd.xlane.f32.xlu0 %v3538_v54 }
0x18be   : > { %3378 = vrot.lane.b32.xlu1 %v7178_v6, %s7629_s20 }
0x18c2   : > { %3543 = vrot.lane.b32.xlu1 %v7178_v6, %s7630_s6  ;;  %s5186_s6 = sshll.u32 %s6561_s29, 7 }
0x18c7   : > { %3213 = vrot.lane.b32.xlu0 %v7178_v6, %s7631_s14  ;;  %s7632_s14 = sshll.u32 %s6779_s12, 3 }
0x192e   : > { %v3045_v57 = vpop.xlane.xlu1 %3044 }
0x192f   : > { %5899 = vrcp.f32 %v3045_v57 }
0x1932   : > { %v3210_v58 = vpop.xlane.xlu0 %3209 }
0x1933   : > { %5901 = vrcp.f32 %v3210_v58 }
0x1936   : > { %v3375_v59 = vpop.xlane.xlu1 %3374 }
0x1937   : > { %5903 = vrcp.f32 %v3375_v59 }
0x193a   : > { %v3540_v60 = vpop.xlane.xlu0 %3539  ;;  %v3379_v1 = vpop.permute.xlu1 %3378 }
0x193b   : > { %5905 = vrcp.f32 %v3540_v60 }
0x193c   : > { %v5900_v61 = vpop.eup %5899 }
0x193d   : > { %v3047_v62 = vmul.f32 %v5900_v61, %v5892_v50  ;;  %v5150_v50 = vld [vmem:[#allocation13 + $0x1] ss:$0 sm:$0xff] }
0x193e   : > { %v3214_v63 = vpop.permute.xlu0 %3213  ;;  %v3544_v7 = vpop.permute.xlu1 %3543 }
0x193f   : > { %5508 = vmatmul.mubr.msk.f32.vlgmr.msra.gmra.mxu1 %vm1022_vm2, %v3047_v62 }
0x1940   : > { %v5902_v0 = vpop.eup %5901  ;;  %5516 = vmatpush3.msra.mxu1 %v3214_v63  ;;  %5517 = vmatprep.mubr.msk.f32.mxu1 %vm6412_vm1, %v6411_v8 }
0x1941   : > { %5525 = vmatprep.subr.mxu1 %v6411_v8  ;;  %v3212_v3 = vmul.f32 %v5902_v0, %v5894_v52 }
0x1943   : > { %5518 = vmatmul.mubr.msk.f32.vlgmr.msra.gmra.mxu1 %vm1022_vm2, %v3212_v3 }
0x1944   : > { %v5904_v4 = vpop.eup %5903  ;;  %5526 = vmatpush3.msra.mxu1 %v3379_v1  ;;  %5527 = vmatprep.mubr.msk.f32.mxu1 %vm6412_vm1, %v6411_v8 }
0x1945   : > { %5535 = vmatprep.subr.mxu1 %v6411_v8  ;;  %v3377_v6 = vmul.f32 %v5904_v4, %v5896_v20 }
0x1947   : > { %5528 = vmatmul.mubr.msk.f32.vlgmr.msra.gmra.mxu1 %vm1022_vm2, %v3377_v6 }
0x1948   : > { %v5906_v10 = vpop.eup %5905  ;;  %5536 = vmatpush3.msra.mxu1 %v3544_v7  ;;  %5537 = vmatprep.mubr.msk.f32.mxu1 %vm6412_vm1, %v6411_v8 }
0x1949   : > { %v3542_v12 = vmul.f32 %v5906_v10, %v5898_v53  ;;  %5551 = vmatprep.subr.mxu1 %v5149_v32 }
0x194b   : > { %5538 = vmatmul.mubr.msk.f32.vlgmr.msra.gmra.mxu1 %vm1022_vm2, %v3542_v12 }
0x194c   : > { %5559 = vmatprep.mubr.msk.f32.mxu1 %vm905_vm0, %v6952_v55  ;;  %5552 = vmatpush3.msra.mxu1 %v5149_v32 }
0x19ff   : > { %v3120_v13 = vpop.f32.mrf.mxu1 }
0x1a01   : > { %v5509_v14 = vpop.f32.mrf.mxu1 }
0x1a03   : > { %v3285_v15 = vpop.f32.mrf.mxu1 }
0x1a04   : > { %3620 = vrot.lane.b32.xlu0 %v3285_v15, %s7621_s17 }
0x1a05   : > { %v5519_v16 = vpop.f32.mrf.mxu1 }
0x1a07   : > { %v3450_v17 = vpop.f32.mrf.mxu1 }
0x1a08   : > { %3624 = vrot.lane.b32.xlu1 %v3450_v17, %s7622_s24 }
0x1a09   : > { %v5529_v18 = vpop.f32.mrf.mxu1 }
0x1a0b   : > { %v3615_v19 = vpop.f32.mrf.mxu1 }
0x1a0c   : > { %3628 = vrot.lane.b32.xlu0 %v3615_v19, %s7623_s10 }
0x1a0d   : > { %v5539_v22 = vpop.f32.mrf.mxu1 }
0x1a76   : > { %v3621_v23 = vpop.permute.xlu0 %3620 }
0x1a77   : > { %v3631_v25 = vsel %vm1022_vm2, %v3120_v13, %v3621_v23 }
0x1a7a   : > { %v3625_v24 = vpop.permute.xlu1 %3624 }
0x1a7b   : > { %v3632_v55 = vsel %vm1693_vm4, %v3631_v25, %v3625_v24 }
0x1a7e   : > { %v3629_v26 = vpop.permute.xlu0 %3628 }
0x1a7f   : > { %v3633_v27 = vsel %vm1695_vm5, %v3632_v55, %v3629_v26 }
0x1a80   : > { %v3634_v34 = vadd.f32 %v3633_v27, %v7172_v2  ;;  %v5148_v2 = vld [vmem:[%s7498_s11 + $0x30] sm:$0xff] }
0x1a81   : > { %5553 = vmatprep.subr.mxu1 %v5148_v2 }
0x1a82   : > { %v3639_v28 = vsel %vm905_vm0, %v3634_v34, 0.0  ;;  %5554 = vmatpush3.msra.mxu1 %v5148_v2 }
0x1a83   : > { %3640 = vadd.xlane.f32.xlu1 %v3639_v28  ;;  %5555 = vmatprep.subr.mxu1 %v5147_v33 }
0x1a84   : > { %5556 = vmatpush3.msra.mxu1 %v5147_v33 }
0x1a85   : > { %5557 = vmatprep.subr.mxu1 %v5146_v35 }
0x1a86   : > { %5558 = vmatpush3.msra.mxu1 %v5146_v35 }
0x1a87   : > { %5560 = vmatmul.mubr.msk.f32.vlgmr.msra.gmra.mxu1 %vm905_vm0, %v6954_v56  ;;  %5569 = vmatprep.subr.mxu1 %v6411_v8  ;;  %v5141_v56 = vld [vmem:[%s7615_s3 + $0x28] sm:$0xff] }
0x1a88   : > { %5573 = vmatprep.mubr.msk.f32.mxu1 %vm6412_vm1, %v6411_v8  ;;  %5545 = vmatpush3.msra.mxu0 %v5141_v56 }
0x1a89   : > { %5546 = vmatprep.subr.mxu0 %v6411_v8 }
0x1a8a   : > { %5547 = vmatpush3.msra.mxu0 %v5140_v39 }
0x1a8b   : > { %5562 = vmatprep.subr.mxu0 %v6411_v8 }
0x1b0c   : > { %v3641_v36 = vpop.xlane.xlu1 %3640 }
0x1b0d   : > { %v3642_v29 = vmul.f32 0.03125, %v3641_v36 }
0x1b0f   : > { %v3643_v30 = vsub.f32 %v3634_v34, %v3642_v29 }
0x1b11   : > { %v3644_v9 = vmul.f32 %v3643_v30, %v3643_v30 }
0x1b13   : > { %v3645_v31 = vsel %vm905_vm0, %v3644_v9, 0.0 }
0x1b14   : > { %3646 = vadd.xlane.f32.xlu0 %v3645_v31 }
0x1b47   : > { %v5561_v51 = vpop.f32.mrf.mxu1 }
0x1b48   : > { %v7295_v52 = vadd.f32 %v5561_v51, %v5150_v50 }
0x1b49   : > { %v3832_v40 = vpop.f32.mrf.mxu1 }
0x1b4a   : > { %v7297_v20 = vadd.f32 %v5150_v50, %v3832_v40 }
0x1b4c   : > { %3931 = vrot.lane.b32.xlu1 %v7297_v20, %s7626_s16 }
0x1b50   : > { %4014 = vrot.lane.b32.xlu1 %v7295_v52, %s7627_s18 }
0x1b9d   : > { %v3647_v41 = vpop.xlane.xlu0 %3646 }
0x1b9e   : > { %v3648_v43 = vmul.f32 0.03125, %v3647_v41 }
0x1ba0   : > { %v3649_v44 = vadd.f32 1e-05, %v3648_v43 }
0x1ba2   : > { %5907 = vrsqrt.f32 %v3649_v44 }
0x1baf   : > { %v5908_v45 = vpop.eup %5907 }
0x1bb0   : > { %v3651_v37 = vmul.f32 %v5908_v45, %v3643_v30 }
0x1bb2   : > { %v3658_v48 = vmul.f32 %v5138_v46, %v3651_v37 }
0x1bb4   : > { %v7289_v49 = vadd.f32 %v5139_v47, %v3658_v48 }
0x1bb6   : > { %5549 = vmatmul.mubr.msk.f32.vlgmr.msra.gmra.mxu0 %vm905_vm0, %v7289_v49 }
0x1bb7   : > { %5566 = vmatprep.mubr.msk.f32.mxu0 %vm6412_vm1, %v6411_v8  ;;  %5563 = vmatpush3.xpose.msk.msra.mxu0 %vm1022_vm2, %v7295_v52 }
0x1bb8   : > { %5564 = vmatprep.subr.mxu0 %v6411_v8 }
0x1bbb   : > { %5565 = vmatpush3.xpose.msk.msra.mxu0 %vm1022_vm2, %v7297_v20 }
0x1bbc   : > { %5583 = vmatprep.subr.mxu0 %v6411_v8 }
0x1bbe   : > { %v3932_v4 = vpop.permute.xlu1 %3931 }
0x1bc2   : > { %v4015_v10 = vpop.permute.xlu1 %4014 }
0x1c76   : > { %v3748_v53 = vpop.f32.mrf.mxu0 }
0x1c77   : > { %v3749_v54 = vadd.f32 %v5144_v5, %v3748_v53 }
0x1c78   : > { %v5550_v57 = vpop.f32.mrf.mxu0 }
0x1c79   : > { %v7309_v58 = vmul.f32 0.35355338, %v3749_v54 }
0x1c7b   : > { %5567 = vmatmul.mubr.msk.f32.vlgmr.msra.gmra.mxu0 %vm1022_vm2, %v7309_v58 }
0x1c7c   : > { %5587 = vmatprep.mubr.msk.f32.mxu0 %vm6412_vm1, %v6411_v8 }
0x1d3b   : > { %v3916_v59 = vpop.f32.mrf.mxu0 }
0x1d3c   : > { %v3917_v60 = vadd.f32 %v3916_v59, %v7011_v21 }
0x1d3d   : > { %v5568_v61 = vpop.f32.mrf.mxu0 }
0x1d3e   : > { %v3920_v62 = vsel %vm1693_vm4, %v3917_v60, -inf }
0x1d3f   : > { %3921 = vmax.xlane.f32.xlu0 %v3920_v62 }
0x1d55   : > { %3933 = vrot.lane.b32.xlu0 %v7295_v52, %s7626_s16  ;;  %s6429_s16 = smov [#allocation25]  }
0x1d56   : > { %s6303_s29 = sshll.u32 %s6429_s16, 4  ;;  %s6304_s29 = int_to_ptr.vmem [resolvable:$false] %s6303_s29 }
0x1d59   : > { %4012 = vrot.lane.b32.xlu0 %v7297_v20, %s7627_s18 }
0x1dc8   : > { %v3922_v63 = vpop.xlane.xlu0 %3921 }
0x1dc9   : > { %v3923_v0 = vsub.f32 %v3917_v60, %v3922_v63 }
0x1dcb   : > { %v3924_v1 = vmul.f32 1.442695, %v3923_v0 }
0x1dcc   : > { %v3934_v3 = vpop.permute.xlu0 %3933 }
0x1dcd   : > { %5909 = vpow2.f32 %v3924_v1  ;;  %5570 = vmatpush3.msra.mxu1 %v3934_v3 }
0x1dce   : > { %5571 = vmatprep.subr.mxu1 %v6411_v8 }
0x1dcf   : > { %5572 = vmatpush3.msra.mxu1 %v3932_v4 }
0x1dd0   : > { %5576 = vmatprep.subr.mxu1 %v6411_v8  ;;  %v4013_v15 = vpop.permute.xlu0 %4012 }
0x1dda   : > { %v5910_v6 = vpop.eup %5909 }
0x1ddb   : > { %v3926_v7 = vsel %vm1693_vm4, %v5910_v6, 0.0 }
0x1ddc   : > { %3927 = vadd.xlane.f32.xlu1 %v3926_v7 }
0x1ded   : > { %4010 = vrot.lane.b32.xlu1 %v7309_v58, %s7627_s18  ;;  %s6305_s18 = scalar_lea.vmem %s6304_s29, 256 }
0x1df1   : > { %4103 = vrot.lane.b32.xlu1 %v7297_v20, %s7625_s1 }
0x1e65   : > { %v3928_v12 = vpop.xlane.xlu1 %3927 }
0x1e66   : > { %5911 = vrcp.f32 %v3928_v12 }
0x1e69   : > { %v4011_v16 = vpop.permute.xlu1 %4010 }
0x1e6d   : > { %v4104_v34 = vpop.permute.xlu1 %4103 }
0x1e73   : > { %v5912_v13 = vpop.eup %5911 }
0x1e74   : > { %v3930_v14 = vmul.f32 %v5912_v13, %v5910_v6 }
0x1e76   : > { %5574 = vmatmul.mubr.msk.f32.vlgmr.msra.gmra.mxu1 %vm1693_vm4, %v3930_v14 }
0x1e77   : > { %5577 = vmatpush3.xpose.msk.msra.mxu1 %vm1022_vm2, %v4015_v10  ;;  %5580 = vmatprep.mubr.msk.f32.mxu1 %vm6412_vm1, %v6411_v8 }
0x1e78   : > { %5578 = vmatprep.subr.mxu1 %v6411_v8 }
0x1e7b   : > { %5579 = vmatpush3.xpose.msk.msra.mxu1 %vm1022_vm2, %v4013_v15 }
0x1e7c   : > { %5597 = vmatprep.subr.mxu1 %v6411_v8 }
0x1e7e   : > { %5581 = vmatmul.mubr.msk.f32.vlgmr.msra.gmra.mxu1 %vm1022_vm2, %v4011_v16 }
0x1e7f   : > { %5601 = vmatprep.mubr.msk.f32.mxu1 %vm6412_vm1, %v6411_v8 }
0x1f36   : > { %v7338_v17 = vpop.f32.mrf.mxu1 }
0x1f38   : > { %v5575_v18 = vpop.f32.mrf.mxu1 }
0x1f3e   : > { %v4088_v19 = vpop.f32.mrf.mxu1 }
0x1f3f   : > { %v4089_v22 = vadd.f32 %v4088_v19, %v7011_v21 }
0x1f40   : > { %v5582_v23 = vpop.f32.mrf.mxu1 }
0x1f41   : > { %v4092_v24 = vsel %vm1693_vm4, %v4089_v22, -inf }
0x1f42   : > { %4093 = vmax.xlane.f32.xlu0 %v4092_v24 }
0x1f58   : > { %4105 = vrot.lane.b32.xlu0 %v7295_v52, %s7625_s1 }
0x1f5c   : > { %4186 = vrot.lane.b32.xlu0 %v7295_v52, %s7617_s13 }
0x1f60   : > { %4182 = vrot.lane.b32.xlu0 %v7309_v58, %s7617_s13 }
0x1fcb   : > { %v4094_v25 = vpop.xlane.xlu0 %4093 }
0x1fcc   : > { %v4095_v55 = vsub.f32 %v4089_v22, %v4094_v25 }
0x1fce   : > { %v4096_v26 = vmul.f32 1.442695, %v4095_v55 }
0x1fcf   : > { %v4106_v27 = vpop.permute.xlu0 %4105 }
0x1fd0   : > { %5913 = vpow2.f32 %v4096_v26  ;;  %5584 = vmatpush3.msra.mxu0 %v4106_v27  ;;  %v4577_v27 = vld [vmem:[#allocation17 + $0x38] sm:$0xff] }
0x1fd1   : > { %5585 = vmatprep.subr.mxu0 %v6411_v8 }
0x1fd2   : > { %5586 = vmatpush3.msra.mxu0 %v4104_v34  ;;  %v4575_v34 = vld [vmem:[#allocation17 + $0x28] sm:$0xff] }
0x1fd3   : > { %5590 = vmatprep.subr.mxu0 %v6411_v8  ;;  %v4187_v31 = vpop.permute.xlu0 %4186 }
0x1fd7   : > { %v4183_v2 = vpop.permute.xlu0 %4182 }
0x1fdd   : > { %v5914_v28 = vpop.eup %5913 }
0x1fde   : > { %v4098_v36 = vsel %vm1693_vm4, %v5914_v28, 0.0 }
0x1fdf   : > { %4099 = vadd.xlane.f32.xlu1 %v4098_v36  ;;  %v5179_v36 = vld [vmem:[%s7624_s15 + $0x70] sm:$0xff] }
0x1ff0   : > { %4184 = vrot.lane.b32.xlu1 %v7297_v20, %s7617_s13  ;;  %s882_s13 = scalar_lea.vmem [#allocation25], %s7632_s14 }
0x2068   : > { %v4100_v29 = vpop.xlane.xlu1 %4099 }
0x2069   : > { %5915 = vrcp.f32 %v4100_v29  ;;  %v5178_v29 = vld [vmem:[%s7624_s15 + $0x68] sm:$0xff] }
0x206c   : > { %v4185_v32 = vpop.permute.xlu1 %4184 }
0x2076   : > { %v5916_v30 = vpop.eup %5915 }
0x2077   : > { %v4102_v9 = vmul.f32 %v5916_v30, %v5914_v28  ;;  %v5180_v28 = vld [vmem:[%s7624_s15 + $0x78] sm:$0xff]  ;;  %v5177_v30 = vld [vmem:[%s7624_s15 + $0x60] sm:$0xff] }
0x2079   : > { %5588 = vmatmul.mubr.msk.f32.vlgmr.msra.gmra.mxu0 %vm1693_vm4, %v4102_v9  ;;  %v5176_v9 = vld [vmem:[%s7624_s15 + $0x58] sm:$0xff] }
0x207a   : > { %5591 = vmatpush3.xpose.msk.msra.mxu0 %vm1022_vm2, %v4187_v31  ;;  %5594 = vmatprep.mubr.msk.f32.mxu0 %vm6412_vm1, %v6411_v8  ;;  %v5175_v31 = vld [vmem:[%s7624_s15 + $0x50] sm:$0xff] }
0x207b   : > { %5592 = vmatprep.subr.mxu0 %v6411_v8 }
0x207e   : > { %5593 = vmatpush3.xpose.msk.msra.mxu0 %vm1022_vm2, %v4185_v32 }
0x207f   : > { %5611 = vmatprep.subr.mxu0 %v6411_v8 }
0x2081   : > { %5595 = vmatmul.mubr.msk.f32.vlgmr.msra.gmra.mxu0 %vm1022_vm2, %v4183_v2 }
0x2082   : > { %5615 = vmatprep.mubr.msk.f32.mxu0 %vm6412_vm1, %v6411_v8 }
0x2139   : > { %v4178_v33 = vpop.f32.mrf.mxu0 }
0x213b   : > { %v5589_v35 = vpop.f32.mrf.mxu0 }
0x2141   : > { %v4260_v38 = vpop.f32.mrf.mxu0 }
0x2142   : > { %v4261_v11 = vadd.f32 %v4260_v38, %v7011_v21  ;;  %v5169_v38 = vld [vmem:[#allocation14 + $0x1] ss:$0 sm:$0xff] }
0x2143   : > { %v5596_v56 = vpop.f32.mrf.mxu0 }
0x2144   : > { %v4264_v39 = vsel %vm1693_vm4, %v4261_v11, -inf  ;;  %v5170_v56 = vld [vmem:[#allocation16 + $0x1] ss:$0 sm:$0xff] }
0x2145   : > { %4265 = vmax.xlane.f32.xlu1 %v4264_v39 }
0x2156   : > { %4275 = vrot.lane.b32.xlu1 %v7297_v20, %s7618_s22 }
0x215a   : > { %4358 = vrot.lane.b32.xlu1 %v7295_v52, %s7619_s9 }
0x215e   : > { %4354 = vrot.lane.b32.xlu1 %v7309_v58, %s7619_s9 }
0x21ce   : > { %v4266_v41 = vpop.xlane.xlu1 %4265 }
0x21cf   : > { %v4267_v43 = vsub.f32 %v4261_v11, %v4266_v41 }
0x21d1   : > { %v4268_v44 = vmul.f32 1.442695, %v4267_v43  ;;  %v5174_v43 = vld [vmem:[%s7624_s15 + $0x48] sm:$0xff] }
0x21d2   : > { %v4276_v48 = vpop.permute.xlu1 %4275 }
0x21d3   : > { %5917 = vpow2.f32 %v4268_v44  ;;  %v5173_v44 = vld [vmem:[%s7624_s15 + $0x40] sm:$0xff] }
0x21d6   : > { %v4359_v40 = vpop.permute.xlu1 %4358 }
0x21da   : > { %v4355_v53 = vpop.permute.xlu1 %4354 }
0x21e0   : > { %v5918_v45 = vpop.eup %5917 }
0x21e1   : > { %v4270_v46 = vsel %vm1693_vm4, %v5918_v45, 0.0 }
0x21e2   : > { %4271 = vadd.xlane.f32.xlu0 %v4270_v46 }
0x21f8   : > { %4277 = vrot.lane.b32.xlu0 %v7295_v52, %s7618_s22  ;;  %s4821_s22 = sshll.u32 %s882_s13, 4  ;;  %s4822_s22 = int_to_ptr.vmem [resolvable:$true] %s4821_s22 }
0x21f9   : > { %s6299_s1 = scalar_lea.vmem %s4822_s22, 128  ;;  %p6306_p8 = scmp.lt.s32.totalorder %s4822_s22, %s6304_s29 }
0x21fa   : > { %p6300_p6 = scmp.ne.s32.totalorder %s4822_s22, %s6299_s1  ;;  %p6307_p10 = scmp.lt.s32.totalorder %s6305_s18, %s6299_s1 }
0x21fc   : > { %4356 = vrot.lane.b32.xlu0 %v7297_v20, %s7619_s9  ;;  %p6301_p5 = pnand %p6300_p6, %p7634_p2  ;;  %p6308_p11 = por %p6307_p10, %p6306_p8 }
0x21fe   : > { %p6302_p4 = pneg %p6301_p5 }
0x2200   : > { %p6309_p12 = pnand %p6308_p11, %p6302_p4 }
0x226b   : > { %v4272_v37 = vpop.xlane.xlu0 %4271 }
0x226c   : > { %5919 = vrcp.f32 %v4272_v37 }
0x226f   : > { %v4278_v47 = vpop.permute.xlu0 %4277 }
0x2270   : > { %5598 = vmatpush3.msra.mxu1 %v4278_v47 }
0x2271   : > { %5599 = vmatprep.subr.mxu1 %v6411_v8 }
0x2272   : > { %5600 = vmatpush3.msra.mxu1 %v4276_v48  ;;  %v5181_v48 = vld [vmem:[#allocation20 + $0x1] ss:$0 sm:$0xff] }
0x2273   : > { %5604 = vmatprep.subr.mxu1 %v6411_v8  ;;  %v4357_v5 = vpop.permute.xlu0 %4356 }
0x2279   : > { %v5920_v50 = vpop.eup %5919 }
0x227a   : > { %v4274_v51 = vmul.f32 %v5920_v50, %v5918_v45  ;;  %v5171_v45 = vld [vmem:[#allocation19 + $0x1] ss:$0 sm:$0xff] }
0x227c   : > { %5602 = vmatmul.mubr.msk.f32.vlgmr.msra.gmra.mxu1 %vm1693_vm4, %v4274_v51 }
0x227d   : > { %5605 = vmatpush3.xpose.msk.msra.mxu1 %vm1022_vm2, %v4359_v40  ;;  %5608 = vmatprep.mubr.msk.f32.mxu1 %vm6412_vm1, %v6411_v8 }
0x227e   : > { %5606 = vmatprep.subr.mxu1 %v6411_v8 }
0x2281   : > { %5607 = vmatpush3.xpose.msk.msra.mxu1 %vm1022_vm2, %v4357_v5 }
0x2282   : > { %5629 = vmatprep.subr.mxu1 %v6411_v8 }
0x2284   : > { %5609 = vmatmul.mubr.msk.f32.vlgmr.msra.gmra.mxu1 %vm1022_vm2, %v4355_v53 }
0x2285   : > { %5645 = vmatprep.mubr.msk.f32.mxu1 %vm6412_vm1, %v6411_v8  ;;  %5630 = vmatpush3.msra.mxu1 %v5180_v28 }
0x2286   : > { %5631 = vmatprep.subr.mxu1 %v6411_v8 }
0x2287   : > { %5632 = vmatpush3.msra.mxu1 %v5179_v36 }
0x2288   : > { %5633 = vmatprep.subr.mxu1 %v6411_v8 }
0x2289   : > { %5634 = vmatpush3.msra.mxu1 %v5178_v29 }
0x228a   : > { %5635 = vmatprep.subr.mxu1 %v6411_v8 }
0x228b   : > { %5636 = vmatpush3.msra.mxu1 %v5177_v30 }
0x228c   : > { %5637 = vmatprep.subr.mxu1 %v6411_v8 }
0x228d   : > { %5638 = vmatpush3.msra.mxu1 %v5176_v9 }
0x228e   : > { %5639 = vmatprep.subr.mxu1 %v6411_v8 }
0x228f   : > { %5640 = vmatpush3.msra.mxu1 %v5175_v31 }
0x2290   : > { %5641 = vmatprep.subr.mxu1 %v6411_v8 }
0x2291   : > { %5642 = vmatpush3.msra.mxu1 %v5174_v43 }
0x2292   : > { %5643 = vmatprep.subr.mxu1 %v6411_v8 }
0x2293   : > { %5644 = vmatpush3.msra.mxu1 %v5173_v44 }
0x233c   : > { %v4350_v54 = vpop.f32.mrf.mxu1 }
0x233e   : > { %v5603_v57 = vpop.f32.mrf.mxu1 }
0x2344   : > { %v4432_v58 = vpop.f32.mrf.mxu1 }
0x2345   : > { %v4433_v59 = vadd.f32 %v4432_v58, %v7011_v21 }
0x2346   : > { %v5610_v60 = vpop.f32.mrf.mxu1 }
0x2347   : > { %v4436_v61 = vsel %vm1693_vm4, %v4433_v59, -inf }
0x2348   : > { %4437 = vmax.xlane.f32.xlu0 %v4436_v61 }
0x235e   : > { %4449 = vrot.lane.b32.xlu0 %v7295_v52, %s7620_s4 }
0x2362   : > { %4527 = vrot.lane.b32.xlu0 %v4178_v33, %s7621_s17  ;;  %s7633_s17 = sld [smem:[#allocation55_spill]] }
0x23d1   : > { %v4438_v62 = vpop.xlane.xlu0 %4437 }
0x23d2   : > { %v4439_v63 = vsub.f32 %v4433_v59, %v4438_v62 }
0x23d4   : > { %v4440_v0 = vmul.f32 1.442695, %v4439_v63 }
0x23d5   : > { %v4450_v1 = vpop.permute.xlu0 %4449 }
0x23d6   : > { %5921 = vpow2.f32 %v4440_v0  ;;  %5612 = vmatpush3.msra.mxu0 %v4450_v1 }
0x23d7   : > { %5613 = vmatprep.subr.mxu0 %v6411_v8 }
0x23e3   : > { %v5922_v3 = vpop.eup %5921 }
0x23e4   : > { %v4442_v21 = vsel %vm1693_vm4, %v5922_v3, 0.0 }
0x23e5   : > { %4443 = vadd.xlane.f32.xlu1 %v4442_v21 }
0x23f6   : > { %4447 = vrot.lane.b32.xlu1 %v7297_v20, %s7620_s4  ;;  %v4528_v20 = vpop.permute.xlu0 %4527 }
0x23f7   : > { %v4538_v14 = vsel %vm1022_vm2, %v7338_v17, %v4528_v20  ;;  %v4576_v17 = vld [vmem:[#allocation17 + $0x30] sm:$0xff] }
0x23fa   : > { %4531 = vrot.lane.b32.xlu1 %v4350_v54, %s7622_s24  ;;  %s4819_s24 = scalar_lea.hbm %s7633_s17, %s5186_s6 }
0x246e   : > { %v4444_v52 = vpop.xlane.xlu1 %4443 }
0x246f   : > { %5923 = vrcp.f32 %v4444_v52 }
0x2472   : > { %v4448_v4 = vpop.permute.xlu1 %4447 }
0x2473   : > { %5614 = vmatpush3.msra.mxu0 %v4448_v4 }
0x2474   : > { %5618 = vmatprep.subr.mxu0 %v6411_v8 }
0x2476   : > { %v4532_v13 = vpop.permute.xlu1 %4531 }
0x2477   : > { %v4539_v15 = vsel %vm1693_vm4, %v4538_v14, %v4532_v13 }
0x247c   : > { %v5924_v6 = vpop.eup %5923 }
0x247d   : > { %v4446_v7 = vmul.f32 %v5924_v6, %v5922_v3 }
0x247f   : > { %5616 = vmatmul.mubr.msk.f32.vlgmr.msra.gmra.mxu0 %vm1693_vm4, %v4446_v7 }
0x2480   : > { %5626 = vmatprep.mubr.msk.f32.mxu0 %vm6412_vm1, %v6411_v8  ;;  %5619 = vmatpush3.msra.mxu0 %v4577_v27 }
0x2481   : > { %5620 = vmatprep.subr.mxu0 %v6411_v8 }
0x2482   : > { %5621 = vmatpush3.msra.mxu0 %v4576_v17  ;;  %v5183_v17 = vld [vmem:[#allocation22] ss:$0 sm:$0xff] }
0x2483   : > { %5622 = vmatprep.subr.mxu0 %v6411_v8 }
0x2484   : > { %5623 = vmatpush3.msra.mxu0 %v4575_v34 }
0x2485   : > { %5624 = vmatprep.subr.mxu0 %v6411_v8 }
0x253f   : > { %v4522_v10 = vpop.f32.mrf.mxu0 }
0x2540   : > { %4535 = vrot.lane.b32.xlu0 %v4522_v10, %s7623_s10  ;;  %s4808_s10 = scalar_lea.sflag [#allocation4], %s6779_s12 }
0x2541   : > { %v5617_v12 = vpop.f32.mrf.mxu0 }
0x25b2   : > { %v4536_v16 = vpop.permute.xlu0 %4535 }
0x25b3   : > { %v4540_v18 = vsel %vm1695_vm5, %v4539_v15, %v4536_v16 }
0x25b4   : > { %v4541_v19 = vadd.f32 %v4540_v18, %v7289_v49  ;;  %v4574_v49 = vld [vmem:[#allocation17 + $0x20] sm:$0xff] }
0x25b5   : > { %5625 = vmatpush3.msra.mxu0 %v4574_v49  ;;  %v5184_v49 = vld [vmem:[#allocation23] ss:$0 sm:$0xff] }
0x25b6   : > { %v4546_v22 = vsel %vm905_vm0, %v4541_v19, 0.0 }
0x25b7   : > { %4547 = vadd.xlane.f32.xlu1 %v4546_v22 }
0x2640   : > { %v4548_v23 = vpop.xlane.xlu1 %4547 }
0x2641   : > { %v4549_v24 = vmul.f32 0.03125, %v4548_v23 }
0x2643   : > { %v4550_v25 = vsub.f32 %v4541_v19, %v4549_v24 }
0x2645   : > { %v4551_v55 = vmul.f32 %v4550_v25, %v4550_v25 }
0x2647   : > { %v4552_v26 = vsel %vm905_vm0, %v4551_v55, 0.0 }
0x2648   : > { %4553 = vadd.xlane.f32.xlu0 %v4552_v26 }
0x26d1   : > { %v4554_v32 = vpop.xlane.xlu0 %4553 }
0x26d2   : > { %v4555_v2 = vmul.f32 0.03125, %v4554_v32 }
0x26d4   : > { %v4556_v33 = vadd.f32 1e-05, %v4555_v2 }
0x26d6   : > { %5925 = vrsqrt.f32 %v4556_v33 }
0x26e3   : > { %v5926_v35 = vpop.eup %5925 }
0x26e4   : > { %v4558_v11 = vmul.f32 %v5926_v35, %v4550_v25 }
0x26e6   : > { %v4565_v39 = vmul.f32 %v5169_v38, %v4558_v11 }
0x26e8   : > { %v4572_v41 = vadd.f32 %v5170_v56, %v4565_v39 }
0x26ea   : > { %5627 = vmatmul.mubr.msk.f32.vlgmr.msra.gmra.mxu0 %vm905_vm0, %v4572_v41 }
0x27aa   : > { %v4655_v46 = vpop.f32.mrf.mxu0 }
0x27ab   : > { %v4656_v37 = vadd.f32 %v5171_v45, %v4655_v46 }
0x27ac   : > { %v5628_v47 = vpop.f32.mrf.mxu0 }
0x27ad   : > { %5646 = vmatmul.mubr.msk.f32.vlgmr.msra.gmra.mxu1 %vm2739_vm7, %v4656_v37 }
0x286d   : > { %v4745_v50 = vpop.f32.mrf.mxu1 }
0x286e   : > { %v4746_v51 = vadd.f32 %v5181_v48, %v4745_v50 }
0x286f   : > { %v5647_v40 = vpop.f32.mrf.mxu1 }
0x2870   : > { %v4750_v5 = vmul.f32 0.70710677, %v4746_v51  ;;  %v4749_v13 = vmul.f32 0.5, %v4746_v51 }
0x2872   : > { %v4753_v53 = vand.u32 2147483647, %v4750_v5  ;;  %vm4751_vm9 = vcmp.ge.f32.partialorder %v4750_v5, 0.0 }
0x2873   : > { %v4752_v12 = vsel %vm4751_vm9, 1.0, %v6428_v42 }
0x2874   : > { %v4754_v54 = vmul.f32 0.3275911, %v4753_v53  ;;  %v4767_v8 = vsub.f32 0.0, %v4753_v53 }
0x2876   : > { %v4755_v57 = vadd.f32 1.0, %v4754_v54  ;;  %v4768_v58 = vmul.f32 %v4767_v8, %v4753_v53 }
0x2878   : > { %5927 = vrcp.f32 %v4755_v57  ;;  %v4769_v61 = vmul.f32 1.442695, %v4768_v58 }
0x287a   : > { %5929 = vpow2.f32 %v4769_v61 }
0x2885   : > { %v5928_v59 = vpop.eup %5927 }
0x2886   : > { %v4758_v60 = vmul.f32 1.0614054, %v5928_v59 }
0x2887   : > { %v5930_v6 = vpop.eup %5929 }
0x2888   : > { %v4759_v62 = vadd.f32 -1.4531521, %v4758_v60 }
0x288a   : > { %v4760_v63 = vmul.f32 %v5928_v59, %v4759_v62 }
0x288c   : > { %v4761_v0 = vadd.f32 1.4214138, %v4760_v63 }
0x288e   : > { %v4762_v1 = vmul.f32 %v5928_v59, %v4761_v0 }
0x2890   : > { %v4763_v3 = vadd.f32 -0.28449672, %v4762_v1 }
0x2892   : > { %v4764_v21 = vmul.f32 %v5928_v59, %v4763_v3 }
0x2894   : > { %v4765_v52 = vadd.f32 0.2548296, %v4764_v21 }
0x2896   : > { %v4766_v4 = vmul.f32 %v5928_v59, %v4765_v52 }
0x2898   : > { %v4771_v7 = vmul.f32 %v5930_v6, %v4766_v4 }
0x289a   : > { %v4772_v10 = vsub.f32 1.0, %v4771_v7 }
0x289c   : > { %v4773_v20 = vmul.f32 %v4772_v10, %v4752_v12 }
0x289e   : > { %v4774_v14 = vadd.f32 1.0, %v4773_v20 }
0x28a0   : > { %v4775_v15 = vmul.f32 %v4774_v14, %v4749_v13 }
0x28a2   : > { %v4776_v16 = vadd.f32 %v4775_v15, %v4572_v41 }
0x28a4   : > { %v4779_v18 = vsel %vm905_vm0, %v4776_v16, 0.0 }
0x28a5   : > { %4780 = vadd.xlane.f32.xlu0 %v4779_v18 }
0x292e   : > { %v4781_v19 = vpop.xlane.xlu0 %4780 }
0x292f   : > { %v4782_v22 = vmul.f32 0.03125, %v4781_v19 }
0x2931   : > { %v4783_v23 = vsub.f32 %v4776_v16, %v4782_v22 }
0x2933   : > { %v4784_v24 = vmul.f32 %v4783_v23, %v4783_v23 }
0x2935   : > { %v4785_v25 = vsel %vm905_vm0, %v4784_v24, 0.0 }
0x2936   : > { %4786 = vadd.xlane.f32.xlu1 %v4785_v25 }
0x29bf   : > { %v4787_v55 = vpop.xlane.xlu1 %4786 }
0x29c0   : > { %v4788_v42 = vmul.f32 0.03125, %v4787_v55 }
0x29c2   : > { %v4789_v26 = vadd.f32 1e-05, %v4788_v42 }
0x29c4   : > { %5931 = vrsqrt.f32 %v4789_v26 }
0x29d1   : > { %v5932_v27 = vpop.eup %5931 }
0x29d2   : > { %v4791_v34 = vmul.f32 %v5932_v27, %v4783_v23 }
0x29d4   : > { %v4798_v28 = vmul.f32 %v5183_v17, %v4791_v34 }
0x29d6   : > { %v4805_v36 = vadd.f32 %v5184_v49, %v4798_v28 }
0x29d8   : > { %4806 = vst.msk [vmem:[%s882_s13] sm:$0xff] %vm905_vm0, %v4805_v36 }
0x29d9   : > { %6312 = shalt.err (!%p6309_p12)
}
0x29da   : > { %s6313_s8 = scalar_lea.hbm %s4819_s24, 128  ;;  %s6317_s0 = scalar_lea.hbm %s7633_s17, 256 }
0x29db   : > { %p6314_p0 = scmp.ne.s32.totalorder %s4819_s24, %s6313_s8  ;;  %p6318_p13 = scmp.lt.s32.totalorder %s4819_s24, %s7633_s17 }
0x29dc   : > { %p6319_p9 = scmp.lt.s32.totalorder %s6317_s0, %s6313_s8 }
0x29dd   : > { %p6315_p1 = pnand %p6314_p0, %p7634_p2 }
0x29de   : > { %p6320_p3 = por %p6319_p9, %p6318_p13 }
0x29df   : > { %p6316_p7 = pneg %p6315_p1 }
0x29e1   : > { %p6321_p6 = pnand %p6320_p3, %p6316_p7 }
0x29e3   : > { %6324 = shalt.err (!%p6321_p6)
}
0x29e4   : > { %5702 = dma.vmem_to_hbm [thread:$0]  (%p7634_p2), %s4822_s22, 128, %s4819_s24, %s4808_s10  }
0x29e5 PF: > { %s4833_s23 = sand.u32 1, %s6379_s2   ;;  %p7635_p5 = scmp.ne.s32.totalorder %s7593_s28, 0 }
0x29e6   : > { %p7636_p4 = scmp.ge.s32.totalorder %s6391_s27, 2  ;;  %s4834_s6 = scalar_lea.sflag [#allocation4], %s4833_s23 }
0x29e8   : > { %p5749_p8 = pnand %p7636_p4, %p7635_p5 }
0x29ea   : > { %p5750_p10 = pneg %p5749_p8 }
0x29ec   : > { %6374 = dma.done.wait (%p5750_p10), %s4834_s6, 128  }
0x29ed   : > { %6376 = vsyncadd (%p5750_p10), %s4834_s6, 4294967168  ;;  %p41_p11 = scmp.ge.s32.totalorder %s6722_s5, 4   ;;  %s7637_s2 = smov %s6383_s25 }
0x29ee   : > { %s7638_s25 = smov %s6387_s26  ;;  %s7639_s26 = smov %s6734_s7 }
0x29ef   : > { %s7640_s27 = smov %s6722_s5  ;;  %43 = sbr.rel (!%p41_p11) target bundleno = 34 (0x22), region = 223 }
0x29f4   :  { %4839 = vsyncpa [#allocation3], 1 }
0x29f5   :  { %4841 = vsyncpa [#allocation3 + $0x1], 1 }
0x29f6   :  { %4842 = vsyncpa [#allocation6], 1 }
0x29f7   :  { %4843 = vsyncpa [#allocation9], 1 }
0x29f8   :  { %4844 = vsyncpa [#allocation12], 1 }
0x29f9   :  { %4845 = vsyncpa [#allocation15], 1 }
0x29fa   :  { %4846 = vsyncpa [#allocation18], 1 }
0x29fb   :  { %4847 = vsyncpa [#allocation21], 1 }
0x29fc   :  { %4848 = vsyncpa [#allocation24], 1 }
0x29fd   :  { %4849 = vsyncpa [#allocation4], 1 }
0x29fe   :  { %4851 = vsyncpa [#allocation4 + $0x1], 1 }

</bundles_post_ra>
